<compile_context>
chip_gen: v7x
topology: tpu7x:2x2x1
jax: 0.10.0
libtpu: 0.0.40
codegen_flags: <defaults>
</compile_context>

<pallas_src>
import functools
import math

import numpy as np
import jax
import jax.numpy as jnp
from jax.experimental import pallas as pl
from jax.experimental.pallas import tpu as pltpu


# ----------------------------- frequency-index / DCT glue -----------------------------
def get_freq_indices(method):
    assert method in ['top1', 'top2', 'top4', 'top8', 'top16', 'top32',
                      'bot1', 'bot2', 'bot4', 'bot8', 'bot16', 'bot32',
                      'low1', 'low2', 'low4', 'low8', 'low16', 'low32']
    num_freq = int(method[3:])
    if 'top' in method:
        ax = [0, 0, 6, 0, 0, 1, 1, 4, 5, 1, 3, 0, 0, 0, 3, 2, 4, 6, 3, 5, 5, 2, 6, 5, 5, 3, 3, 4, 2, 2, 6, 1]
        ay = [0, 1, 0, 5, 2, 0, 2, 0, 0, 6, 0, 4, 6, 3, 5, 2, 6, 3, 3, 3, 5, 1, 1, 2, 4, 2, 1, 1, 3, 0, 5, 3]
    elif 'low' in method:
        ax = [0, 0, 1, 1, 0, 2, 2, 1, 2, 0, 3, 4, 0, 1, 3, 0, 1, 2, 3, 4, 5, 0, 1, 2, 3, 4, 5, 6, 1, 2, 3, 4]
        ay = [0, 1, 0, 1, 2, 0, 1, 2, 2, 3, 0, 0, 4, 3, 1, 5, 4, 3, 2, 1, 0, 6, 5, 4, 3, 2, 1, 0, 6, 5, 4, 3]
    else:
        ax = [6, 1, 3, 3, 2, 4, 1, 2, 4, 4, 5, 1, 4, 6, 2, 5, 6, 1, 6, 2, 2, 4, 3, 3, 5, 5, 6, 2, 5, 5, 3, 6]
        ay = [6, 4, 4, 6, 6, 3, 1, 4, 4, 5, 6, 5, 2, 2, 5, 1, 4, 3, 5, 0, 3, 1, 1, 2, 4, 2, 1, 1, 5, 3, 3, 3]
    return ax[:num_freq], ay[:num_freq]


def _build_filter(pos, freq, POS):
    r = math.cos(math.pi * freq * (pos + 0.5) / POS) / math.sqrt(POS)
    return r if freq == 0 else r * math.sqrt(2)


def get_dct_filter(tile_x, tile_y, mapper_x, mapper_y, channels):
    f = np.zeros((channels, tile_x, tile_y), dtype=np.float32)
    c_part = channels // len(mapper_x)
    for i, (ux, vy) in enumerate(zip(mapper_x, mapper_y)):
        for tx in range(tile_x):
            for ty in range(tile_y):
                f[i * c_part:(i + 1) * c_part, tx, ty] = (
                    _build_filter(tx, ux, tile_x) * _build_filter(ty, vy, tile_y))
    return f


# ----------------------------------- Pallas kernel -----------------------------------
def mf_layer_kernel(x_ref, weff_ref, w1t_ref, w2t_ref, wf1t_ref, wf2t_ref,
                    wsp_ref, out_ref, *, s_true):
    """Fused CBAM (channel+spatial) + FCA for one (Bt, C, S_pad) batch tile."""
    x = x_ref[...].astype(jnp.float32)                  # (Bt, C, Sp), f32 accumulate
    bt, _, sp = x.shape
    inv_s = 1.0 / float(s_true)
    inv_sm1 = 1.0 / float(max(s_true - 1, 1))           # torch .std(-1) is unbiased

    # ---- one-pass spatial statistics (padded lanes are zeros -> sums exact) ----
    sum_x = jnp.sum(x, axis=-1)                         # (Bt, C)
    sum_sq = jnp.sum(x * x, axis=-1)                    # (Bt, C)
    mean = sum_x * inv_s
    var = jnp.maximum(sum_sq - sum_x * mean, 0.0) * inv_sm1   # clamp: no sqrt(-eps)
    std = jnp.sqrt(var)

    # max pool must ignore the zero-padded lanes
    if sp != s_true:
        lane = jax.lax.broadcasted_iota(jnp.int32, x.shape, dimension=2)
        mx = jnp.max(jnp.where(lane < s_true, x, -jnp.inf), axis=-1)
    else:
        mx = jnp.max(x, axis=-1)                        # (Bt, C)

    # ---- CBAM channel attention: ONE fused fc1/fc2 pass over [mean; max; std] ----
    stacked = jnp.concatenate([mean, mx, std], axis=0)  # (3*Bt, C)
    h = jnp.maximum(jnp.dot(stacked, w1t_ref[...],
                            preferred_element_type=jnp.float32), 0.0)
    o3 = jnp.dot(h, w2t_ref[...], preferred_element_type=jnp.float32)   # (3*Bt, C)
    ca = jax.nn.sigmoid(o3[:bt] + o3[bt:2 * bt] + o3[2 * bt:])           # (Bt, C)

    # ---- CBAM spatial attention on the (Bt, C, 1, 1) map: only center conv taps ----
    avg_c = jnp.mean(ca, axis=-1, keepdims=True)        # (Bt, 1)
    max_c = jnp.max(ca, axis=-1, keepdims=True)         # (Bt, 1)
    sa = jax.nn.sigmoid((wsp_ref[0] + wsp_ref[1]) * avg_c + wsp_ref[2] * max_c)

    # ---- FCA: DCT-weighted spatial reduce (adaptive pool folded into weff), SE MLP ----
    y = jnp.sum(x * weff_ref[...][None], axis=-1)       # (Bt, C)
    hdn = jnp.maximum(jnp.dot(y, wf1t_ref[...],
                              preferred_element_type=jnp.float32), 0.0)
    scale = jax.nn.sigmoid(jnp.dot(hdn, wf2t_ref[...],
                                   preferred_element_type=jnp.float32))  # (Bt, C)

    # bilinear upsample of a (B,1,1,1) map is a constant broadcast
    out_ref[...] = (x * scale[:, :, None] + sa[:, :, None]).astype(out_ref.dtype)


# --------------------------------------- wrapper --------------------------------------
def make_mf_layer_params(in_channels, scaling=16, kernel_size=3, dct_h=7, dct_w=7,
                         reduction=16, freq_sel_method='top32', H=14, W=14, seed=0):
    key = jax.random.PRNGKey(seed)
    k1, k2, k3, k4, k5 = jax.random.split(key, 5)
    C = in_channels
    Cr = max(C // scaling, 1)
    Csq = max(C // reduction, 1)

    # CBAM channel-attention 1x1 convs (bias=False): stored transposed for right-mul.
    w1 = jax.random.normal(k1, (Cr, C), jnp.float32) / np.sqrt(C)        # fc1
    w2 = jax.random.normal(k2, (C, Cr), jnp.float32) / np.sqrt(Cr)       # fc2
    # CBAM spatial conv (1, 3, k, k); only its center taps are ever used here.
    wsp_full = jax.random.normal(k3, (1, 3, kernel_size, kernel_size), jnp.float32) / 3.0
    wsp_center = wsp_full[0, :, kernel_size // 2, kernel_size // 2]      # (3,)

    # FCA squeeze-excite Linear layers (bias=False).
    wf1 = jax.random.normal(k4, (Csq, C), jnp.float32) / np.sqrt(C)
    wf2 = jax.random.normal(k5, (C, Csq), jnp.float32) / np.sqrt(Csq)

    # DCT filter + fold adaptive_avg_pool2d(H,W -> dct_h,dct_w) into effective weights.
    mapper_x, mapper_y = get_freq_indices(freq_sel_method)
    mapper_x = [t * (dct_h // 7) for t in mapper_x]
    mapper_y = [t * (dct_w // 7) for t in mapper_y]
    assert C % len(mapper_x) == 0
    dct = get_dct_filter(dct_h, dct_w, mapper_x, mapper_y, C)            # (C, dct_h, dct_w)
    assert H % dct_h == 0 and W % dct_w == 0, "pool folding requires H,W multiples of dct size"
    kh, kw = H // dct_h, W // dct_w
    weff = np.repeat(np.repeat(dct, kh, axis=1), kw, axis=2) / float(kh * kw)

    # Lane-dense padding of the effective DCT weights (zeros are exact for the sum).
    S = H * W
    Sp = ((S + 127) // 128) * 128
    weff_p = np.zeros((C, Sp), dtype=np.float32)
    weff_p[:, :S] = weff.reshape(C, S)

    return {
        'w1t': w1.T, 'w2t': w2.T,
        'wf1t': wf1.T, 'wf2t': wf2.T,
        'wsp_center': wsp_center,
        'weff': jnp.asarray(weff_p),          # (C, Sp)
    }


def _pick_batch_tile(B, C, Sp, elem_bytes, target_bytes=2 << 20, max_bt=8):
    """Largest divisor of B with a ~<=2MB x-block (keeps 2x in + 2x out buffers
    comfortably inside the default scoped VMEM on v5e/v6e/v7x)."""
    per_b = C * Sp * elem_bytes
    bt = int(max(1, min(B, max_bt, target_bytes // max(per_b, 1))))
    while B % bt:
        bt -= 1
    return bt


def mf_layer_forward(x, params):
    B, C, H, W = x.shape
    S = H * W
    Sp = params['weff'].shape[-1]
    assert Sp >= S and Sp % 128 == 0

    x2 = x.reshape(B, C, S)
    if Sp != S:
        x2 = jnp.pad(x2, ((0, 0), (0, 0), (0, Sp - S)))   # zero pad -> sums stay exact

    Bt = _pick_batch_tile(B, C, Sp, x2.dtype.itemsize)
    nb = B // Bt
    Cr = params['w1t'].shape[-1]
    Csq = params['wf1t'].shape[-1]

    def const2(shape):
        # whole-array block, constant index -> DMA'd once, stays VMEM-resident
        return pl.BlockSpec(shape, lambda i: (0, 0))

    # TODO(synk): if the caller never reuses x, input_output_aliases={0: 0} would
    # avoid allocating a second (B, C, Sp) HBM buffer.
    out = pl.pallas_call(
        functools.partial(mf_layer_kernel, s_true=S),
        out_shape=jax.ShapeDtypeStruct((B, C, Sp), x.dtype),
        grid=(nb,),
        in_specs=[
            pl.BlockSpec((Bt, C, Sp), lambda i: (i, 0, 0)),      # x batch tile (pipelined)
            const2((C, Sp)),                                     # weff
            const2((C, Cr)),                                     # w1t
            const2((Cr, C)),                                     # w2t
            const2((C, Csq)),                                    # wf1t
            const2((Csq, C)),                                    # wf2t
            pl.BlockSpec(memory_space=pltpu.MemorySpace.SMEM),   # wsp center taps (3 scalars)
        ],
        out_specs=pl.BlockSpec((Bt, C, Sp), lambda i: (i, 0, 0)),
        compiler_params=pltpu.CompilerParams(
            dimension_semantics=("parallel",)),                  # megacore sharding on v7x
    )(x2, params['weff'], params['w1t'], params['w2t'],
      params['wf1t'], params['wf2t'], params['wsp_center'])

    return out[..., :S].reshape(B, C, H, W)


# ---------------------------- pure-JAX reference (for check) ---------------------------
def mf_layer_ref(x, p):
    B, C, H, W = x.shape
    S = H * W
    xf = x.reshape(B, C, S)
    mean = xf.mean(-1)
    mx = xf.max(-1)
    std = jnp.sqrt(((xf - mean[:, :, None]) ** 2).sum(-1) / (S - 1))

    def mlp(v):
        return jnp.maximum(v @ p['w1t'], 0.0) @ p['w2t']

    ca = jax.nn.sigmoid(mlp(mean) + mlp(mx) + mlp(std))
    avg_c = ca.mean(-1, keepdims=True)
    max_c = ca.max(-1, keepdims=True)
    w = p['wsp_center']
    sa = jax.nn.sigmoid(w[0] * avg_c + w[1] * avg_c + w[2] * max_c)
    y = (xf * p['weff'][None, :, :S]).sum(-1)
    scale = jax.nn.sigmoid(jnp.maximum(y @ p['wf1t'], 0.0) @ p['wf2t'])
    out = xf * scale[:, :, None] + sa[:, :, None]
    return out.reshape(B, C, H, W)


if __name__ == "__main__":
    # channels must be a multiple of 32 for freq_sel_method='top32';
    # B=16 with Bt=8 exercises a 2-step "parallel" grid.
    B, C, H, W = 16, 32, 14, 14
    key = jax.random.PRNGKey(0)
    x = jax.random.normal(key, (B, C, H, W), jnp.float32)

    params = make_mf_layer_params(C, scaling=16, kernel_size=3, dct_h=7, dct_w=7,
                                  reduction=16, freq_sel_method='top32', H=H, W=W, seed=0)

    out = mf_layer_forward(x, params)
    out = jax.block_until_ready(out)

    ref = jax.block_until_ready(mf_layer_ref(x, params))
    assert out.shape == (B, C, H, W)
    np.testing.assert_allclose(np.asarray(out), np.asarray(ref), rtol=1e-4, atol=1e-4)

    print("KERNEL_OK")
</pallas_src>

<mosaic_0001>
module attributes {stable_mosaic.version = 11 : i64} {
  func.func @mf_layer_kernel(%arg0: i32, %arg1: memref<8x32x256xf32, #tpu.memory_space<vmem>>, %arg2: memref<32x256xf32, #tpu.memory_space<vmem>>, %arg3: memref<32x2xf32, #tpu.memory_space<vmem>>, %arg4: memref<2x32xf32, #tpu.memory_space<vmem>>, %arg5: memref<32x2xf32, #tpu.memory_space<vmem>>, %arg6: memref<2x32xf32, #tpu.memory_space<vmem>>, %arg7: memref<3xf32, #tpu.memory_space<smem>>, %arg8: memref<8x32x256xf32, #tpu.memory_space<vmem>>) attributes {dimension_semantics = [#tpu.dimension_semantics<parallel>], iteration_bounds = array<i64: 2>, scalar_prefetch = 0 : i64, scratch_operands = 0 : i64, tpu.core_type = #tpu.core_type<tc>, window_params = [{transform_indices = @transform_0, window_bounds = array<i64: 8, 32, 256>}, {pipeline_mode = #tpu.pipeline_mode<synchronous>, transform_indices = @transform_1, window_bounds = array<i64: 32, 256>}, {pipeline_mode = #tpu.pipeline_mode<synchronous>, transform_indices = @transform_2, window_bounds = array<i64: 32, 2>}, {pipeline_mode = #tpu.pipeline_mode<synchronous>, transform_indices = @transform_3, window_bounds = array<i64: 2, 32>}, {pipeline_mode = #tpu.pipeline_mode<synchronous>, transform_indices = @transform_4, window_bounds = array<i64: 32, 2>}, {pipeline_mode = #tpu.pipeline_mode<synchronous>, transform_indices = @transform_5, window_bounds = array<i64: 2, 32>}, {transform_indices = @transform_6, window_bounds = array<i64: 3>}, {transform_indices = @transform_7, window_bounds = array<i64: 8, 32, 256>}]} {
    %c0 = arith.constant 0 : index
    %c0_0 = arith.constant 0 : index
    %c0_1 = arith.constant 0 : index
    %0 = vector.load %arg1[%c0, %c0_0, %c0_1] : memref<8x32x256xf32, #tpu.memory_space<vmem>>, vector<8x32x256xf32>
    %cst = arith.constant dense<0.000000e+00> : vector<8x32xf32>
    %1 = vector.multi_reduction <add>, %0, %cst [2] : vector<8x32x256xf32> to vector<8x32xf32>
    %2 = arith.mulf %0, %0 : vector<8x32x256xf32>
    %cst_2 = arith.constant dense<0.000000e+00> : vector<8x32xf32>
    %3 = vector.multi_reduction <add>, %2, %cst_2 [2] : vector<8x32x256xf32> to vector<8x32xf32>
    %cst_3 = arith.constant 0.00510204071 : f32
    %4 = vector.broadcast %cst_3 : f32 to vector<8x32xf32>
    %5 = arith.mulf %1, %4 : vector<8x32xf32>
    %6 = arith.mulf %1, %5 : vector<8x32xf32>
    %7 = arith.subf %3, %6 : vector<8x32xf32>
    %cst_4 = arith.constant 0.000000e+00 : f32
    %8 = vector.broadcast %cst_4 : f32 to vector<8x32xf32>
    %9 = arith.maximumf %7, %8 : vector<8x32xf32>
    %cst_5 = arith.constant 0.00512820529 : f32
    %10 = vector.broadcast %cst_5 : f32 to vector<8x32xf32>
    %11 = arith.mulf %9, %10 : vector<8x32xf32>
    %12 = math.sqrt %11 : vector<8x32xf32>
    %13 = tpu.iota {dimensions = array<i32: 2>} : vector<8x32x256xi32>
    %c196_i32 = arith.constant 196 : i32
    %14 = vector.broadcast %c196_i32 : i32 to vector<8x32x256xi32>
    %15 = arith.cmpi slt, %13, %14 : vector<8x32x256xi32>
    %cst_6 = arith.constant 0xFF800000 : f32
    %16 = vector.broadcast %cst_6 : f32 to vector<8x32x256xf32>
    %17 = arith.select %15, %0, %16 : vector<8x32x256xi1>, vector<8x32x256xf32>
    %cst_7 = arith.constant dense<0xFF800000> : vector<8x32xf32>
    %18 = vector.multi_reduction <maximumf>, %17, %cst_7 [2] : vector<8x32x256xf32> to vector<8x32xf32>
    %19 = tpu.concatenate %5, %18, %12 in 0 : vector<8x32xf32>, vector<8x32xf32>, vector<8x32xf32> -> vector<24x32xf32>
    %c0_8 = arith.constant 0 : index
    %c0_9 = arith.constant 0 : index
    %20 = vector.load %arg3[%c0_8, %c0_9] : memref<32x2xf32, #tpu.memory_space<vmem>>, vector<32x2xf32>
    %cst_10 = arith.constant dense<0.000000e+00> : vector<24x2xf32>
    %21 = tpu.matmul %19, %20, %cst_10 {dimension_numbers = #tpu.dot_dimension_numbers<[1], [0], [0], [1], [0, 0, 1, 1], [], []>} : vector<24x32xf32>, vector<32x2xf32>, vector<24x2xf32> -> vector<24x2xf32>
    %cst_11 = arith.constant 0.000000e+00 : f32
    %22 = vector.broadcast %cst_11 : f32 to vector<24x2xf32>
    %23 = arith.maximumf %21, %22 : vector<24x2xf32>
    %c0_12 = arith.constant 0 : index
    %c0_13 = arith.constant 0 : index
    %24 = vector.load %arg4[%c0_12, %c0_13] : memref<2x32xf32, #tpu.memory_space<vmem>>, vector<2x32xf32>
    %cst_14 = arith.constant dense<0.000000e+00> : vector<24x32xf32>
    %25 = tpu.matmul %23, %24, %cst_14 {dimension_numbers = #tpu.dot_dimension_numbers<[1], [0], [0], [1], [0, 0, 1, 1], [], []>} : vector<24x2xf32>, vector<2x32xf32>, vector<24x32xf32> -> vector<24x32xf32>
    %26 = vector.extract_strided_slice %25 {offsets = [0, 0], sizes = [8, 32], strides = [1, 1]} : vector<24x32xf32> to vector<8x32xf32>
    %27 = vector.extract_strided_slice %25 {offsets = [8, 0], sizes = [8, 32], strides = [1, 1]} : vector<24x32xf32> to vector<8x32xf32>
    %28 = arith.addf %26, %27 : vector<8x32xf32>
    %29 = vector.extract_strided_slice %25 {offsets = [16, 0], sizes = [8, 32], strides = [1, 1]} : vector<24x32xf32> to vector<8x32xf32>
    %30 = arith.addf %28, %29 : vector<8x32xf32>
    %31 = arith.negf %30 : vector<8x32xf32>
    %32 = math.exp %31 : vector<8x32xf32>
    %cst_15 = arith.constant 1.000000e+00 : f32
    %33 = vector.broadcast %cst_15 : f32 to vector<8x32xf32>
    %34 = arith.addf %33, %32 : vector<8x32xf32>
    %35 = arith.divf %33, %34 : vector<8x32xf32>
    %cst_16 = arith.constant dense<0.000000e+00> : vector<8xf32>
    %36 = vector.multi_reduction <add>, %35, %cst_16 [1] : vector<8x32xf32> to vector<8xf32>
    %37 = vector.shape_cast %36 : vector<8xf32> to vector<8x1xf32>
    %cst_17 = arith.constant 3.200000e+01 : f32
    %38 = vector.broadcast %cst_17 : f32 to vector<8x1xf32>
    %39 = arith.divf %37, %38 : vector<8x1xf32>
    %cst_18 = arith.constant dense<0xFF800000> : vector<8xf32>
    %40 = vector.multi_reduction <maximumf>, %35, %cst_18 [1] : vector<8x32xf32> to vector<8xf32>
    %41 = vector.shape_cast %40 : vector<8xf32> to vector<8x1xf32>
    %c0_19 = arith.constant 0 : index
    %42 = memref.load %arg7[%c0_19] : memref<3xf32, #tpu.memory_space<smem>>
    %c1 = arith.constant 1 : index
    %43 = memref.load %arg7[%c1] : memref<3xf32, #tpu.memory_space<smem>>
    %44 = arith.addf %42, %43 : f32
    %45 = vector.broadcast %44 : f32 to vector<8x1xf32>
    %46 = arith.mulf %45, %39 : vector<8x1xf32>
    %c2 = arith.constant 2 : index
    %47 = memref.load %arg7[%c2] : memref<3xf32, #tpu.memory_space<smem>>
    %48 = vector.broadcast %47 : f32 to vector<8x1xf32>
    %49 = arith.mulf %48, %41 : vector<8x1xf32>
    %50 = arith.addf %46, %49 : vector<8x1xf32>
    %51 = arith.negf %50 : vector<8x1xf32>
    %52 = math.exp %51 : vector<8x1xf32>
    %cst_20 = arith.constant 1.000000e+00 : f32
    %53 = vector.broadcast %cst_20 : f32 to vector<8x1xf32>
    %54 = arith.addf %53, %52 : vector<8x1xf32>
    %55 = arith.divf %53, %54 : vector<8x1xf32>
    %c0_21 = arith.constant 0 : index
    %c0_22 = arith.constant 0 : index
    %56 = vector.load %arg2[%c0_21, %c0_22] : memref<32x256xf32, #tpu.memory_space<vmem>>, vector<32x256xf32>
    %57 = vector.shape_cast %56 : vector<32x256xf32> to vector<1x32x256xf32>
    %58 = vector.broadcast %57 : vector<1x32x256xf32> to vector<8x32x256xf32>
    %59 = arith.mulf %0, %58 : vector<8x32x256xf32>
    %cst_23 = arith.constant dense<0.000000e+00> : vector<8x32xf32>
    %60 = vector.multi_reduction <add>, %59, %cst_23 [2] : vector<8x32x256xf32> to vector<8x32xf32>
    %c0_24 = arith.constant 0 : index
    %c0_25 = arith.constant 0 : index
    %61 = vector.load %arg5[%c0_24, %c0_25] : memref<32x2xf32, #tpu.memory_space<vmem>>, vector<32x2xf32>
    %cst_26 = arith.constant dense<0.000000e+00> : vector<8x2xf32>
    %62 = tpu.matmul %60, %61, %cst_26 {dimension_numbers = #tpu.dot_dimension_numbers<[1], [0], [0], [1], [0, 0, 1, 1], [], []>} : vector<8x32xf32>, vector<32x2xf32>, vector<8x2xf32> -> vector<8x2xf32>
    %cst_27 = arith.constant 0.000000e+00 : f32
    %63 = vector.broadcast %cst_27 : f32 to vector<8x2xf32>
    %64 = arith.maximumf %62, %63 : vector<8x2xf32>
    %c0_28 = arith.constant 0 : index
    %c0_29 = arith.constant 0 : index
    %65 = vector.load %arg6[%c0_28, %c0_29] : memref<2x32xf32, #tpu.memory_space<vmem>>, vector<2x32xf32>
    %cst_30 = arith.constant dense<0.000000e+00> : vector<8x32xf32>
    %66 = tpu.matmul %64, %65, %cst_30 {dimension_numbers = #tpu.dot_dimension_numbers<[1], [0], [0], [1], [0, 0, 1, 1], [], []>} : vector<8x2xf32>, vector<2x32xf32>, vector<8x32xf32> -> vector<8x32xf32>
    %67 = arith.negf %66 : vector<8x32xf32>
    %68 = math.exp %67 : vector<8x32xf32>
    %cst_31 = arith.constant 1.000000e+00 : f32
    %69 = vector.broadcast %cst_31 : f32 to vector<8x32xf32>
    %70 = arith.addf %69, %68 : vector<8x32xf32>
    %71 = arith.divf %69, %70 : vector<8x32xf32>
    %72 = vector.shape_cast %71 : vector<8x32xf32> to vector<8x32x1xf32>
    %73 = vector.broadcast %72 : vector<8x32x1xf32> to vector<8x32x256xf32>
    %74 = arith.mulf %0, %73 : vector<8x32x256xf32>
    %75 = vector.shape_cast %55 : vector<8x1xf32> to vector<8x1x1xf32>
    %76 = vector.broadcast %75 : vector<8x1x1xf32> to vector<8x32x256xf32>
    %77 = arith.addf %74, %76 : vector<8x32x256xf32>
    %c0_32 = arith.constant 0 : index
    %c0_33 = arith.constant 0 : index
    %c0_34 = arith.constant 0 : index
    %78 = vector.load %arg8[%c0_32, %c0_33, %c0_34] : memref<8x32x256xf32, #tpu.memory_space<vmem>>, vector<8x32x256xf32>
    tpu.vector_store %arg8[%c0_32, %c0_33, %c0_34], %77 {strides = array<i32>} : memref<8x32x256xf32, #tpu.memory_space<vmem>>, vector<8x32x256xf32>,
    return
  }
  func.func @transform_0(%arg0: i32) -> (i32, i32, i32) {
    %c0_i32 = arith.constant 0 : i32
    %c0_i32_0 = arith.constant 0 : i32
    %c0_i32_1 = arith.constant 0 : i32
    return %arg0, %c0_i32, %c0_i32_0 : i32, i32, i32
  }
  func.func @transform_1(%arg0: i32) -> (i32, i32) {
    %c0_i32 = arith.constant 0 : i32
    %c0_i32_0 = arith.constant 0 : i32
    %c0_i32_1 = arith.constant 0 : i32
    return %c0_i32, %c0_i32_0 : i32, i32
  }
  func.func @transform_2(%arg0: i32) -> (i32, i32) {
    %c0_i32 = arith.constant 0 : i32
    %c0_i32_0 = arith.constant 0 : i32
    %c0_i32_1 = arith.constant 0 : i32
    return %c0_i32, %c0_i32_0 : i32, i32
  }
  func.func @transform_3(%arg0: i32) -> (i32, i32) {
    %c0_i32 = arith.constant 0 : i32
    %c0_i32_0 = arith.constant 0 : i32
    %c0_i32_1 = arith.constant 0 : i32
    return %c0_i32, %c0_i32_0 : i32, i32
  }
  func.func @transform_4(%arg0: i32) -> (i32, i32) {
    %c0_i32 = arith.constant 0 : i32
    %c0_i32_0 = arith.constant 0 : i32
    %c0_i32_1 = arith.constant 0 : i32
    return %c0_i32, %c0_i32_0 : i32, i32
  }
  func.func @transform_5(%arg0: i32) -> (i32, i32) {
    %c0_i32 = arith.constant 0 : i32
    %c0_i32_0 = arith.constant 0 : i32
    %c0_i32_1 = arith.constant 0 : i32
    return %c0_i32, %c0_i32_0 : i32, i32
  }
  func.func @transform_6(%arg0: i32) -> i32 {
    %c0_i32 = arith.constant 0 : i32
    %c0_i32_0 = arith.constant 0 : i32
    return %c0_i32 : i32
  }
  func.func @transform_7(%arg0: i32) -> (i32, i32, i32) {
    %c0_i32 = arith.constant 0 : i32
    %c0_i32_0 = arith.constant 0 : i32
    %c0_i32_1 = arith.constant 0 : i32
    return %arg0, %c0_i32, %c0_i32_0 : i32, i32, i32
  }
}

</mosaic_0001>

<bundles_post_ra>
// kernel: tpu_custom_call.1
= control target key start
LH: loop header
LB: loop body
LE: loop exit
PB: predicated region body
PF: predicated region fallthrough
CT: control target
= control target key end

     0   :  { %s5863_s0 = inlined_call_operand.hbm [shape: f32[16,32,256], index: 0, kind: input, shape index: {}]   ;;  %s5864_s1 = inlined_call_operand.vmem [shape: f32[32,256], index: 1, kind: input, shape index: {}]   ;;  %s5865_s2 = inlined_call_operand.vmem [shape: f32[32,2], index: 2, kind: input, shape index: {}]   ;;  %s5866_s3 = inlined_call_operand.vmem [shape: f32[2,32], index: 3, kind: input, shape index: {}]   ;;  %s5867_s4 = inlined_call_operand.vmem [shape: f32[32,2], index: 4, kind: input, shape index: {}]   ;;  %s5868_s5 = inlined_call_operand.vmem [shape: f32[2,32], index: 5, kind: input, shape index: {}]   ;;  %s5869_s6 = inlined_call_operand.vmem [shape: f32[3], index: 6, kind: input, shape index: {}]   ;;  %s5870_s7 = inlined_call_operand.hbm [shape: f32[16,32,256], index: 7, kind: output, shape index: {}]  }
   0x1   :  { %5931 = sst [smem:[#allocation36_spill]] %s5869_s6 }
   0x2   :  { %12 = vsyncpa [#allocation3], 0 }
   0x3   :  { %14 = vsyncpa [#allocation3 + $0x1], 0 }
   0x4   :  { %15 = vsyncpa [#allocation5], 0 }
   0x5   :  { %16 = vsyncpa [#allocation4], 0 }
   0x6   :  { %18 = vsyncpa [#allocation4 + $0x1], 0  ;;  %s3507_s24 = smov 0   ;;  %s3509_s25 = smov 0  }
   0x7   :  { %s3511_s26 = smov 0   ;;  %s3513_s27 = smov 0  }
   0x8 LB: > { %s3528_s28 = sadd.s32 4294967295, %s3455_s27   ;;  %s2993_s29 = sadd.s32 4294967294, %s3455_s27   ;;  %s3455_s27 = sphi %s3513_s27, %s6096_s27   ;;  %s3451_s26 = sphi %s3511_s26, %s6095_s26   ;;  %s3447_s25 = sphi %s3509_s25, %s6094_s25   ;;  %s3443_s24 = sphi %s3507_s24, %s6093_s24  }
   0x9   : > { %s3532_s30 = sadd.s32 1, %s3455_s27   ;;  %s31_s8 = sadd.s32 1, %s3451_s26 }
   0xa   : > { %s28_s9 = ssub.s32 %s3455_s27, %s3532_s30  ;;  %p38_p0 = scmp.ne.s32.totalorder %s3451_s26, %s3447_s25 }
   0xb   : > { %p29_p1 = scmp.eq.s32.totalorder %s28_s9, 0  ;;  %p39_p2 = scmp.eq.s32.totalorder %s3455_s27, 0 }
   0xc   : > { %p44_p3 = scmp.ne.s32.totalorder %s3447_s25, %s3443_s24  ;;  %p5872_p4 = scmp.eq.s32.totalorder %s3528_s28, 0 }
   0xd   : > { %s3544_s10 = scalar_select %p29_p1, %s3451_s26, %s31_s8  }
   0xe   : > { %p3546_p5 = por %p39_p2, %p38_p0  ;;  %p3552_p6 = por %p5872_p4, %p44_p3 }
   0xf   : > { %p194_p7 = scmp.eq.s32.totalorder %s3528_s28, 1  ;;  %p200_p8 = scmp.eq.s32.totalorder %s2993_s29, 1 }
  0x10   : > { %s5933_s12 = scalar_select %p3552_p6, 1, 0 }
  0x11   : > { %p2994_p9 = scmp.ge.s32.totalorder %s3455_s27, 1  ;;  %p207_p10 = scmp.lt.s32.totalorder %s3455_s27, 3 }
  0x12   : > { %p3559_p11 = por %p194_p7, %p38_p0  ;;  %p3563_p12 = por %p200_p8, %p44_p3 }
  0x13   : > { %p3567_p13 = pnand %p2994_p9, %p207_p10  ;;  %s5937_s6 = sld [smem:[#allocation36_spill]] }
  0x14   : > { %s5934_s13 = scalar_select %p3559_p11, 1, 0 }
  0x15   : > { %s5935_s14 = scalar_select %p3563_p12, 1, 0 }
  0x16   : > { %p3116_p1 = pneg %p3567_p13  ;;  %p3129_p2 = scmp.lt.s32.totalorder %s3455_s27, 2 }
  0x17   : > { %s246_s20 = sand.u32 1, %s3451_s26  }
  0x18   : > { %p3580_p7 = pnand %p3116_p1, %p5872_p4  ;;  %p3587_p3 = pnand %p3129_p2, %p3546_p5 }
  0x19   : > { %s235_s18 = sshll.u32 %s5937_s6, 4  ;;  %s2997_s22 = sshll.u32 %s246_s20, 9  ;;  %s236_s18 = int_to_ptr.vmem [resolvable:$true] %s235_s18 }
  0x1a   : > { %s3340_s23 = scalar_lea.vmem %s236_s18, 16  ;;  %p3342_p9 = pneg %p3580_p7 }
  0x1b   : > { %p3341_p8 = scmp.ne.s32.totalorder %s236_s18, %s3340_s23  ;;  %p3348_p12 = scmp.lt.s32.totalorder %s236_s18, %s236_s18 }
  0x1c   : > { %p3349_p11 = scmp.lt.s32.totalorder %s3340_s23, %s3340_s23 }
  0x1d   : > { %p3343_p10 = pnand %p3342_p9, %p3341_p8 }
  0x1e   : > { %p3350_p1 = por %p3349_p11, %p3348_p12 }
  0x1f   : > { %p3344_p0 = pneg %p3343_p10 }
  0x21   : > { %p3351_p4 = pnand %p3350_p1, %p3344_p0 }
  0x23   : > { %3354 = shalt.err (!%p3351_p4)
}
  0x24   : > { %s3457_s29 = smov [#allocation6]   ;;  %s3027_s8 = sshll.u32 %s3455_s27, 13 }
  0x25   : > { %3119 = dma.vmem_to_smem (!%p3580_p7), %s236_s18, 16, %s3457_s29, [#allocation5]  }
  0x26   : > { %s250_s9 = scalar_lea.vmem [#allocation2], %s2997_s22  ;;  %s3599_s6 = scalar_lea.hbm %s5863_s0, %s3027_s8 }
  0x27   : > { %s258_s11 = sshll.u32 %s250_s9, 4  ;;  %s3603_s23 = scalar_lea.sflag [#allocation3], %s246_s20  ;;  %s3601_s11 = int_to_ptr.vmem [resolvable:$true] %s258_s11 }
  0x28   : > { %s3355_s19 = scalar_lea.hbm %s3599_s6, 8192  ;;  %p3357_p5 = pneg %p3587_p3 }
  0x29   : > { %p3356_p4 = scmp.ne.s32.totalorder %s3599_s6, %s3355_s19  ;;  %s3360_s29 = scalar_lea.hbm %s5863_s0, 16384 }
  0x2a   : > { %p3361_p0 = scmp.lt.u32.totalorder %s3599_s6, %s5863_s0  ;;  %p3362_p2 = scmp.lt.u32.totalorder %s3360_s29, %s3355_s19 }
  0x2b   : > { %p3358_p11 = pnand %p3357_p5, %p3356_p4  ;;  %p3364_p8 = scmp.lt.u32.totalorder %s3355_s19, %s3599_s6 }
  0x2c   : > { %p3363_p7 = por %p3362_p2, %p3361_p0 }
  0x2d   : > { %p3359_p12 = pneg %p3358_p11 }
  0x2e   : > { %p3365_p9 = por %p3364_p8, %p3363_p7 }
  0x30   : > { %p3366_p10 = pnand %p3365_p9, %p3359_p12 }
  0x32   : > { %3369 = shalt.err (!%p3366_p10)
}
  0x33   : > { %s3370_s20 = scalar_lea.vmem %s3601_s11, 8192  ;;  %s3458_s16 = smov [#allocation2]  }
  0x34   : > { %p3371_p1 = scmp.ne.s32.totalorder %s3601_s11, %s3370_s20  ;;  %s3375_s17 = sshll.u32 %s3458_s16, 4  ;;  %s3376_s17 = int_to_ptr.vmem [resolvable:$false] %s3375_s17 }
  0x35   : > { %s3377_s18 = scalar_lea.vmem %s3376_s17, 16384  ;;  %p3378_p6 = scmp.lt.s32.totalorder %s3601_s11, %s3376_s17 }
  0x36   : > { %p3373_p4 = pnand %p3371_p1, %p3357_p5  ;;  %p3379_p0 = scmp.lt.s32.totalorder %s3377_s18, %s3370_s20 }
  0x38   : > { %p3374_p11 = pneg %p3373_p4  ;;  %p3380_p2 = por %p3379_p0, %p3378_p6 }
  0x3a   : > { %p3381_p7 = pnand %p3380_p2, %p3374_p11 }
  0x3c   : > { %3384 = shalt.err (!%p3381_p7)
}
  0x3d   : > { %s3459_s19 = smov 256   ;;  %s3460_s22 = smov 16  }
  0x3e   : > { %3123 = dma.hbm_to_vmem [thread:$0]  (!%p3587_p3), %s3599_s6, 8192, %s3601_s11, %s3603_s23, %s3459_s19, %s3459_s19, %s3460_s22  }
  0x3f   : > { %270 = sbr.rel (%p3567_p13) target bundleno = 1302 (0x516), region = 48 }
  0x46   : > { %s3634_s29 = sand.u32 1, %s3447_s25   ;;  %p5940_p6 = scmp.ne.s32.totalorder %s5933_s12, 0 }
  0x47   : > { %s3002_s8 = sshll.u32 %s3634_s29, 9  ;;  %s273_s9 = scalar_lea.sflag [#allocation3], %s3634_s29 }
  0x48   : > { %s3640_s20 = scalar_lea.vmem [#allocation2], %s3002_s8 }
  0x49   : > { %3430 = dma.done.wait (%p5940_p6), %s273_s9, 8192  }
  0x4a   : > { %3432 = vsyncadd (%p5940_p6), %s273_s9, 4294959104  ;;  %p5941_p3 = scmp.eq.s32.totalorder %s3528_s28, 0 }
  0x4c   : > { %3434 = dma.done.wait (%p5941_p3), [#allocation5], 16   ;;  %p5942_p13 = pmov %p5941_p3 }
  0x4e   : > { %3436 = vsyncadd (%p5942_p13), [#allocation5], 4294967280 }
  0x4f   : > { %285 = sfence }
  0x50   : > { %v3651_v0 = vld [vmem:[%s3640_s20 + $0x40] sm:$0xff]  ;;  %v3654_v1 = vld [vmem:[%s3640_s20 + $0x48] sm:$0xff]  ;;  %v3665_v5 = vld [vmem:[%s3640_s20 + $0x50] sm:$0xff]  ;;  %vm5922_vm1 = vmmov 0   ;;  %vm1224_vm2 = vcmask 130112   ;;  %vm1231_vm3 = vcmask 195712  }
  0x51   : > { %5943 = vst [vmem:[#allocation11_spill] sm:$0xff] %v3654_v1  ;;  %v3657_v2 = vld [vmem:[%s3640_s20] sm:$0xff]  ;;  %v390_v3 = vadd.f32 %v3654_v1, %v3651_v0  ;;  %v3662_v4 = vld [vmem:[%s3640_s20 + $0x8] sm:$0xff]  ;;  %v3668_v6 = vld [vmem:[%s3640_s20 + $0x58] sm:$0xff]  ;;  %vm5928_vm4 = vcmask 261312   ;;  %vm5927_vm5 = vcmask 1041409  }
  0x52   : > { %v378_v7 = vadd.f32 %v3662_v4, %v3657_v2  ;;  %v3673_v8 = vld [vmem:[%s3640_s20 + $0x10] sm:$0xff]  ;;  %v3676_v9 = vld [vmem:[%s3640_s20 + $0x18] sm:$0xff]  ;;  %v393_v10 = vadd.f32 %v3668_v6, %v3665_v5  ;;  %v3683_v12 = vld [vmem:[%s3640_s20 + $0x60] sm:$0xff]  ;;  %v474_v59 = vmul.f32 %v3657_v2, %v3657_v2  ;;  %v475_v60 = vmul.f32 %v3662_v4, %v3662_v4  ;;  %s1974_s11 = sld [smem:[#allocation6]]  ;;  %s3013_s23 = sld [smem:[#allocation6 + $0x1]] }
  0x53   : > { %391 = vadd.xlane.f32.xlu1 %v390_v3  ;;  %v381_v11 = vadd.f32 %v3676_v9, %v3673_v8  ;;  %5944 = vst [vmem:[#allocation12_spill] sm:$0xff] %v3683_v12  ;;  %v3686_v13 = vld [vmem:[%s3640_s20 + $0x68] sm:$0xff]  ;;  %v3689_v14 = vld [vmem:[%s3640_s20 + $0x20] sm:$0xff]  ;;  %v3699_v18 = vld [vmem:[%s3640_s20 + $0x90] sm:$0xff]  ;;  %vm5919_vm6 = vcmask 1042434   ;;  %vm5916_vm7 = vcmask 1043459  }
  0x54   : > { %379 = vadd.xlane.f32.xlu0 %v378_v7  ;;  %5945 = vst [vmem:[#allocation13_spill] sm:$0xff] %v3686_v13  ;;  %5946 = vst [vmem:[#allocation14_spill] sm:$0xff] %v3689_v14  ;;  %v3692_v15 = vld [vmem:[%s3640_s20 + $0x28] sm:$0xff]  ;;  %v396_v16 = vadd.f32 %v3686_v13, %v3683_v12  ;;  %v3702_v19 = vld [vmem:[%s3640_s20 + $0x98] sm:$0xff]  ;;  %v538_v3 = vadd.f32 %v475_v60, %v474_v59  ;;  %v482_v7 = vmul.f32 %v3651_v0, %v3651_v0  ;;  %vm5912_vm8 = vcmask 1044484   ;;  %s3014_s16 = sld [smem:[#allocation6 + $0x2]] }
  0x55   : > { %5947 = vst [vmem:[#allocation15_spill] sm:$0xff] %v3692_v15  ;;  %v384_v17 = vadd.f32 %v3692_v15, %v3689_v14  ;;  %5948 = vst [vmem:[#allocation16_spill] sm:$0xff] %v3699_v18  ;;  %v3705_v20 = vld [vmem:[%s3640_s20 + $0x80] sm:$0xff]  ;;  %v3708_v21 = vld [vmem:[%s3640_s20 + $0x88] sm:$0xff]  ;;  %v405_v22 = vadd.f32 %v3702_v19, %v3699_v18  ;;  %v478_v59 = vmul.f32 %v3689_v14, %v3689_v14  ;;  %s5630_s18 = scalar_lea.vmem [#allocation7], %s3002_s8  ;;  %s3029_s8 = sshll.u32 %s3528_s28, 13 }
  0x56   : > { %5949 = vst [vmem:[#allocation17_spill] sm:$0xff] %v3702_v19  ;;  %5950 = vst [vmem:[#allocation18_spill] sm:$0xff] %v3705_v20  ;;  %v402_v23 = vadd.f32 %v3708_v21, %v3705_v20  ;;  %v3715_v24 = vld [vmem:[%s3640_s20 + $0x70] sm:$0xff]  ;;  %v3718_v25 = vld [vmem:[%s3640_s20 + $0x78] sm:$0xff]  ;;  %v479_v60 = vmul.f32 %v3692_v15, %v3692_v15  ;;  %s5815_s9 = scalar_lea.hbm %s5870_s7, %s3029_s8  ;;  %s2894_s28 = scalar_lea.sflag [#allocation4], %s3634_s29 }
  0x57   : > { %394 = vadd.xlane.f32.xlu1 %v393_v10  ;;  %5951 = vst [vmem:[#allocation19_spill] sm:$0xff] %v3708_v21  ;;  %5952 = vst [vmem:[#allocation20_spill] sm:$0xff] %v3715_v24  ;;  %v3721_v26 = vld [vmem:[%s3640_s20 + $0x30] sm:$0xff]  ;;  %v3724_v27 = vld [vmem:[%s3640_s20 + $0x38] sm:$0xff]  ;;  %v399_v28 = vadd.f32 %v3718_v25, %v3715_v24  ;;  %v483_v10 = vmul.f32 %v3654_v1, %v3654_v1  ;;  %p6090_p12 = scmp.ne.s32.totalorder %s5934_s13, 0  ;;  %s3464_s12 = smov [#allocation7]  }
  0x58   : > { %382 = vadd.xlane.f32.xlu0 %v381_v11  ;;  %5953 = vst [vmem:[#allocation21_spill] sm:$0xff] %v3718_v25  ;;  %5954 = vst [vmem:[#allocation22_spill] sm:$0xff] %v3721_v26  ;;  %v387_v29 = vadd.f32 %v3724_v27, %v3721_v26  ;;  %v3731_v30 = vld [vmem:[%s3640_s20 + $0xc0] sm:$0xff]  ;;  %v3734_v31 = vld [vmem:[%s3640_s20 + $0xc8] sm:$0xff]  ;;  %s1976_s17 = sadd.f32 %s3013_s23, %s1974_s11  ;;  %s3389_s15 = sshll.u32 %s3464_s12, 4  ;;  %s3390_s15 = int_to_ptr.vmem [resolvable:$false] %s3389_s15 }
  0x59   : > { %5955 = vst [vmem:[#allocation23_spill] sm:$0xff] %v3724_v27  ;;  %v3737_v32 = vld [vmem:[%s3640_s20 + $0xa0] sm:$0xff]  ;;  %v3740_v33 = vld [vmem:[%s3640_s20 + $0xa8] sm:$0xff]  ;;  %v414_v34 = vadd.f32 %v3734_v31, %v3731_v30  ;;  %v3747_v36 = vld [vmem:[%s3640_s20 + $0xb0] sm:$0xff]  ;;  %s3391_s21 = scalar_lea.vmem %s3390_s15, 16384 }
  0x5a   : > { %5956 = vst [vmem:[#allocation24_spill] sm:$0xff] %v3737_v32  ;;  %5957 = vst [vmem:[#allocation25_spill] sm:$0xff] %v3740_v33  ;;  %v408_v35 = vadd.f32 %v3740_v33, %v3737_v32  ;;  %v3750_v37 = vld [vmem:[%s3640_s20 + $0xb8] sm:$0xff]  ;;  %v3753_v38 = vld [vmem:[%s3640_s20 + $0xd0] sm:$0xff] }
  0x5b   : > { %397 = vadd.xlane.f32.xlu1 %v396_v16  ;;  %5958 = vst [vmem:[#allocation26_spill] sm:$0xff] %v3753_v38  ;;  %v3756_v39 = vld [vmem:[%s3640_s20 + $0xd8] sm:$0xff]  ;;  %v411_v40 = vadd.f32 %v3750_v37, %v3747_v36  ;;  %v3763_v42 = vld [vmem:[%s3640_s20 + $0x100] sm:$0xff]  ;;  %v3766_v43 = vld [vmem:[%s3640_s20 + $0x108] sm:$0xff]  ;;  %v476_v16 = vmul.f32 %v3673_v8, %v3673_v8 }
  0x5c   : > { %385 = vadd.xlane.f32.xlu0 %v384_v17  ;;  %v417_v41 = vadd.f32 %v3756_v39, %v3753_v38  ;;  %v3769_v44 = vld [vmem:[%s3640_s20 + $0xe0] sm:$0xff]  ;;  %v3772_v45 = vld [vmem:[%s3640_s20 + $0xe8] sm:$0xff]  ;;  %v426_v46 = vadd.f32 %v3766_v43, %v3763_v42  ;;  %v3779_v48 = vld [vmem:[%s3640_s20 + $0xf0] sm:$0xff]  ;;  %v477_v17 = vmul.f32 %v3676_v9, %v3676_v9 }
  0x5d   : > { %5959 = vst [vmem:[#allocation27_spill] sm:$0xff] %v3769_v44  ;;  %5960 = vst [vmem:[#allocation28_spill] sm:$0xff] %v3772_v45  ;;  %v420_v47 = vadd.f32 %v3772_v45, %v3769_v44  ;;  %v3782_v49 = vld [vmem:[%s3640_s20 + $0xf8] sm:$0xff]  ;;  %v3785_v50 = vld [vmem:[%s3640_s20 + $0x110] sm:$0xff] }
  0x5e   : > { %5961 = vst [vmem:[#allocation29_spill] sm:$0xff] %v3785_v50  ;;  %v3788_v51 = vld [vmem:[%s3640_s20 + $0x118] sm:$0xff]  ;;  %v423_v52 = vadd.f32 %v3782_v49, %v3779_v48  ;;  %v3795_v54 = vld [vmem:[%s3640_s20 + $0x140] sm:$0xff]  ;;  %v3798_v55 = vld [vmem:[%s3640_s20 + $0x148] sm:$0xff] }
  0x5f   : > { %406 = vadd.xlane.f32.xlu1 %v405_v22  ;;  %v429_v53 = vadd.f32 %v3788_v51, %v3785_v50  ;;  %v3801_v56 = vld [vmem:[%s3640_s20 + $0x120] sm:$0xff]  ;;  %v3804_v57 = vld [vmem:[%s3640_s20 + $0x128] sm:$0xff]  ;;  %v438_v58 = vadd.f32 %v3798_v55, %v3795_v54  ;;  %v3815_v62 = vld [vmem:[%s3640_s20 + $0x150] sm:$0xff]  ;;  %v550_v22 = vadd.f32 %v483_v10, %v482_v7  ;;  %v544_v10 = vadd.f32 %v479_v60, %v478_v59 }
  0x60   : > { %403 = vadd.xlane.f32.xlu0 %v402_v23  ;;  %5962 = vst [vmem:[#allocation30_spill] sm:$0xff] %v3801_v56  ;;  %v432_v61 = vadd.f32 %v3804_v57, %v3801_v56  ;;  %v3818_v63 = vld [vmem:[%s3640_s20 + $0x158] sm:$0xff]  ;;  %v541_v23 = vadd.f32 %v477_v17, %v476_v16  ;;  %v491_v16 = vmul.f32 %v3708_v21, %v3708_v21 }
  0x61   : > { %v441_v11 = vadd.f32 %v3818_v63, %v3815_v62  ;;  %v3866_v7 = vld [vmem:[%s3640_s20 + $0x198] sm:$0xff]  ;;  %v493_v59 = vmul.f32 %v3702_v19, %v3702_v19 }
  0x63   : > { %400 = vadd.xlane.f32.xlu1 %v399_v28  ;;  %v3831_v28 = vld [vmem:[%s3640_s20 + $0x130] sm:$0xff] }
  0x64   : > { %388 = vadd.xlane.f32.xlu0 %v387_v29  ;;  %v3834_v29 = vld [vmem:[%s3640_s20 + $0x138] sm:$0xff] }
  0x67   : > { %415 = vadd.xlane.f32.xlu1 %v414_v34  ;;  %v484_v34 = vmul.f32 %v3665_v5, %v3665_v5 }
  0x68   : > { %409 = vadd.xlane.f32.xlu0 %v408_v35  ;;  %v485_v35 = vmul.f32 %v3668_v6, %v3668_v6 }
  0x6b   : > { %412 = vadd.xlane.f32.xlu1 %v411_v40  ;;  %v435_v40 = vadd.f32 %v3834_v29, %v3831_v28 }
  0x6c   : > { %418 = vadd.xlane.f32.xlu0 %v417_v41  ;;  %v553_v41 = vadd.f32 %v485_v35, %v484_v34 }
  0x6f   : > { %427 = vadd.xlane.f32.xlu1 %v426_v46  ;;  %v3843_v46 = vld [vmem:[%s3640_s20 + $0x180] sm:$0xff] }
  0x70   : > { %421 = vadd.xlane.f32.xlu0 %v420_v47  ;;  %v3846_v47 = vld [vmem:[%s3640_s20 + $0x188] sm:$0xff] }
  0x73   : > { %424 = vadd.xlane.f32.xlu1 %v423_v52  ;;  %v3849_v52 = vld [vmem:[%s3640_s20 + $0x160] sm:$0xff] }
  0x74   : > { %430 = vadd.xlane.f32.xlu0 %v429_v53  ;;  %5963 = vst [vmem:[#allocation31_spill] sm:$0xff] %v3849_v52  ;;  %v3852_v53 = vld [vmem:[%s3640_s20 + $0x168] sm:$0xff] }
  0x77   : > { %439 = vadd.xlane.f32.xlu1 %v438_v58  ;;  %v450_v58 = vadd.f32 %v3846_v47, %v3843_v46 }
  0x78   : > { %433 = vadd.xlane.f32.xlu0 %v432_v61  ;;  %v444_v61 = vadd.f32 %v3852_v53, %v3849_v52 }
  0x7b   : > { %539 = vadd.xlane.f32.xlu1 %v538_v3  ;;  %v3863_v3 = vld [vmem:[%s3640_s20 + $0x190] sm:$0xff] }
  0x7c   : > { %442 = vadd.xlane.f32.xlu0 %v441_v11  ;;  %v490_v11 = vmul.f32 %v3705_v20, %v3705_v20  ;;  %v453_v17 = vadd.f32 %v3866_v7, %v3863_v3 }
  0x7e   : > { %v562_v34 = vadd.f32 %v491_v16, %v490_v11  ;;  %v3894_v11 = vld [vmem:[%s3640_s20 + $0x1c8] sm:$0xff]  ;;  %v3897_v16 = vld [vmem:[%s3640_s20 + $0x1a0] sm:$0xff] }
  0x7f   : > { %551 = vadd.xlane.f32.xlu1 %v550_v22  ;;  %v486_v22 = vmul.f32 %v3683_v12, %v3683_v12 }
  0x80   : > { %542 = vadd.xlane.f32.xlu0 %v541_v23  ;;  %v487_v23 = vmul.f32 %v3686_v13, %v3686_v13 }
  0x82   : > { %v556_v35 = vadd.f32 %v487_v23, %v486_v22  ;;  %v480_v23 = vmul.f32 %v3721_v26, %v3721_v26  ;;  %v488_v26 = vmul.f32 %v3715_v24, %v3715_v24  ;;  %v499_v24 = vmul.f32 %v3734_v31, %v3734_v31 }
  0x83   : > { %436 = vadd.xlane.f32.xlu1 %v435_v40  ;;  %v3879_v40 = vld [vmem:[%s3640_s20 + $0x170] sm:$0xff] }
  0x84   : > { %554 = vadd.xlane.f32.xlu0 %v553_v41  ;;  %v3882_v41 = vld [vmem:[%s3640_s20 + $0x178] sm:$0xff] }
  0x85   : > { %v447_v60 = vadd.f32 %v3882_v41, %v3879_v40 }
  0x87   : > { %451 = vadd.xlane.f32.xlu1 %v450_v58  ;;  %v492_v58 = vmul.f32 %v3699_v18, %v3699_v18  ;;  %v495_v18 = vmul.f32 %v3740_v33, %v3740_v33  ;;  %v498_v33 = vmul.f32 %v3731_v30, %v3731_v30 }
  0x88   : > { %445 = vadd.xlane.f32.xlu0 %v444_v61 }
  0x89   : > { %v565_v61 = vadd.f32 %v493_v59, %v492_v58  ;;  %v3911_v58 = vld [vmem:[%s3640_s20 + $0x1d0] sm:$0xff]  ;;  %v3914_v59 = vld [vmem:[%s3640_s20 + $0x1d8] sm:$0xff] }
  0x8a   : > { %5964 = vst [vmem:[#allocation32_spill] sm:$0xff] %v3911_v58 }
  0x8b   : > { %545 = vadd.xlane.f32.xlu1 %v544_v10  ;;  %v3891_v10 = vld [vmem:[%s3640_s20 + $0x1c0] sm:$0xff] }
  0x8c   : > { %454 = vadd.xlane.f32.xlu0 %v453_v17  ;;  %v3900_v17 = vld [vmem:[%s3640_s20 + $0x1a8] sm:$0xff]  ;;  %v462_v22 = vadd.f32 %v3894_v11, %v3891_v10 }
  0x8f   : > { %563 = vadd.xlane.f32.xlu1 %v562_v34  ;;  %v481_v34 = vmul.f32 %v3724_v27, %v3724_v27 }
  0x90   : > { %557 = vadd.xlane.f32.xlu0 %v556_v35  ;;  %v456_v35 = vadd.f32 %v3900_v17, %v3897_v16 }
  0x91   : > { %v547_v20 = vadd.f32 %v481_v34, %v480_v23  ;;  %v500_v34 = vmul.f32 %v3753_v38, %v3753_v38  ;;  %v3944_v38 = vld [vmem:[%s3640_s20 + $0x1b8] sm:$0xff] }
  0x92   : > { %5966 = vst [vmem:[#allocation34_spill] sm:$0xff] %v3944_v38 }
  0x93   : > { %448 = vadd.xlane.f32.xlu1 %v447_v60  ;;  %v494_v60 = vmul.f32 %v3737_v32, %v3737_v32 }
  0x94   : > { %566 = vadd.xlane.f32.xlu0 %v565_v61  ;;  %v465_v61 = vadd.f32 %v3914_v59, %v3911_v58 }
  0x95   : > { %v568_v23 = vadd.f32 %v495_v18, %v494_v60  ;;  %v3938_v18 = vld [vmem:[%s3640_s20 + $0x1e8] sm:$0xff]  ;;  %v3941_v60 = vld [vmem:[%s3640_s20 + $0x1b0] sm:$0xff] }
  0x96   : > { %5965 = vst [vmem:[#allocation33_spill] sm:$0xff] %v3941_v60 }
  0x97   : > { %463 = vadd.xlane.f32.xlu1 %v462_v22  ;;  %v489_v22 = vmul.f32 %v3718_v25, %v3718_v25  ;;  %v574_v25 = vadd.f32 %v499_v24, %v498_v33  ;;  %v459_v24 = vadd.f32 %v3944_v38, %v3941_v60 }
  0x98   : > { %457 = vadd.xlane.f32.xlu0 %v456_v35  ;;  %v501_v35 = vmul.f32 %v3756_v39, %v3756_v39 }
  0x99   : > { %v559_v32 = vadd.f32 %v489_v22, %v488_v26  ;;  %v503_v22 = vmul.f32 %v3772_v45, %v3772_v45 }
  0x9a   : > { %v577_v27 = vadd.f32 %v501_v35, %v500_v34  ;;  %v509_v34 = vmul.f32 %v3788_v51, %v3788_v51  ;;  %v506_v35 = vmul.f32 %v3763_v42, %v3763_v42 }
  0x9b   : > { %548 = vadd.xlane.f32.xlu1 %v547_v20  ;;  %v3935_v20 = vld [vmem:[%s3640_s20 + $0x1e0] sm:$0xff] }
  0x9c   : > { %466 = vadd.xlane.f32.xlu0 %v465_v61  ;;  %v468_v26 = vadd.f32 %v3938_v18, %v3935_v20  ;;  %v502_v61 = vmul.f32 %v3769_v44, %v3769_v44  ;;  %v507_v44 = vmul.f32 %v3766_v43, %v3766_v43 }
  0x9e   : > { %v580_v33 = vadd.f32 %v503_v22, %v502_v61  ;;  %v505_v61 = vmul.f32 %v3782_v49, %v3782_v49  ;;  %v586_v22 = vadd.f32 %v507_v44, %v506_v35  ;;  %v511_v44 = vmul.f32 %v3804_v57, %v3804_v57 }
  0x9f   : > { %569 = vadd.xlane.f32.xlu1 %v568_v23  ;;  %v508_v23 = vmul.f32 %v3785_v50, %v3785_v50  ;;  %v3971_v50 = vld [vmem:[%s3640_s20 + $0x1f0] sm:$0xff]  ;;  %v513_v35 = vmul.f32 %v3834_v29, %v3834_v29 }
  0xa0   : > { %560 = vadd.xlane.f32.xlu0 %v559_v32  ;;  %v496_v32 = vmul.f32 %v3747_v36, %v3747_v36 }
  0xa1   : > { %v589_v45 = vadd.f32 %v509_v34, %v508_v23  ;;  %v510_v34 = vmul.f32 %v3801_v56, %v3801_v56 }
  0xa3   : > { %578 = vadd.xlane.f32.xlu1 %v577_v27  ;;  %v497_v27 = vmul.f32 %v3750_v37, %v3750_v37 }
  0xa4   : > { %575 = vadd.xlane.f32.xlu0 %v574_v25 }
  0xa5   : > { %v571_v25 = vadd.f32 %v497_v27, %v496_v32  ;;  %v514_v27 = vmul.f32 %v3795_v54, %v3795_v54 }
  0xa7   : > { %469 = vadd.xlane.f32.xlu1 %v468_v26  ;;  %v504_v26 = vmul.f32 %v3779_v48, %v3779_v48 }
  0xa8   : > { %460 = vadd.xlane.f32.xlu0 %v459_v24  ;;  %v3974_v24 = vld [vmem:[%s3640_s20 + $0x1f8] sm:$0xff] }
  0xa9   : > { %v583_v32 = vadd.f32 %v505_v61, %v504_v26  ;;  %v471_v23 = vadd.f32 %v3974_v24, %v3971_v50  ;;  %v592_v26 = vadd.f32 %v511_v44, %v510_v34  ;;  %v516_v61 = vmul.f32 %v3815_v62, %v3815_v62 }
  0xaa   : > { %v519_v34 = vmul.f32 %v3852_v53, %v3852_v53 }
  0xab   : > { %581 = vadd.xlane.f32.xlu1 %v580_v33  ;;  %v515_v33 = vmul.f32 %v3798_v55, %v3798_v55 }
  0xac   : > { %572 = vadd.xlane.f32.xlu0 %v571_v25 }
  0xad   : > { %v598_v25 = vadd.f32 %v515_v33, %v514_v27  ;;  %v523_v27 = vmul.f32 %v3846_v47, %v3846_v47 }
  0xaf   : > { %590 = vadd.xlane.f32.xlu1 %v589_v45  ;;  %v512_v45 = vmul.f32 %v3831_v28, %v3831_v28 }
  0xb0   : > { %587 = vadd.xlane.f32.xlu0 %v586_v22  ;;  %v517_v22 = vmul.f32 %v3818_v63, %v3818_v63 }
  0xb1   : > { %v595_v56 = vadd.f32 %v513_v35, %v512_v45  ;;  %v521_v45 = vmul.f32 %v3882_v41, %v3882_v41 }
  0xb2   : > { %v601_v33 = vadd.f32 %v517_v22, %v516_v61  ;;  %v525_v61 = vmul.f32 %v3866_v7, %v3866_v7  ;;  %v5894_v22 = vlaneseq }
  0xb3   : > { %584 = vadd.xlane.f32.xlu1 %v583_v32  ;;  %v522_v32 = vmul.f32 %v3843_v46, %v3843_v46 }
  0xb4   : > { %472 = vadd.xlane.f32.xlu0 %v471_v23  ;;  %v518_v23 = vmul.f32 %v3849_v52, %v3849_v52 }
  0xb5   : > { %v610_v44 = vadd.f32 %v523_v27, %v522_v32  ;;  %v531_v32 = vmul.f32 %v3894_v11, %v3894_v11 }
  0xb6   : > { %v604_v35 = vadd.f32 %v519_v34, %v518_v23  ;;  %v527_v23 = vmul.f32 %v3900_v17, %v3900_v17  ;;  %v4019_v34 = vand.u32 127, %v5894_v22 }
  0xb7   : > { %599 = vadd.xlane.f32.xlu1 %v598_v25  ;;  %v520_v25 = vmul.f32 %v3879_v40, %v3879_v40 }
  0xb8   : > { %593 = vadd.xlane.f32.xlu0 %v592_v26  ;;  %v524_v26 = vmul.f32 %v3863_v3, %v3863_v3  ;;  %v4036_v22 = vadd.s32 128, %v4019_v34 }
  0xb9   : > { %v607_v52 = vadd.f32 %v521_v45, %v520_v25  ;;  %v528_v25 = vmul.f32 %v3941_v60, %v3941_v60  ;;  %v529_v45 = vmul.f32 %v3944_v38, %v3944_v38  ;;  %v5898_v60 = vmov 0.0|0.0  }
  0xba   : > { %v613_v27 = vadd.f32 %v525_v61, %v524_v26  ;;  %v1769_v26 = vld [vmem:[%s5865_s2] sm:$0xff]  ;;  %v1770_v61 = vld [vmem:[%s5865_s2 + $0x8] sm:$0xff]  ;;  %3092 = vmatprep.subr.bf16.mxu0 %v5898_v60  ;;  %v536_v38 = vmul.f32 %v3971_v50, %v3971_v50  ;;  %vm1022_vm0 = vcmp.lt.s32.totalorder %v4036_v22, 196 }
  0xbb   : > { %596 = vadd.xlane.f32.xlu1 %v595_v56  ;;  %v530_v56 = vmul.f32 %v3891_v10, %v3891_v10 }
  0xbc   : > { %602 = vadd.xlane.f32.xlu0 %v601_v33  ;;  %v526_v33 = vmul.f32 %v3897_v16, %v3897_v16 }
  0xbf   : > { %611 = vadd.xlane.f32.xlu1 %v610_v44  ;;  %v622_v44 = vadd.f32 %v531_v32, %v530_v56  ;;  %v533_v56 = vmul.f32 %v3914_v59, %v3914_v59  ;;  %v3093_v32 = vpack.c.bf16 %v1770_v61, %v1769_v26 }
  0xc0   : > { %605 = vadd.xlane.f32.xlu0 %v604_v35  ;;  %v532_v35 = vmul.f32 %v3911_v58, %v3911_v58  ;;  %v619_v58 = vadd.f32 %v529_v45, %v528_v25  ;;  %v535_v25 = vmul.f32 %v3938_v18, %v3938_v18 }
  0xc1   : > { %3094 = vmatpush3.bf16.msra.mxu0 %v3093_v32 }
  0xc2   : > { %3095 = vmatprep.subr.bf16.mxu0 %v5898_v60  ;;  %v625_v26 = vadd.f32 %v533_v56, %v532_v35  ;;  %v1026_v60 = vsel %vm1022_vm0, %v3676_v9, -inf  ;;  %v5900_v35 = vmov 0.0   ;;  %v1034_v56 = vsel %vm1022_vm0, %v3668_v6, -inf }
  0xc3   : > { %608 = vadd.xlane.f32.xlu1 %v607_v52  ;;  %v616_v52 = vadd.f32 %v527_v23, %v526_v33  ;;  %v1771_v33 = vld [vmem:[%s5865_s2 + $0x10] sm:$0xff]  ;;  %v1772_v23 = vld [vmem:[%s5865_s2 + $0x18] sm:$0xff]  ;;  %3056 = vmatprep.mubr.msk.f32.mxu0 %vm5922_vm1, %v5900_v35 }
  0xc4   : > { %614 = vadd.xlane.f32.xlu0 %v613_v27  ;;  %v537_v27 = vmul.f32 %v3974_v24, %v3974_v24  ;;  %v3096_v45 = vpack.c.bf16 %v1772_v23, %v1771_v33  ;;  %3065 = vmatprep.subr.mxu1 %v5900_v35  ;;  %v1102_v33 = vmax.f32 %v3665_v5, %v1034_v56  ;;  %v5969_v56 = vld [vmem:[#allocation21_spill] sm:$0xff] }
  0xc5   : > { %3067 = vmatprep.mubr.msk.f32.mxu1 %vm5922_vm1, %v5900_v35  ;;  %v1219_v35 = vadd.s32 4294967288, %v4019_v34 }
  0xc6   : > { %3097 = vmatpush3.bf16.msra.mxu0 %v3096_v45  ;;  %v631_v61 = vadd.f32 %v537_v27, %v536_v38  ;;  %v1090_v38 = vmax.f32 %v3673_v8, %v1026_v60  ;;  %v1032_v27 = vsel %vm1022_vm0, %v3654_v1, -inf  ;;  %v1036_v60 = vsel %vm1022_vm0, %v3686_v13, -inf }
  0xc7   : > { %623 = vadd.xlane.f32.xlu1 %v622_v44  ;;  %v534_v44 = vmul.f32 %v3935_v20, %v3935_v20  ;;  %v1099_v23 = vmax.f32 %v3651_v0, %v1032_v27  ;;  %v1042_v45 = vsel %vm1022_vm0, %v3702_v19, -inf  ;;  %v1038_v27 = vsel %vm1022_vm0, %v5969_v56, -inf }
  0xc8   : > { %617 = vadd.xlane.f32.xlu0 %v616_v52  ;;  %v1024_v52 = vsel %vm1022_vm0, %v3662_v4, -inf  ;;  %v1048_v56 = vsel %vm1022_vm0, %v3734_v31, -inf }
  0xc9   : > { %v628_v32 = vadd.f32 %v535_v25, %v534_v44  ;;  %v1105_v44 = vmax.f32 %v3683_v12, %v1036_v60  ;;  %v5971_v60 = vlaneseq  ;;  %v1123_v31 = vmax.f32 %v3731_v30, %v1048_v56 }
  0xcb   : > { %620 = vadd.xlane.f32.xlu1 %v619_v58  ;;  %v1087_v58 = vmax.f32 %v3657_v2, %v1024_v52 }
  0xcc   : > { %626 = vadd.xlane.f32.xlu0 %v625_v26  ;;  %v1028_v26 = vsel %vm1022_vm0, %v3692_v15, -inf  ;;  %v5976_v15 = vld [vmem:[#allocation24_spill] sm:$0xff] }
  0xcd   : > { %v1093_v25 = vmax.f32 %v3689_v14, %v1028_v26  ;;  %v4099_v26 = vshrl.u32 %v5971_v60, 7 }
  0xcf   : > { %632 = vadd.xlane.f32.xlu1 %v631_v61  ;;  %v1040_v61 = vsel %vm1022_vm0, %v3708_v21, -inf  ;;  %5972 = vst [vmem:[#allocation35_spill] sm:$0xff] %v4099_v26 }
  0xd0   : > { %629 = vadd.xlane.f32.xlu0 %v628_v32  ;;  %v5967_v32 = vld [vmem:[#allocation16_spill] sm:$0xff] }
  0xd1   : > { %v1114_v52 = vmax.f32 %v5967_v32, %v1042_v45  ;;  %v5974_v45 = vld [vmem:[#allocation22_spill] sm:$0xff]  ;;  %v5975_v32 = vld [vmem:[#allocation25_spill] sm:$0xff] }
  0xd2   : > { %v1044_v60 = vsel %vm1022_vm0, %v5975_v32, -inf }
  0xd3   : > { %1091 = vmax.xlane.f32.xlu1 %v1090_v38  ;;  %v5968_v38 = vld [vmem:[#allocation18_spill] sm:$0xff]  ;;  %v1117_v14 = vmax.f32 %v5976_v15, %v1044_v60 }
  0xd4   : > { %1088 = vmax.xlane.f32.xlu0 %v1087_v58  ;;  %v1111_v58 = vmax.f32 %v5968_v38, %v1040_v61  ;;  %v5978_v15 = vld [vmem:[#allocation26_spill] sm:$0xff] }
  0xd7   : > { %1103 = vmax.xlane.f32.xlu1 %v1102_v33  ;;  %v5970_v33 = vld [vmem:[#allocation23_spill] sm:$0xff] }
  0xd8   : > { %1100 = vmax.xlane.f32.xlu0 %v1099_v23  ;;  %v1030_v23 = vsel %vm1022_vm0, %v5970_v33, -inf  ;;  %v4112_v33 = vsub.s32 %v4019_v34, %v4099_v26 }
  0xd9   : > { %v1096_v61 = vmax.f32 %v5974_v45, %v1030_v23 }
  0xdb   : > { %1106 = vmax.xlane.f32.xlu1 %v1105_v44  ;;  %v5973_v44 = vld [vmem:[#allocation20_spill] sm:$0xff] }
  0xdc   : > { %1094 = vmax.xlane.f32.xlu0 %v1093_v25  ;;  %v1108_v21 = vmax.f32 %v5973_v44, %v1038_v27  ;;  %v4116_v27 = vsub.s32 %v1219_v35, %v4099_v26  ;;  %v1046_v44 = vsel %vm1022_vm0, %v3750_v37, -inf  ;;  %v1050_v35 = vsel %vm1022_vm0, %v3756_v39, -inf }
  0xdd   : > { %v1120_v56 = vmax.f32 %v3747_v36, %v1046_v44  ;;  %v1126_v60 = vmax.f32 %v5978_v15, %v1050_v35  ;;  %v1056_v36 = vsel %vm1022_vm0, %v3766_v43, -inf }
  0xde   : > { %v1135_v43 = vmax.f32 %v3763_v42, %v1056_v36  ;;  %v1058_v42 = vsel %vm1022_vm0, %v3788_v51, -inf  ;;  %v5981_v51 = vld [vmem:[#allocation29_spill] sm:$0xff] }
  0xdf   : > { %1115 = vmax.xlane.f32.xlu1 %v1114_v52  ;;  %v1226_v52 = vadd.s32 4294967280, %v4019_v34 }
  0xe0   : > { %1112 = vmax.xlane.f32.xlu0 %v1111_v58  ;;  %v392_v25 = vpop.xlane.xlu1 %391 }
  0xe1   : > { %v638_v38 = vmul.f32 0.0051020407, %v392_v25  ;;  %v380_v19 = vpop.xlane.xlu0 %379 }
  0xe2   : > { %v634_v58 = vmul.f32 0.0051020407, %v380_v19 }
  0xe3   : > { %v4118_v23 = vmul.f32 %v638_v38, %v392_v25  ;;  %1109 = vmax.xlane.f32.xlu1 %v1108_v21  ;;  %v4131_v21 = vsub.s32 %v1226_v52, %v4099_v26 }
  0xe4   : > { %v4124_v32 = vmul.f32 %v634_v58, %v380_v19  ;;  %1097 = vmax.xlane.f32.xlu0 %v1096_v61  ;;  %v395_v45 = vpop.xlane.xlu1 %394  ;;  %v1243_v19 = vrot.slane %v638_v38, %v4112_v33  ;;  %v1218_v39 = vrot.slane %v634_v58, %v4112_v33 }
  0xe5   : > { %v639_v13 = vmul.f32 0.0051020407, %v395_v45  ;;  %v383_v25 = vpop.xlane.xlu0 %382 }
  0xe6   : > { %v635_v30 = vmul.f32 0.0051020407, %v383_v25 }
  0xe7   : > { %v4135_v37 = vmul.f32 %v639_v13, %v395_v45  ;;  %v1247_v61 = vrot.slane %v639_v13, %v4116_v27  ;;  %1124 = vmax.xlane.f32.xlu1 %v1123_v31  ;;  %v5979_v13 = vld [vmem:[#allocation28_spill] sm:$0xff] }
  0xe8   : > { %v4140_v12 = vmul.f32 %v635_v30, %v383_v25  ;;  %v1223_v52 = vrot.slane %v635_v30, %v4116_v27  ;;  %1118 = vmax.xlane.f32.xlu0 %v1117_v14  ;;  %v398_v1 = vpop.xlane.xlu1 %397  ;;  %v1052_v31 = vsel %vm1022_vm0, %v5979_v13, -inf  ;;  %v1233_v25 = vadd.s32 4294967272, %v4019_v34  ;;  %v5980_v13 = vld [vmem:[#allocation27_spill] sm:$0xff] }
  0xe9   : > { %5977 = vst [vmem:[#allocation25_spill] sm:$0xff] %v4135_v37  ;;  %v1248_v38 = vsel %vm1224_vm2, %v1247_v61, %v1243_v19  ;;  %v640_v44 = vmul.f32 0.0051020407, %v398_v1  ;;  %v386_v45 = vpop.xlane.xlu0 %385  ;;  %v1129_v37 = vmax.f32 %v5980_v13, %v1052_v31 }
  0xea   : > { %v1225_v58 = vsel %vm1224_vm2, %v1223_v52, %v1218_v39  ;;  %v636_v35 = vmul.f32 0.0051020407, %v386_v45  ;;  %v1054_v39 = vsel %vm1022_vm0, %v3782_v49, -inf }
  0xeb   : > { %v4152_v14 = vmul.f32 %v640_v44, %v398_v1  ;;  %v1252_v30 = vrot.slane %v640_v44, %v4131_v21  ;;  %1121 = vmax.xlane.f32.xlu1 %v1120_v56  ;;  %v1132_v49 = vmax.f32 %v3779_v48, %v1054_v39 }
  0xec   : > { %v4156_v19 = vmul.f32 %v636_v35, %v386_v45  ;;  %v1230_v61 = vrot.slane %v636_v35, %v4131_v21  ;;  %1127 = vmax.xlane.f32.xlu0 %v1126_v60  ;;  %v407_v15 = vpop.xlane.xlu1 %406  ;;  %v4169_v60 = vsub.s32 %v1233_v25, %v4099_v26 }
  0xed   : > { %v1253_v1 = vsel %vm1231_vm3, %v1252_v30, %v1248_v38  ;;  %v643_v34 = vmul.f32 0.0051020407, %v407_v15  ;;  %v404_v52 = vpop.xlane.xlu0 %403  ;;  %v1138_v30 = vmax.f32 %v5981_v51, %v1058_v42 }
  0xee   : > { %v1232_v56 = vsel %vm1231_vm3, %v1230_v61, %v1225_v58  ;;  %v642_v36 = vmul.f32 0.0051020407, %v404_v52  ;;  %v1064_v58 = vsel %vm1022_vm0, %v3798_v55, -inf }
  0xef   : > { %v4171_v44 = vmul.f32 %v643_v34, %v407_v15  ;;  %v1266_v45 = vrot.slane %v643_v34, %v4116_v27  ;;  %1136 = vmax.xlane.f32.xlu1 %v1135_v43  ;;  %v1060_v43 = vsel %vm1022_vm0, %v3804_v57, -inf  ;;  %v1147_v39 = vmax.f32 %v3795_v54, %v1064_v58  ;;  %v5982_v57 = vld [vmem:[#allocation30_spill] sm:$0xff] }
  0xf0   : > { %v4175_v38 = vmul.f32 %v642_v36, %v404_v52  ;;  %v1262_v31 = vrot.slane %v642_v36, %v4112_v33  ;;  %1130 = vmax.xlane.f32.xlu0 %v1129_v37  ;;  %v401_v35 = vpop.xlane.xlu1 %400  ;;  %v1141_v42 = vmax.f32 %v5982_v57, %v1060_v43  ;;  %v1062_v36 = vsel %vm1022_vm0, %v3834_v29, -inf }
  0xf1   : > { %v641_v25 = vmul.f32 0.0051020407, %v401_v35  ;;  %v389_v61 = vpop.xlane.xlu0 %388  ;;  %v1066_v54 = vsel %vm1022_vm0, %v3818_v63, -inf  ;;  %v1072_v63 = vsel %vm1022_vm0, %v3846_v47, -inf }
  0xf2   : > { %v1267_v48 = vsel %vm1224_vm2, %v1266_v45, %v1262_v31  ;;  %v637_v15 = vmul.f32 0.0051020407, %v389_v61 }
  0xf3   : > { %v4186_v13 = vmul.f32 %v641_v25, %v401_v35  ;;  %v1257_v37 = vrot.slane %v641_v25, %v4169_v60  ;;  %1133 = vmax.xlane.f32.xlu1 %v1132_v49 }
  0xf4   : > { %v4190_v34 = vmul.f32 %v637_v15, %v389_v61  ;;  %v1237_v55 = vrot.slane %v637_v15, %v4169_v60  ;;  %1139 = vmax.xlane.f32.xlu0 %v1138_v30  ;;  %v4193_v52 = vpop.xlane.xlu1 %415  ;;  %v1144_v30 = vmax.f32 %v3831_v28, %v1062_v36  ;;  %v1068_v28 = vsel %vm1022_vm0, %v3852_v53, -inf }
  0xf5   : > { %v1258_v45 = vsel %vm5928_vm4, %v1257_v37, %v1253_v1  ;;  %v410_v31 = vpop.xlane.xlu0 %409  ;;  %v1150_v1 = vmax.f32 %v3815_v62, %v1066_v54  ;;  %v1159_v62 = vmax.f32 %v3843_v46, %v1072_v63  ;;  %v5983_v37 = vld [vmem:[#allocation31_spill] sm:$0xff]  ;;  %v4274_v63 = vld [vmem:[%s5864_s1 + $0x10] sm:$0xff] }
  0xf6   : > { %v1239_v49 = vsel %vm5928_vm4, %v1237_v55, %v1232_v56  ;;  %v644_v35 = vmul.f32 0.0051020407, %v410_v31  ;;  %v1070_v55 = vsel %vm1022_vm0, %v3882_v41, -inf  ;;  %v1080_v41 = vsel %vm1022_vm0, %v3894_v11, -inf }
  0xf7   : > { %v1374_v51 = vsel %vm5927_vm5, %v1258_v45, %v1239_v49  ;;  %1148 = vmax.xlane.f32.xlu1 %v1147_v39  ;;  %v1153_v39 = vmax.f32 %v5983_v37, %v1068_v28  ;;  %v1156_v46 = vmax.f32 %v3879_v40, %v1070_v55  ;;  %v1171_v54 = vmax.f32 %v3891_v10, %v1080_v41 }
  0xf8   : > { %v4206_v58 = vmul.f32 %v644_v35, %v410_v31  ;;  %v1271_v25 = vrot.slane %v644_v35, %v4131_v21  ;;  %1142 = vmax.xlane.f32.xlu0 %v1141_v42  ;;  %v4209_v29 = vpop.xlane.xlu1 %412  ;;  %v5984_v35 = vld [vmem:[#allocation34_spill] sm:$0xff]  ;;  %v1082_v11 = vsel %vm1022_vm0, %v3914_v59, -inf }
  0xf9   : > { %v4216_v56 = vmul.f32 0.0051020407, %v4209_v29  ;;  %v4218_v61 = vpop.xlane.xlu0 %418  ;;  %v4279_v59 = vld [vmem:[%s5864_s1 + $0x18] sm:$0xff] }
  0xfa   : > { %v1272_v43 = vsel %vm1231_vm3, %v1271_v25, %v1267_v48  ;;  %v1074_v48 = vsel %vm1022_vm0, %v3866_v7, -inf  ;;  %v1076_v7 = vsel %vm1022_vm0, %v3900_v17, -inf  ;;  %v5985_v17 = vld [vmem:[#allocation33_spill] sm:$0xff]  ;;  %v5986_v25 = vld [vmem:[#allocation32_spill] sm:$0xff] }
  0xfb   : > { %v1276_v15 = vrot.slane %v4216_v56, %v4169_v60  ;;  %1145 = vmax.xlane.f32.xlu1 %v1144_v30  ;;  %v1162_v45 = vmax.f32 %v3863_v3, %v1074_v48  ;;  %v1165_v49 = vmax.f32 %v3897_v16, %v1076_v7  ;;  %v1078_v3 = vsel %vm1022_vm0, %v5984_v35, -inf }
  0xfc   : > { %1151 = vmax.xlane.f32.xlu0 %v1150_v1  ;;  %v4227_v47 = vpop.xlane.xlu1 %427  ;;  %v1168_v30 = vmax.f32 %v5985_v17, %v1078_v3  ;;  %v1174_v1 = vmax.f32 %v5986_v25, %v1082_v11  ;;  %v1086_v16 = vsel %vm1022_vm0, %v3974_v24, -inf  ;;  %v4289_v24 = vld [vmem:[%s5864_s1] sm:$0xff] }
  0xfd   : > { %v1277_v53 = vsel %vm5928_vm4, %v1276_v15, %v1272_v43  ;;  %v4234_v57 = vpop.xlane.xlu0 %421  ;;  %v1084_v43 = vsel %vm1022_vm0, %v3938_v18, -inf  ;;  %v4294_v15 = vld [vmem:[%s5864_s1 + $0x8] sm:$0xff]  ;;  %v1180_v37 = vmax.f32 %v3971_v50, %v1086_v16  ;;  %v2000_v18 = vmul.f32 %v4279_v59, %v3676_v9 }
  0xfe   : > { %v4240_v42 = vsel %vm5919_vm6, %v1277_v53, %v1374_v51  ;;  %v1177_v55 = vmax.f32 %v3935_v20, %v1084_v43  ;;  %v1997_v53 = vmul.f32 %v4289_v24, %v3657_v2  ;;  %v1998_v48 = vmul.f32 %v4294_v15, %v3662_v4  ;;  %v5988_v43 = vld [vmem:[#allocation12_spill] sm:$0xff] }
  0xff   : > { %1160 = vmax.xlane.f32.xlu1 %v1159_v62  ;;  %v646_v62 = vmul.f32 0.0051020407, %v4193_v52  ;;  %v4314_v41 = vmul.f32 0.0051020407, %v4234_v57  ;;  %v2007_v4 = vmul.f32 %v4274_v63, %v3665_v5  ;;  %v4335_v5 = vld [vmem:[%s5864_s1 + $0x20] sm:$0xff] }
 0x100   : > { %1154 = vmax.xlane.f32.xlu0 %v1153_v39  ;;  %v4243_v36 = vpop.xlane.xlu1 %424  ;;  %v1999_v39 = vmul.f32 %v4274_v63, %v3673_v8 }
 0x101   : > { %v4249_v31 = vpop.xlane.xlu0 %430  ;;  %v4310_v8 = vmul.f32 %v646_v62, %v4193_v52  ;;  %v1281_v9 = vrot.slane %v646_v62, %v4112_v33  ;;  %v4324_v52 = vmul.f32 %v4216_v56, %v4209_v29  ;;  %v4344_v56 = vmul.f32 0.0051020407, %v4227_v47 }
 0x102   : > { %v2064_v7 = vadd.f32 %v2000_v18, %v1999_v39  ;;  %v2009_v62 = vmul.f32 %v4335_v5, %v5988_v43  ;;  %v5990_v18 = vld [vmem:[#allocation25_spill] sm:$0xff]  ;;  %v4422_v26 = vmul.f32 %v4314_v41, %v4234_v57 }
 0x103   : > { %1157 = vmax.xlane.f32.xlu1 %v1156_v46  ;;  %v647_v46 = vmul.f32 0.0051020407, %v4218_v61 }
 0x104   : > { %1163 = vmax.xlane.f32.xlu0 %v1162_v45  ;;  %v4255_v40 = vpop.xlane.xlu1 %439 }
 0x105   : > { %v4261_v51 = vpop.xlane.xlu0 %433  ;;  %v1285_v29 = vrot.slane %v647_v46, %v4116_v27  ;;  %v4348_v17 = vmul.f32 %v647_v46, %v4218_v61  ;;  %v5992_v46 = vld [vmem:[#allocation15_spill] sm:$0xff] }
 0x107   : > { %1172 = vmax.xlane.f32.xlu1 %v1171_v54 }
 0x108   : > { %1166 = vmax.xlane.f32.xlu0 %v1165_v49  ;;  %v540_v10 = vpop.xlane.xlu1 %539  ;;  %v2061_v49 = vadd.f32 %v1998_v48, %v1997_v53  ;;  %v5991_v53 = vld [vmem:[#allocation14_spill] sm:$0xff] }
 0x109   : > { %v4281_v28 = vpop.xlane.xlu0 %442  ;;  %v698_v50 = vsub.f32 %v540_v10, %v4124_v32  ;;  %v2008_v32 = vmul.f32 %v4279_v59, %v3668_v6  ;;  %v4340_v6 = vld [vmem:[%s5864_s1 + $0x28] sm:$0xff]  ;;  %v4353_v10 = vmul.f32 0.0051020407, %v4249_v31  ;;  %v2001_v48 = vmul.f32 %v4335_v5, %v5991_v53 }
 0x10b   : > { %1169 = vmax.xlane.f32.xlu1 %v1168_v30  ;;  %v730_v3 = vmax.f32 %v698_v50, 0.0  ;;  %v1290_v30 = vrot.slane %v4314_v41, %v4131_v21  ;;  %v2076_v16 = vadd.f32 %v2008_v32, %v2007_v4  ;;  %v2002_v50 = vmul.f32 %v4340_v6, %v5992_v46 }
 0x10c   : > { %1175 = vmax.xlane.f32.xlu0 %v1174_v1  ;;  %v552_v22 = vpop.xlane.xlu1 %551  ;;  %v1300_v32 = vrot.slane %v4344_v56, %v4112_v33 }
 0x10d   : > { %v543_v45 = vpop.xlane.xlu0 %542  ;;  %v702_v20 = vsub.f32 %v552_v22, %v4118_v23  ;;  %v2005_v23 = vmul.f32 %v4289_v24, %v3651_v0  ;;  %v649_v0 = vmul.f32 0.0051020407, %v4243_v36 }
 0x10e   : > { %v699_v2 = vsub.f32 %v543_v45, %v4140_v12  ;;  %v5987_v12 = vld [vmem:[#allocation11_spill] sm:$0xff]  ;;  %v1286_v45 = vsel %vm1224_vm2, %v1285_v29, %v1281_v9  ;;  %v1304_v29 = vrot.slane %v4353_v10, %v4116_v27 }
 0x10f   : > { %1181 = vmax.xlane.f32.xlu1 %v1180_v37  ;;  %v2006_v35 = vmul.f32 %v4294_v15, %v5987_v12  ;;  %v734_v25 = vmax.f32 %v702_v20, 0.0  ;;  %v5989_v37 = vld [vmem:[#allocation13_spill] sm:$0xff]  ;;  %v4369_v20 = vmul.f32 %v4344_v56, %v4227_v47  ;;  %v1291_v47 = vsel %vm1231_vm3, %v1290_v30, %v1286_v45  ;;  %v5997_v30 = vld [vmem:[#allocation19_spill] sm:$0xff] }
 0x110   : > { %1178 = vmax.xlane.f32.xlu0 %v1177_v55  ;;  %v4326_v54 = vpop.xlane.xlu1 %436  ;;  %v731_v1 = vmax.f32 %v699_v2, 0.0  ;;  %v2010_v39 = vmul.f32 %v4340_v6, %v5989_v37  ;;  %v1295_v2 = vrot.slane %v649_v0, %v4169_v60  ;;  %v4392_v56 = vld [vmem:[%s5864_s1 + $0x30] sm:$0xff]  ;;  %v2067_v37 = vadd.f32 %v2002_v50, %v2001_v48  ;;  %v5998_v50 = vld [vmem:[#allocation22_spill] sm:$0xff] }
 0x111   : > { %v555_v11 = vpop.xlane.xlu0 %554  ;;  %v2073_v55 = vadd.f32 %v2006_v35, %v2005_v23  ;;  %5993 = vst [vmem:[#allocation24_spill] sm:$0xff] %v4369_v20  ;;  %v5994_v23 = vld [vmem:[#allocation16_spill] sm:$0xff]  ;;  %v5995_v35 = vld [vmem:[#allocation17_spill] sm:$0xff]  ;;  %v2014_v46 = vmul.f32 %v4294_v15, %v5997_v30  ;;  %v2003_v45 = vmul.f32 %v4392_v56, %v5998_v50  ;;  %v1305_v41 = vsel %vm1224_vm2, %v1304_v29, %v1300_v32 }
 0x112   : > { %v703_v61 = vsub.f32 %v555_v11, %v5990_v18  ;;  %v2015_v12 = vmul.f32 %v4274_v63, %v5994_v23  ;;  %v2016_v9 = vmul.f32 %v4279_v59, %v5995_v35  ;;  %v2079_v11 = vadd.f32 %v2010_v39, %v2009_v62  ;;  %v5996_v18 = vld [vmem:[#allocation18_spill] sm:$0xff]  ;;  %v6000_v35 = vld [vmem:[#allocation20_spill] sm:$0xff] }
 0x113   : > { %2065 = vadd.xlane.f32.xlu1 %v2064_v7  ;;  %v4372_v7 = vmul.f32 0.0051282053, %v730_v3  ;;  %v4387_v3 = vmul.f32 0.0051282053, %v731_v1  ;;  %v2013_v53 = vmul.f32 %v4289_v24, %v5996_v18  ;;  %v4401_v1 = vld [vmem:[%s5864_s1 + $0x38] sm:$0xff]  ;;  %v6001_v18 = vld [vmem:[#allocation21_spill] sm:$0xff] }
 0x114   : > { %v4360_v22 = vpop.xlane.xlu1 %451  ;;  %2062 = vadd.xlane.f32.xlu0 %v2061_v49  ;;  %v4378_v49 = vmul.f32 0.0051282053, %v734_v25  ;;  %v735_v25 = vmax.f32 %v703_v61, 0.0  ;;  %v654_v62 = vmul.f32 0.0051020407, %v4255_v40  ;;  %v2088_v48 = vadd.f32 %v2016_v9, %v2015_v12  ;;  %v3249_v32 = vld [vmem:[%s3640_s20 + $0xa8] sm:$0xff] }
 0x115   : > { %v4374_v4 = vpop.xlane.xlu0 %445  ;;  %v652_v39 = vmul.f32 0.0051020407, %v4261_v51  ;;  %3172 = vrsqrt.f32 %v4372_v7  ;;  %v2012_v30 = vmul.f32 %v4401_v1, %v6001_v18  ;;  %v4425_v12 = vmul.f32 %v649_v0, %v4243_v36 }
 0x116   : > { %3174 = vrsqrt.f32 %v4378_v49  ;;  %v4427_v9 = vmul.f32 0.0051282053, %v735_v25  ;;  %v653_v18 = vmul.f32 0.0051020407, %v4326_v54  ;;  %v4440_v0 = vmul.f32 %v654_v62, %v4255_v40 }
 0x117   : > { %2077 = vadd.xlane.f32.xlu1 %v2076_v16  ;;  %v1296_v16 = vsel %vm5928_vm4, %v1295_v2, %v1291_v47  ;;  %3176 = vrsqrt.f32 %v4387_v3  ;;  %v5999_v2 = vld [vmem:[#allocation23_spill] sm:$0xff]  ;;  %v2011_v47 = vmul.f32 %v4392_v56, %v6000_v35  ;;  %v1309_v35 = vrot.slane %v652_v39, %v4131_v21 }
 0x118   : > { %v546_v43 = vpop.xlane.xlu1 %545  ;;  %2074 = vadd.xlane.f32.xlu0 %v2073_v55  ;;  %v655_v55 = vmul.f32 0.0051020407, %v4281_v28  ;;  %v2004_v23 = vmul.f32 %v4401_v1, %v5999_v2  ;;  %v4431_v2 = vmul.f32 %v4353_v10, %v4249_v31  ;;  %v1378_v36 = vsel %vm5916_vm7, %v1296_v16, %v4240_v42  ;;  %v3248_v42 = vld [vmem:[%s3640_s20 + $0xa0] sm:$0xff] }
 0x119   : > { %v4407_v61 = vpop.xlane.xlu0 %454  ;;  %v700_v20 = vsub.f32 %v546_v43, %v4156_v19  ;;  %v1319_v10 = vrot.slane %v654_v62, %v4112_v33  ;;  %v2082_v43 = vadd.f32 %v2012_v30, %v2011_v47  ;;  %3178 = vrsqrt.f32 %v4427_v9 }
 0x11a   : > { %v1323_v31 = vrot.slane %v655_v55, %v4116_v27  ;;  %v2070_v19 = vadd.f32 %v2004_v23, %v2003_v45  ;;  %v2017_v40 = vmul.f32 %v3248_v42, %v4335_v5  ;;  %v2018_v29 = vmul.f32 %v3249_v32, %v4340_v6 }
 0x11b   : > { %2080 = vadd.xlane.f32.xlu1 %v2079_v11  ;;  %v2085_v11 = vadd.f32 %v2014_v46, %v2013_v53  ;;  %v1310_v46 = vsel %vm1231_vm3, %v1309_v35, %v1305_v41  ;;  %v1314_v16 = vrot.slane %v653_v18, %v4169_v60  ;;  %v732_v62 = vmax.f32 %v700_v20, 0.0  ;;  %v3251_v20 = vld [vmem:[%s3640_s20 + $0xc8] sm:$0xff] }
 0x11c   : > { %v564_v50 = vpop.xlane.xlu1 %563  ;;  %2068 = vadd.xlane.f32.xlu0 %v2067_v37  ;;  %vm796_vm9 = vcmp.eq.f32.partialorder %v4372_v7, inf  ;;  %v4461_v45 = vmul.f32 %v655_v55, %v4281_v28  ;;  %v4464_v23 = vsel %vm1224_vm2, %v1323_v31, %v1319_v10  ;;  %vm798_vm10 = vcmp.eq.f32.partialorder %v4372_v7, 0.0 }
 0x11d   : > { %v558_v57 = vpop.xlane.xlu0 %557  ;;  %v706_v25 = vsub.f32 %v564_v50, %v4175_v38  ;;  %v4454_v38 = vmul.f32 %v652_v39, %v4261_v51  ;;  %v3250_v39 = vld [vmem:[%s3640_s20 + $0xc0] sm:$0xff]  ;;  %vm824_vm11 = vcmp.eq.f32.partialorder %v4378_v49, inf  ;;  %v4474_v28 = vmul.f32 %v653_v18, %v4326_v54 }
 0x11e   : > { %v704_v37 = vsub.f32 %v558_v57, %v4152_v14  ;;  %v2021_v50 = vmul.f32 %v3250_v39, %v4289_v24  ;;  %v827_v31 = vand.u32 2147483648, %v4378_v49  ;;  %v1315_v10 = vsel %vm5928_vm4, %v1314_v16, %v1310_v46 }
 0x11f   : > { %2089 = vadd.xlane.f32.xlu1 %v2088_v48  ;;  %v799_v48 = vand.u32 2147483648, %v4372_v7  ;;  %v3173_v47 = vpop.eup %3172  ;;  %v738_v30 = vmax.f32 %v706_v25, 0.0  ;;  %v4481_v25 = vmul.f32 0.0051020407, %v4360_v22  ;;  %vm826_vm12 = vcmp.eq.f32.partialorder %v4378_v49, 0.0 }
 0x120   : > { %v4447_v53 = vpop.xlane.xlu1 %448  ;;  %2086 = vadd.xlane.f32.xlu0 %v2085_v11  ;;  %v2022_v11 = vmul.f32 %v3251_v20, %v4294_v15  ;;  %v3175_v35 = vpop.eup %3174  ;;  %v736_v55 = vmax.f32 %v704_v37, 0.0  ;;  %v795_v54 = vmul.f32 %v3173_v47, %v4372_v7  ;;  %vm803_vm13 = vcmp.eq.f32.partialorder %v4387_v3, inf }
 0x121   : > { %v567_v14 = vpop.xlane.xlu0 %566  ;;  %v3177_v41 = vpop.eup %3176  ;;  %vm805_vm14 = vcmp.eq.f32.partialorder %v4387_v3, 0.0  ;;  %v656_v18 = vmul.f32 0.0051020407, %v4374_v4  ;;  %v4493_v37 = vmul.f32 0.0051282053, %v738_v30  ;;  %v806_v46 = vand.u32 2147483648, %v4387_v3 }
 0x122   : > { %v707_v51 = vsub.f32 %v567_v14, %v4171_v44  ;;  %v2091_v44 = vadd.f32 %v2018_v29, %v2017_v40  ;;  %v2097_v32 = vadd.f32 %v2022_v11, %v2021_v50  ;;  %v802_v29 = vmul.f32 %v3177_v41, %v4387_v3 }
 0x123   : > { %2083 = vadd.xlane.f32.xlu1 %v2082_v43  ;;  %v4483_v43 = vmul.f32 0.0051282053, %v732_v62  ;;  %v4497_v16 = vmul.f32 0.0051282053, %v736_v55  ;;  %v4500_v14 = vsel %vm5912_vm8, %v1315_v10, %v1378_v36  ;;  %v4504_v47 = vmul.f32 %v4481_v25, %v4360_v22  ;;  %v3179_v50 = vpop.eup %3178  ;;  %v3252_v55 = vld [vmem:[%s3640_s20 + $0xd0] sm:$0xff] }
 0x124   : > { %v4476_v57 = vpop.xlane.xlu1 %463  ;;  %2071 = vadd.xlane.f32.xlu0 %v2070_v19  ;;  %v823_v19 = vmul.f32 %v3175_v35, %v4378_v49  ;;  %v739_v40 = vmax.f32 %v707_v51, 0.0  ;;  %v1338_v30 = vrot.slane %v4481_v25, %v4112_v33  ;;  %v659_v51 = vmul.f32 0.0051020407, %v4407_v61  ;;  %v3253_v25 = vld [vmem:[%s3640_s20 + $0xd8] sm:$0xff] }
 0x125   : > { %v4485_v42 = vpop.xlane.xlu0 %457  ;;  %3180 = vrsqrt.f32 %v4483_v43  ;;  %v797_v36 = vsel %vm796_vm9, %v4372_v7, %v795_v54  ;;  %vm831_vm15 = vcmp.eq.f32.partialorder %v4427_v9, inf  ;;  %v4517_v22 = vmul.f32 %v656_v18, %v4374_v4 }
 0x126   : > { %v1328_v20 = vrot.slane %v656_v18, %v4131_v21  ;;  %v825_v11 = vsel %vm824_vm11, %v4378_v49, %v823_v19  ;;  %3182 = vrsqrt.f32 %v4493_v37  ;;  %v4524_v35 = vmul.f32 0.0051282053, %v739_v40 }
 0x127   : > { %2098 = vadd.xlane.f32.xlu1 %v2097_v32  ;;  %v804_v41 = vsel %vm803_vm13, %v4387_v3, %v802_v29  ;;  %3184 = vrsqrt.f32 %v4497_v16  ;;  %v2024_v54 = vmul.f32 %v3253_v25, %v4279_v59  ;;  %v4539_v18 = vsel %vm798_vm10, %v799_v48, %v797_v36 }
 0x128   : > { %v549_v62 = vpop.xlane.xlu1 %548  ;;  %2092 = vadd.xlane.f32.xlu0 %v2091_v44  ;;  %v2023_v44 = vmul.f32 %v3252_v55, %v4274_v63  ;;  %v830_v19 = vmul.f32 %v3179_v50, %v4427_v9  ;;  %vm833_vm0 = vcmp.eq.f32.partialorder %v4427_v9, 0.0  ;;  %v1342_v40 = vrot.slane %v659_v51, %v4116_v27 }
 0x129   : > { %v4510_v39 = vpop.xlane.xlu0 %466  ;;  %v701_v4 = vsub.f32 %v549_v62, %v4190_v34  ;;  %v834_v29 = vand.u32 2147483648, %v4427_v9  ;;  %v657_v34 = vmul.f32 0.0051020407, %v4447_v53  ;;  %v4550_v7 = vsel %vm826_vm12, %v827_v31, %v825_v11 }
 0x12a   : > { %6002 = vst [vmem:[#allocation26_spill] sm:$0xff] %v4550_v7  ;;  %v4554_v48 = vsel %vm805_vm14, %v806_v46, %v804_v41  ;;  %3186 = vrsqrt.f32 %v4524_v35  ;;  %v2100_v50 = vadd.f32 %v2024_v54, %v2023_v44  ;;  %v1329_v25 = vsel %vm1231_vm3, %v1328_v20, %v4464_v23 }
 0x12b   : > { %6003 = vst [vmem:[#allocation28_spill] sm:$0xff] %v4554_v48  ;;  %v832_v3 = vsel %vm831_vm15, %v4427_v9, %v830_v19  ;;  %vm810_vm9 = vcmp.eq.f32.partialorder %v4483_v43, inf  ;;  %v4570_v46 = vsel %vm1224_vm2, %v1342_v40, %v1338_v30  ;;  %v4577_v20 = vmul.f32 %v657_v34, %v4447_v53  ;;  %v3255_v19 = vld [vmem:[%s3640_s20 + $0xb8] sm:$0xff] }
 0x12c   : > { %v570_v10 = vpop.xlane.xlu1 %569  ;;  %2101 = vadd.xlane.f32.xlu0 %v2100_v50  ;;  %vm5914_vm10 = vcmask 1045509   ;;  %v2020_v40 = vmul.f32 %v3255_v19, %v4401_v1  ;;  %vm812_vm11 = vcmp.eq.f32.partialorder %v4483_v43, 0.0  ;;  %vm852_vm12 = vcmp.eq.f32.partialorder %v4493_v37, inf }
 0x12d   : > { %v561_v32 = vpop.xlane.xlu0 %560  ;;  %v708_v62 = vsub.f32 %v570_v10, %v4206_v58  ;;  %v4562_v58 = vmul.f32 %v659_v51, %v4407_v61  ;;  %v3254_v10 = vld [vmem:[%s3640_s20 + $0xb0] sm:$0xff]  ;;  %v4592_v53 = vmul.f32 0.0051020407, %v4476_v57  ;;  %vm838_vm13 = vcmp.eq.f32.partialorder %v4497_v16, inf }
 0x12e   : > { %v705_v55 = vsub.f32 %v561_v32, %v4186_v13  ;;  %v733_v13 = vmax.f32 %v701_v4, 0.0  ;;  %v1333_v4 = vrot.slane %v657_v34, %v4169_v60  ;;  %v2019_v54 = vmul.f32 %v3254_v10, %v4392_v56 }
 0x12f   : > { %v740_v11 = vmax.f32 %v708_v62, 0.0  ;;  %v3181_v41 = vpop.eup %3180  ;;  %v4587_v32 = vsel %vm833_vm0, %v834_v29, %v832_v3  ;;  %v660_v9 = vmul.f32 0.0051020407, %v4485_v42  ;;  %vm854_vm14 = vcmp.eq.f32.partialorder %v4493_v37, 0.0 }
 0x130   : > { %v579_v49 = vpop.xlane.xlu1 %578  ;;  %v737_v44 = vmax.f32 %v705_v55, 0.0  ;;  %6004 = vst [vmem:[#allocation27_spill] sm:$0xff] %v4587_v32  ;;  %v4594_v34 = vmul.f32 0.0051282053, %v733_v13  ;;  %v3183_v62 = vpop.eup %3182  ;;  %v855_v55 = vand.u32 2147483648, %v4493_v37  ;;  %v809_v3 = vmul.f32 %v3181_v41, %v4483_v43 }
 0x131   : > { %v576_v23 = vpop.xlane.xlu0 %575  ;;  %v711_v30 = vsub.f32 %v579_v49, %v4348_v17  ;;  %v4601_v29 = vmul.f32 0.0051282053, %v740_v11  ;;  %v3185_v49 = vpop.eup %3184  ;;  %vm840_vm15 = vcmp.eq.f32.partialorder %v4497_v16, 0.0  ;;  %v841_v11 = vand.u32 2147483648, %v4497_v16 }
 0x132   : > { %v4607_v13 = vmul.f32 0.0051282053, %v737_v44  ;;  %v710_v19 = vsub.f32 %v576_v23, %v4310_v8  ;;  %v1334_v51 = vsel %vm5928_vm4, %v1333_v4, %v1329_v25  ;;  %v2094_v36 = vadd.f32 %v2020_v40, %v2019_v54 }
 0x133   : > { %v743_v10 = vmax.f32 %v711_v30, 0.0  ;;  %v851_v31 = vmul.f32 %v3183_v62, %v4493_v37  ;;  %v4618_v41 = vmul.f32 %v4592_v53, %v4476_v57  ;;  %3188 = vrsqrt.f32 %v4594_v34 }
 0x134   : > { %v4596_v17 = vpop.xlane.xlu1 %469  ;;  %v742_v44 = vmax.f32 %v710_v19, 0.0  ;;  %v3187_v23 = vpop.eup %3186  ;;  %v837_v30 = vmul.f32 %v3185_v49, %v4497_v16  ;;  %v1357_v61 = vrot.slane %v4592_v53, %v4112_v33  ;;  %v1347_v32 = vrot.slane %v660_v9, %v4131_v21  ;;  %2095 = vadd.xlane.f32.xlu1 %v2094_v36 }
 0x135   : > { %v4603_v50 = vpop.xlane.xlu0 %460  ;;  %3190 = vrsqrt.f32 %v4601_v29  ;;  %v811_v57 = vsel %vm810_vm9, %v4483_v43, %v809_v3  ;;  %v663_v4 = vmul.f32 0.0051020407, %v4510_v39  ;;  %v4631_v54 = vmul.f32 0.0051282053, %v743_v10 }
 0x136   : > { %3192 = vrsqrt.f32 %v4607_v13  ;;  %vm859_vm0 = vcmp.eq.f32.partialorder %v4524_v35, inf  ;;  %vm861_vm8 = vcmp.eq.f32.partialorder %v4524_v35, 0.0  ;;  %v862_v40 = vand.u32 2147483648, %v4524_v35 }
 0x137   : > { %v4637_v53 = vmul.f32 %v660_v9, %v4485_v42  ;;  %v853_v36 = vsel %vm852_vm12, %v4493_v37, %v851_v31  ;;  %v858_v62 = vmul.f32 %v3187_v23, %v4524_v35  ;;  %v4643_v49 = vmul.f32 0.0051282053, %v742_v44  ;;  %v3256_v44 = vld [vmem:[%s3640_s20 + $0xe0] sm:$0xff] }
 0x138   : > { %v582_v8 = vpop.xlane.xlu1 %581  ;;  %v6005_v19 = vand.u32 2147483648, %v4483_v43  ;;  %v839_v42 = vsel %vm838_vm13, %v4497_v16, %v837_v30  ;;  %v4657_v31 = vsel %vm5914_vm10, %v1334_v51, %v4500_v14  ;;  %v1361_v23 = vrot.slane %v663_v4, %v4116_v27  ;;  %v3257_v51 = vld [vmem:[%s3640_s20 + $0xe8] sm:$0xff] }
 0x139   : > { %v573_v25 = vpop.xlane.xlu0 %572  ;;  %v712_v3 = vsub.f32 %v582_v8, %v4422_v26  ;;  %v2025_v26 = vmul.f32 %v3256_v44, %v4335_v5  ;;  %v1348_v8 = vsel %vm1231_vm3, %v1347_v32, %v4570_v46  ;;  %3194 = vrsqrt.f32 %v4631_v54 }
 0x13a   : > { %v4650_v7 = vsel %vm812_vm11, %v6005_v19, %v811_v57  ;;  %v709_v43 = vsub.f32 %v573_v25, %v4324_v52  ;;  %v4668_v30 = vsel %vm854_vm14, %v855_v55, %v853_v36  ;;  %v4671_v57 = vmul.f32 %v663_v4, %v4510_v39 }
 0x13b   : > { %6006 = vst [vmem:[#allocation29_spill] sm:$0xff] %v4650_v7  ;;  %6007 = vst [vmem:[#allocation30_spill] sm:$0xff] %v4668_v30  ;;  %v661_v14 = vmul.f32 0.0051020407, %v4603_v50  ;;  %vm5926_vm9 = vcmask 1046534   ;;  %v2026_v19 = vmul.f32 %v3257_v51, %v4340_v6  ;;  %v4678_v46 = vsel %vm840_vm15, %v841_v11, %v839_v42 }
 0x13c   : > { %v591_v10 = vpop.xlane.xlu1 %590  ;;  %6008 = vst [vmem:[#allocation31_spill] sm:$0xff] %v4678_v46  ;;  %v860_v52 = vsel %vm859_vm0, %v4524_v35, %v858_v62  ;;  %3196 = vrsqrt.f32 %v4643_v49  ;;  %v744_v37 = vmax.f32 %v712_v3, 0.0  ;;  %v664_v55 = vmul.f32 0.0051020407, %v4596_v17 }
 0x13d   : > { %v588_v9 = vpop.xlane.xlu0 %587  ;;  %v715_v25 = vsub.f32 %v591_v10, %v4431_v2  ;;  %v2103_v16 = vadd.f32 %v2026_v19, %v2025_v26  ;;  %v3189_v11 = vpop.eup %3188  ;;  %vm817_vm11 = vcmp.eq.f32.partialorder %v4594_v34, inf  ;;  %v1362_v62 = vsel %vm1224_vm2, %v1361_v23, %v1357_v61 }
 0x13e   : > { %v741_v3 = vmax.f32 %v709_v43, 0.0  ;;  %vm5925_vm12 = vcmask 1047559   ;;  %v4701_v2 = vsel %vm861_vm8, %v862_v40, %v860_v52  ;;  %v1352_v10 = vrot.slane %v661_v14, %v4169_v60  ;;  %v6010_v43 = vld [vmem:[#allocation24_spill] sm:$0xff] }
 0x13f   : > { %v3191_v42 = vpop.eup %3190  ;;  %6009 = vst [vmem:[#allocation34_spill] sm:$0xff] %v4701_v2  ;;  %vm5924_vm13 = vcmask 261120   ;;  %2104 = vadd.xlane.f32.xlu0 %v2103_v16  ;;  %vm866_vm14 = vcmp.eq.f32.partialorder %v4601_v29, inf  ;;  %v869_v61 = vand.u32 2147483648, %v4601_v29  ;;  %v4706_v23 = vmul.f32 0.0051282053, %v744_v37 }
 0x140   : > { %v4684_v32 = vpop.xlane.xlu1 %584  ;;  %v3193_v26 = vpop.eup %3192  ;;  %v714_v19 = vsub.f32 %v588_v9, %v6010_v43  ;;  %vm819_vm15 = vcmp.eq.f32.partialorder %v4594_v34, 0.0  ;;  %vm845_vm0 = vcmp.eq.f32.partialorder %v4607_v13, inf  ;;  %v1366_v35 = vrot.slane %v664_v55, %v4131_v21 }
 0x141   : > { %v4690_v4 = vpop.xlane.xlu0 %472  ;;  %v747_v40 = vmax.f32 %v715_v25, 0.0  ;;  %v816_v37 = vmul.f32 %v3189_v11, %v4594_v34  ;;  %vm868_vm8 = vcmp.eq.f32.partialorder %v4601_v29, 0.0  ;;  %vm847_vm10 = vcmp.eq.f32.partialorder %v4607_v13, 0.0 }
 0x142   : > { %v4713_v52 = vmul.f32 0.0051020407, %v4690_v4  ;;  %v848_v9 = vand.u32 2147483648, %v4607_v13  ;;  %v4721_v43 = vmul.f32 0.0051282053, %v741_v3  ;;  %v865_v39 = vmul.f32 %v3191_v42, %v4601_v29 }
 0x143   : > { %v844_v25 = vmul.f32 %v3193_v26, %v4607_v13  ;;  %v4726_v36 = vmul.f32 %v661_v14, %v4603_v50  ;;  %v1353_v30 = vsel %vm5928_vm4, %v1352_v10, %v1348_v8  ;;  %v3195_v51 = vpop.eup %3194  ;;  %vm887_vm7 = vcmp.eq.f32.partialorder %v4631_v54, inf }
 0x144   : > { %v600_v44 = vpop.xlane.xlu1 %599  ;;  %3198 = vrsqrt.f32 %v4706_v23  ;;  %v746_v11 = vmax.f32 %v714_v19, 0.0  ;;  %v713_v2 = vsub.f32 %v4684_v32, %v4425_v12  ;;  %v890_v46 = vand.u32 2147483648, %v4631_v54 }
 0x145   : > { %v594_v16 = vpop.xlane.xlu0 %593  ;;  %v4734_v42 = vmul.f32 0.0051282053, %v747_v40  ;;  %v1371_v50 = vrot.slane %v4713_v52, %v4169_v60  ;;  %v1367_v14 = vsel %vm1231_vm3, %v1366_v35, %v1362_v62  ;;  %v818_v26 = vsel %vm817_vm11, %v4594_v34, %v816_v37 }
 0x146   : > { %v3197_v10 = vpop.eup %3196  ;;  %vm889_vm6 = vcmp.eq.f32.partialorder %v4631_v54, 0.0  ;;  %3200 = vrsqrt.f32 %v4721_v43  ;;  %v1384_v12 = vsel %vm5926_vm9, %v1353_v30, %v4657_v31  ;;  %v4747_v32 = vmul.f32 %v664_v55, %v4596_v17 }
 0x147   : > { %v867_v62 = vsel %vm866_vm14, %v4601_v29, %v865_v39  ;;  %v846_v19 = vsel %vm845_vm0, %v4607_v13, %v844_v25  ;;  %v886_v35 = vmul.f32 %v3195_v51, %v4631_v54  ;;  %v718_v40 = vsub.f32 %v600_v44, %v4440_v0 }
 0x148   : > { %v597_v3 = vpop.xlane.xlu1 %596  ;;  %v4757_v37 = vmul.f32 0.0051282053, %v746_v11  ;;  %v745_v7 = vmax.f32 %v713_v2, 0.0  ;;  %v716_v31 = vsub.f32 %v594_v16, %v4454_v38  ;;  %v1372_v17 = vsel %vm5928_vm4, %v1371_v50, %v1367_v14 }
 0x149   : > { %v603_v8 = vpop.xlane.xlu0 %602  ;;  %v879_v55 = vmul.f32 %v3197_v10, %v4643_v49  ;;  %3202 = vrsqrt.f32 %v4734_v42  ;;  %v1386_v39 = vsel %vm5925_vm12, %v1372_v17, %v1384_v12  ;;  %v6011_v51 = vand.u32 2147483648, %v4594_v34 }
 0x14a   : > { %v719_v25 = vsub.f32 %v603_v8, %v4461_v45  ;;  %vm880_vm11 = vcmp.eq.f32.partialorder %v4643_v49, inf  ;;  %vm882_vm14 = vcmp.eq.f32.partialorder %v4643_v49, 0.0  ;;  %v883_v38 = vand.u32 2147483648, %v4643_v49  ;;  %3057 = vmatmul.mubr.msk.f32.vlgmr.msra.gmra.mrb[0].mxu0 %vm5924_vm13, %v1386_v39 }
 0x14b   : > { %v4769_v0 = vsel %vm819_vm15, %v6011_v51, %v818_v26  ;;  %v4777_v44 = vsel %vm868_vm8, %v869_v61, %v867_v62  ;;  %v4781_v45 = vsel %vm847_vm10, %v848_v9, %v846_v19  ;;  %v750_v2 = vmax.f32 %v718_v40, 0.0 }
 0x14c   : > { %v612_v30 = vpop.xlane.xlu1 %611  ;;  %v717_v34 = vsub.f32 %v597_v3, %v4474_v28  ;;  %v6012_v16 = vmov 0.0   ;;  %v888_v11 = vsel %vm887_vm7, %v4631_v54, %v886_v35  ;;  %vm894_vm15 = vcmp.eq.f32.partialorder %v4706_v23, inf }
 0x14d   : > { %v606_v48 = vpop.xlane.xlu0 %605  ;;  %3059 = vmatprep.mubr.msk.f32.mxu0 %vm5922_vm1, %v6012_v16  ;;  %3204 = vrsqrt.f32 %v4757_v37  ;;  %v4791_v29 = vmul.f32 0.0051282053, %v745_v7  ;;  %v748_v61 = vmax.f32 %v716_v31, 0.0  ;;  %v881_v9 = vsel %vm880_vm11, %v4643_v49, %v879_v55 }
 0x14e   : > { %v897_v50 = vand.u32 2147483648, %v4706_v23  ;;  %v751_v28 = vmax.f32 %v719_v25, 0.0  ;;  %v722_v3 = vsub.f32 %v612_v30, %v4504_v47  ;;  %v3199_v8 = vpop.eup %3198  ;;  %vm873_vm10 = vcmp.eq.f32.partialorder %v4721_v43, inf }
 0x14f   : > { %v876_v10 = vand.u32 2147483648, %v4721_v43  ;;  %v720_v7 = vsub.f32 %v606_v48, %v4517_v22  ;;  %v4802_v12 = vsel %vm889_vm6, %v890_v46, %v888_v11  ;;  %v911_v62 = vand.u32 2147483648, %v4757_v37  ;;  %v3258_v11 = vld [vmem:[%s3640_s20 + $0x100] sm:$0xff] }
 0x150   : > { %v609_v13 = vpop.xlane.xlu1 %608  ;;  %v4805_v19 = vmul.f32 0.0051282053, %v750_v2  ;;  %v749_v35 = vmax.f32 %v717_v34, 0.0  ;;  %v3201_v47 = vpop.eup %3200  ;;  %v4809_v40 = vsel %vm882_vm14, %v883_v38, %v881_v9  ;;  %3206 = vrsqrt.f32 %v4791_v29 }
 0x151   : > { %v615_v14 = vpop.xlane.xlu0 %614  ;;  %v4814_v31 = vmul.f32 %v4713_v52, %v4690_v4  ;;  %v4816_v22 = vmul.f32 0.0051282053, %v748_v61  ;;  %v893_v54 = vmul.f32 %v3199_v8, %v4706_v23  ;;  %vm915_vm6 = vcmp.eq.f32.partialorder %v4734_v42, inf }
 0x152   : > { %v4820_v46 = vmul.f32 0.0051282053, %v751_v28  ;;  %v754_v17 = vmax.f32 %v722_v3, 0.0  ;;  %v752_v30 = vmax.f32 %v720_v7, 0.0  ;;  %v721_v55 = vsub.f32 %v609_v13, %v4577_v20 }
 0x153   : > { %v723_v39 = vsub.f32 %v615_v14, %v4562_v58  ;;  %v3203_v25 = vpop.eup %3202  ;;  %v872_v51 = vmul.f32 %v3201_v47, %v4721_v43  ;;  %v904_v38 = vand.u32 2147483648, %v4791_v29  ;;  %3208 = vrsqrt.f32 %v4805_v19  ;;  %v3264_v47 = vld [vmem:[%s3640_s20 + $0x120] sm:$0xff] }
 0x154   : > { %v624_v48 = vpop.xlane.xlu1 %623  ;;  %v4829_v2 = vmul.f32 0.0051282053, %v749_v35  ;;  %vm908_vm7 = vcmp.eq.f32.partialorder %v4757_v37, inf  ;;  %3210 = vrsqrt.f32 %v4816_v22  ;;  %v753_v20 = vmax.f32 %v721_v55, 0.0 }
 0x155   : > { %v618_v49 = vpop.xlane.xlu0 %617  ;;  %v726_v4 = vsub.f32 %v624_v48, %v4618_v41  ;;  %v755_v34 = vmax.f32 %v723_v39, 0.0  ;;  %v2029_v41 = vmul.f32 %v3258_v11, %v4289_v24  ;;  %v4840_v61 = vmul.f32 0.0051282053, %v754_v17 }
 0x156   : > { %v724_v52 = vsub.f32 %v618_v49, %v4637_v53  ;;  %v4838_v53 = vsel %vm894_vm15, %v4706_v23, %v893_v54  ;;  %v914_v14 = vmul.f32 %v3203_v25, %v4734_v42  ;;  %3212 = vrsqrt.f32 %v4820_v46 }
 0x157   : > { %v758_v13 = vmax.f32 %v726_v4, 0.0  ;;  %v3205_v3 = vpop.eup %3204  ;;  %v4845_v8 = vmul.f32 0.0051282053, %v752_v30  ;;  %v4850_v35 = vsel %vm873_vm10, %v4721_v43, %v872_v51  ;;  %3214 = vrsqrt.f32 %v4829_v2  ;;  %v3259_v30 = vld [vmem:[%s3640_s20 + $0x108] sm:$0xff] }
 0x158   : > { %v621_v58 = vpop.xlane.xlu1 %620  ;;  %v756_v7 = vmax.f32 %v724_v52, 0.0  ;;  %v4854_v48 = vmul.f32 0.0051282053, %v753_v20  ;;  %v2030_v55 = vmul.f32 %v3259_v30, %v4294_v15  ;;  %v907_v39 = vmul.f32 %v3205_v3, %v4757_v37 }
 0x159   : > { %v725_v9 = vsub.f32 %v621_v58, %v4726_v36  ;;  %v627_v28 = vpop.xlane.xlu0 %626  ;;  %v4856_v36 = vmul.f32 0.0051282053, %v755_v34  ;;  %vm901_vm0 = vcmp.eq.f32.partialorder %v4791_v29, inf  ;;  %3216 = vrsqrt.f32 %v4840_v61 }
 0x15a   : > { %v727_v17 = vsub.f32 %v627_v28, %v4671_v57  ;;  %v4865_v52 = vmul.f32 0.0051282053, %v758_v13  ;;  %v3207_v51 = vpop.eup %3206  ;;  %v4870_v57 = vsel %vm915_vm6, %v4734_v42, %v914_v14  ;;  %3218 = vrsqrt.f32 %v4845_v8  ;;  %v3260_v13 = vld [vmem:[%s3640_s20 + $0x110] sm:$0xff] }
 0x15b   : > { %v757_v54 = vmax.f32 %v725_v9, 0.0  ;;  %v4873_v20 = vmul.f32 0.0051282053, %v756_v7  ;;  %3220 = vrsqrt.f32 %v4854_v48  ;;  %v2031_v9 = vmul.f32 %v3260_v13, %v4274_v63  ;;  %v3261_v7 = vld [vmem:[%s3640_s20 + $0x118] sm:$0xff]  ;;  %v3265_v63 = vld [vmem:[%s3640_s20 + $0x128] sm:$0xff] }
 0x15c   : > { %v633_v49 = vpop.xlane.xlu1 %632  ;;  %v759_v34 = vmax.f32 %v727_v17, 0.0  ;;  %vm936_vm8 = vcmp.eq.f32.partialorder %v4805_v19, inf  ;;  %vm922_vm11 = vcmp.eq.f32.partialorder %v4816_v22, inf  ;;  %3222 = vrsqrt.f32 %v4856_v36 }
 0x15d   : > { %v630_v25 = vpop.xlane.xlu0 %629  ;;  %v4876_v58 = vmul.f32 0.0051282053, %v757_v54  ;;  %v729_v28 = vsub.f32 %v633_v49, %v4814_v31  ;;  %v2109_v14 = vadd.f32 %v2030_v55, %v2029_v41  ;;  %v2032_v54 = vmul.f32 %v3261_v7, %v4279_v59  ;;  %v3209_v17 = vpop.eup %3208 }
 0x15e   : > { %v728_v11 = vsub.f32 %v630_v25, %v4747_v32  ;;  %v4892_v32 = vsel %vm908_vm7, %v4757_v37, %v907_v39  ;;  %3224 = vrsqrt.f32 %v4865_v52  ;;  %v4896_v30 = vmul.f32 0.0051282053, %v759_v34  ;;  %v3211_v49 = vpop.eup %3210  ;;  %v3262_v25 = vld [vmem:[%s3640_s20 + $0xf0] sm:$0xff] }
 0x15f   : > { %v900_v41 = vmul.f32 %v3207_v51, %v4791_v29  ;;  %vm943_vm14 = vcmp.eq.f32.partialorder %v4820_v46, inf  ;;  %3226 = vrsqrt.f32 %v4873_v20  ;;  %2110 = vadd.xlane.f32.xlu1 %v2109_v14  ;;  %vm896_vm15 = vcmp.eq.f32.partialorder %v4706_v23, 0.0  ;;  %v3263_v14 = vld [vmem:[%s3640_s20 + $0xf8] sm:$0xff] }
 0x160   : > { %v4885_v3 = vpop.xlane.xlu1 %1091  ;;  %v760_v59 = vmax.f32 %v728_v11, 0.0  ;;  %vm875_vm10 = vcmp.eq.f32.partialorder %v4721_v43, 0.0  ;;  %3228 = vrsqrt.f32 %v4876_v58  ;;  %v2112_v39 = vadd.f32 %v2032_v54, %v2031_v9  ;;  %v3213_v34 = vpop.eup %3212 }
 0x161   : > { %v4898_v31 = vpop.xlane.xlu0 %1088  ;;  %v2027_v51 = vmul.f32 %v3262_v25, %v4392_v56  ;;  %vm903_vm6 = vcmp.eq.f32.partialorder %v4791_v29, 0.0  ;;  %vm929_vm7 = vcmp.eq.f32.partialorder %v4829_v2, inf  ;;  %v761_v11 = vmax.f32 %v729_v28, 0.0  ;;  %v3215_v54 = vpop.eup %3214 }
 0x162   : > { %v2028_v7 = vmul.f32 %v3263_v14, %v4401_v1  ;;  %v2033_v55 = vmul.f32 %v3264_v47, %v4335_v5  ;;  %v2034_v9 = vmul.f32 %v3265_v63, %v4340_v6  ;;  %vm917_vm1 = vcmp.eq.f32.partialorder %v4734_v42, 0.0  ;;  %2113 = vadd.xlane.f32.xlu0 %v2112_v39  ;;  %v3266_v1 = vld [vmem:[%s3640_s20 + $0x140] sm:$0xff] }
 0x163   : > { %vm910_vm13 = vcmp.eq.f32.partialorder %v4757_v37, 0.0  ;;  %v935_v56 = vmul.f32 %v3209_v17, %v4805_v19  ;;  %v921_v28 = vmul.f32 %v3211_v49, %v4816_v22  ;;  %3230 = vrsqrt.f32 %v4896_v30  ;;  %v3217_v14 = vpop.eup %3216 }
 0x164   : > { %v4911_v13 = vpop.xlane.xlu1 %1103  ;;  %v2037_v5 = vmul.f32 %v3266_v1, %v4289_v24  ;;  %v902_v6 = vsel %vm901_vm0, %v4791_v29, %v900_v41  ;;  %vm924_vm12 = vcmp.eq.f32.partialorder %v4816_v22, 0.0  ;;  %v4930_v47 = vmul.f32 0.0051282053, %v760_v59  ;;  %v3267_v1 = vld [vmem:[%s3640_s20 + $0x148] sm:$0xff]  ;;  %v3219_v4 = vpop.eup %3218 }
 0x165   : > { %v1101_v25 = vpop.xlane.xlu0 %1100  ;;  %v2106_v63 = vadd.f32 %v2028_v7, %v2027_v51  ;;  %v2115_v17 = vadd.f32 %v2034_v9, %v2033_v55  ;;  %vm938_vm9 = vcmp.eq.f32.partialorder %v4805_v19, 0.0  ;;  %v942_v49 = vmul.f32 %v3213_v34, %v4820_v46 }
 0x166   : > { %v1426_v39 = vrot.slane %v4885_v3, %v4116_v27  ;;  %v1422_v24 = vrot.slane %v4898_v31, %v4112_v33  ;;  %v2038_v41 = vmul.f32 %v3267_v1, %v4294_v15  ;;  %vm945_vm0 = vcmp.eq.f32.partialorder %v4820_v46, 0.0  ;;  %v3221_v3 = vpop.eup %3220 }
 0x167   : > { %vm950_vm5 = vcmp.eq.f32.partialorder %v4845_v8, inf  ;;  %v953_v55 = vand.u32 2147483648, %v4845_v8  ;;  %v4944_v51 = vmul.f32 0.0051282053, %v761_v11  ;;  %2107 = vadd.xlane.f32.xlu1 %v2106_v63  ;;  %v937_v31 = vsel %vm936_vm8, %v4805_v19, %v935_v56  ;;  %2116 = vadd.xlane.f32.xlu0 %v2115_v17  ;;  %v3223_v59 = vpop.eup %3222 }
 0x168   : > { %v1107_v34 = vpop.xlane.xlu1 %1106  ;;  %v923_v15 = vsel %vm922_vm11, %v4816_v22, %v921_v28  ;;  %v928_v7 = vmul.f32 %v3215_v54, %v4829_v2  ;;  %v2121_v1 = vadd.f32 %v2038_v41, %v2037_v5  ;;  %vm964_vm4 = vcmp.eq.f32.partialorder %v4840_v61, inf  ;;  %v3225_v26 = vpop.eup %3224 }
 0x169   : > { %v1095_v9 = vpop.xlane.xlu0 %1094  ;;  %3232 = vrsqrt.f32 %v4930_v47  ;;  %v1445_v63 = vrot.slane %v4911_v13, %v4116_v27  ;;  %v1441_v56 = vrot.slane %v1101_v25, %v4112_v33  ;;  %v944_v54 = vsel %vm943_vm14, %v4820_v46, %v942_v49  ;;  %v3227_v41 = vpop.eup %3226 }
 0x16a   : > { %v963_v28 = vmul.f32 %v3217_v14, %v4840_v61  ;;  %v949_v5 = vmul.f32 %v3219_v4, %v4845_v8  ;;  %vm971_vm8 = vcmp.eq.f32.partialorder %v4856_v36, inf  ;;  %v1427_v17 = vsel %vm1224_vm2, %v1426_v39, %v1422_v24  ;;  %v3229_v14 = vpop.eup %3228 }
 0x16b   : > { %3234 = vrsqrt.f32 %v4944_v51  ;;  %v1450_v13 = vrot.slane %v1107_v34, %v4131_v21  ;;  %2122 = vadd.xlane.f32.xlu1 %v2121_v1  ;;  %v4973_v25 = vsel %vm875_vm10, %v876_v10, %v4850_v35  ;;  %v4980_v4 = vsel %vm896_vm15, %v897_v50, %v4838_v53 }
 0x16c   : > { %v1116_v11 = vpop.xlane.xlu1 %1115  ;;  %v956_v49 = vmul.f32 %v3221_v3, %v4854_v48  ;;  %v1431_v39 = vrot.slane %v1095_v9, %v4131_v21  ;;  %v4988_v43 = vsel %vm903_vm6, %v904_v38, %v902_v6  ;;  %v930_v10 = vsel %vm929_vm7, %v4829_v2, %v928_v7 }
 0x16d   : > { %v1113_v24 = vpop.xlane.xlu0 %1112  ;;  %v970_v23 = vmul.f32 %v3223_v59, %v4856_v36  ;;  %v1446_v50 = vsel %vm1224_vm2, %v1445_v63, %v1441_v56  ;;  %v5000_v53 = vsel %vm910_vm13, %v911_v62, %v4892_v32  ;;  %v6013_v29 = vand.u32 2147483648, %v4734_v42  ;;  %v3231_v35 = vpop.eup %3230 }
 0x16e   : > { %v991_v6 = vmul.f32 %v3225_v26, %v4865_v52  ;;  %v977_v59 = vmul.f32 %v3227_v41, %v4873_v20  ;;  %v6014_v34 = vand.u32 2147483648, %v4816_v22  ;;  %vm931_vm13 = vcmp.eq.f32.partialorder %v4829_v2, 0.0 }
 0x16f   : > { %v5007_v38 = vsel %vm917_vm1, %v6013_v29, %v4870_v57  ;;  %v1451_v37 = vsel %vm1231_vm3, %v1450_v13, %v1446_v50  ;;  %v6015_v42 = vand.u32 2147483648, %v4829_v2  ;;  %v6016_v32 = vand.u32 2147483648, %v4805_v19 }
 0x170   : > { %v5015_v3 = vsel %vm924_vm12, %v6014_v34, %v923_v15  ;;  %v1110_v62 = vpop.xlane.xlu1 %1109  ;;  %v951_v22 = vsel %vm950_vm5, %v4845_v8, %v949_v5  ;;  %v5033_v15 = vsel %vm1231_vm3, %v1431_v39, %v1427_v17  ;;  %v1464_v7 = vrot.slane %v1116_v11, %v4116_v27 }
 0x171   : > { %v5021_v57 = vsel %vm931_vm13, %v6015_v42, %v930_v10  ;;  %v5027_v26 = vsel %vm938_vm9, %v6016_v32, %v937_v31  ;;  %v1460_v9 = vrot.slane %v1113_v24, %v4112_v33  ;;  %v5037_v2 = vpop.xlane.xlu0 %1097  ;;  %v6017_v1 = vand.u32 2147483648, %v4820_v46 }
 0x172   : > { %v998_v31 = vmul.f32 %v3231_v35, %v4896_v30  ;;  %vm952_vm1 = vcmp.eq.f32.partialorder %v4845_v8, 0.0  ;;  %vm957_vm5 = vcmp.eq.f32.partialorder %v4854_v48, inf  ;;  %v984_v63 = vmul.f32 %v3229_v14, %v4876_v58 }
 0x173   : > { %v5043_v19 = vsel %vm945_vm0, %v6017_v1, %v944_v54  ;;  %v5049_v56 = vsel %vm952_vm1, %v953_v55, %v951_v22  ;;  %v958_v11 = vsel %vm957_vm5, %v4854_v48, %v956_v49  ;;  %vm959_vm9 = vcmp.eq.f32.partialorder %v4854_v48, 0.0  ;;  %v3233_v54 = vpop.eup %3232 }
 0x174   : > { %v965_v46 = vsel %vm964_vm4, %v4840_v61, %v963_v28  ;;  %v5056_v5 = vpop.xlane.xlu1 %1124  ;;  %v960_v17 = vand.u32 2147483648, %v4854_v48  ;;  %vm966_vm12 = vcmp.eq.f32.partialorder %v4840_v61, 0.0  ;;  %v972_v8 = vsel %vm971_vm8, %v4856_v36, %v970_v23 }
 0x175   : > { %vm973_vm11 = vcmp.eq.f32.partialorder %v4856_v36, 0.0  ;;  %v5065_v55 = vsel %vm1224_vm2, %v1464_v7, %v1460_v9  ;;  %v1455_v41 = vrot.slane %v1110_v62, %v4169_v60  ;;  %v5068_v13 = vpop.xlane.xlu0 %1118  ;;  %vm978_vm4 = vcmp.eq.f32.partialorder %v4873_v20, inf  ;;  %v3235_v48 = vpop.eup %3234  ;;  %v6022_v7 = vld [vmem:[#allocation28_spill] sm:$0xff] }
 0x176   : > { %vm985_vm14 = vcmp.eq.f32.partialorder %v4876_v58, inf  ;;  %v5072_v28 = vsel %vm959_vm9, %v960_v17, %v958_v11  ;;  %v6018_v14 = vand.u32 2147483648, %v4840_v61  ;;  %v979_v39 = vsel %vm978_vm4, %v4873_v20, %v977_v59  ;;  %v6024_v11 = vld [vmem:[#allocation29_spill] sm:$0xff] }
 0x177   : > { %v986_v24 = vsel %vm985_vm14, %v4876_v58, %v984_v63  ;;  %v1005_v10 = vmul.f32 %v3233_v54, %v4930_v47  ;;  %v6019_v23 = vand.u32 2147483648, %v4856_v36  ;;  %v981_v29 = vand.u32 2147483648, %v4873_v20 }
 0x178   : > { %v5076_v49 = vsel %vm966_vm12, %v6018_v14, %v965_v46  ;;  %v988_v35 = vand.u32 2147483648, %v4876_v58  ;;  %v1436_v34 = vrot.slane %v5037_v2, %v4169_v60  ;;  %v5089_v61 = vpop.xlane.xlu1 %1121  ;;  %vm980_vm15 = vcmp.eq.f32.partialorder %v4873_v20, 0.0  ;;  %v6028_v14 = vld [vmem:[#allocation27_spill] sm:$0xff] }
 0x179   : > { %v5083_v50 = vsel %vm973_vm11, %v6019_v23, %v972_v8  ;;  %vm987_vm10 = vcmp.eq.f32.partialorder %v4876_v58, 0.0  ;;  %vm992_vm6 = vcmp.eq.f32.partialorder %v4865_v52, inf  ;;  %vm6020_vm7 = vcmask 261312   ;;  %v5097_v36 = vpop.xlane.xlu0 %1127  ;;  %v6026_v8 = vld [vmem:[#allocation26_spill] sm:$0xff] }
 0x17a   : > { %v5095_v59 = vsel %vm6020_vm7, %v1455_v41, %v1451_v37  ;;  %v5099_v62 = vsel %vm980_vm15, %v981_v29, %v979_v39  ;;  %v5101_v42 = vsel %vm987_vm10, %v988_v35, %v986_v24  ;;  %v993_v32 = vsel %vm992_vm6, %v4865_v52, %v991_v6  ;;  %v6030_v29 = vld [vmem:[#allocation31_spill] sm:$0xff]  ;;  %vm6036_vm9 = vmmov %vm6020_vm7 }
 0x17b   : > { %v1469_v22 = vrot.slane %v5068_v13, %v4131_v21  ;;  %vm994_vm0 = vcmp.eq.f32.partialorder %v4865_v52, 0.0  ;;  %v995_v20 = vand.u32 2147483648, %v4865_v52  ;;  %vm999_vm8 = vcmp.eq.f32.partialorder %v4896_v30, inf  ;;  %vm6037_vm12 = vmmov %vm6020_vm7 }
 0x17c   : > { %v1000_v58 = vsel %vm999_vm8, %v4896_v30, %v998_v31  ;;  %vm1001_vm13 = vcmp.eq.f32.partialorder %v4896_v30, 0.0  ;;  %vm1006_vm1 = vcmp.eq.f32.partialorder %v4930_v47, inf  ;;  %v6021_v37 = vrot.slane %v4539_v18, %v4112_v33  ;;  %v5119_v1 = vpop.xlane.xlu1 %1136  ;;  %vm6038_vm11 = vmmov %vm6020_vm7 }
 0x17d   : > { %v6023_v6 = vrot.slane %v6022_v7, %v4116_v27  ;;  %v5121_v63 = vsel %vm994_vm0, %v995_v20, %v993_v32  ;;  %v1002_v52 = vand.u32 2147483648, %v4896_v30  ;;  %v1007_v31 = vsel %vm1006_vm1, %v4930_v47, %v1005_v10  ;;  %v5129_v17 = vpop.xlane.xlu0 %1130  ;;  %v6032_v20 = vld [vmem:[#allocation30_spill] sm:$0xff]  ;;  %vm6039_vm15 = vmmov %vm6020_vm7 }
 0x17e   : > { %v6025_v46 = vrot.slane %v6024_v11, %v4131_v21  ;;  %vm1008_vm5 = vcmp.eq.f32.partialorder %v4930_v47, 0.0  ;;  %v1627_v18 = vrot.slane %v4769_v0, %v4169_v60  ;;  %v6027_v41 = vrot.slane %v6026_v8, %v4112_v33  ;;  %vm6040_vm10 = vmmov %vm6020_vm7 }
 0x17f   : > { %v1618_v9 = vsel %vm1224_vm2, %v6023_v6, %v6021_v37  ;;  %v6029_v39 = vrot.slane %v6028_v14, %v4116_v27  ;;  %v1646_v10 = vrot.slane %v4781_v45, %v4169_v60  ;;  %v1012_v23 = vmul.f32 %v3235_v48, %v4944_v51  ;;  %v6034_v37 = vld [vmem:[#allocation34_spill] sm:$0xff]  ;;  %vm6041_vm6 = vmmov %vm6020_vm7 }
 0x180   : > { %v1623_v54 = vsel %vm1231_vm3, %v6025_v46, %v1618_v9  ;;  %v6031_v35 = vrot.slane %v6030_v29, %v4131_v21  ;;  %v6033_v0 = vrot.slane %v6032_v20, %v4112_v33  ;;  %v6035_v7 = vrot.slane %v6034_v37, %v4116_v27  ;;  %v5163_v8 = vpop.xlane.xlu1 %1133  ;;  %vm6042_vm7 = vmmov %vm6041_vm6 }
 0x181   : > { %v1637_v24 = vsel %vm1224_vm2, %v6029_v39, %v6027_v41  ;;  %v1660_v9 = vrot.slane %v4777_v44, %v4131_v21  ;;  %v1628_v45 = vsel %vm6036_vm9, %v1627_v18, %v1623_v54  ;;  %v1665_v11 = vrot.slane %v4973_v25, %v4169_v60  ;;  %v5172_v18 = vpop.xlane.xlu0 %1139  ;;  %vm6043_vm0 = vmmov %vm6041_vm6 }
 0x182   : > { %v1642_v32 = vsel %vm1231_vm3, %v6031_v35, %v1637_v24  ;;  %v1656_v6 = vsel %vm1224_vm2, %v6035_v7, %v6033_v0  ;;  %v1670_v46 = vrot.slane %v4809_v40, %v4112_v33  ;;  %v1003_v41 = vsel %vm1001_vm13, %v1002_v52, %v1000_v58  ;;  %vm6045_vm13 = vmmov %vm6043_vm0 }
 0x183   : > { %v1647_v48 = vsel %vm6037_vm12, %v1646_v10, %v1642_v32  ;;  %v1661_v14 = vsel %vm1231_vm3, %v1660_v9, %v1656_v6  ;;  %v1674_v44 = vrot.slane %v4802_v12, %v4116_v27  ;;  %v1679_v54 = vrot.slane %v4980_v4, %v4131_v21  ;;  %vm6046_vm1 = vmmov %vm6043_vm0 }
 0x184   : > { %v1009_v25 = vand.u32 2147483648, %v4930_v47  ;;  %v1666_v39 = vsel %vm6038_vm11, %v1665_v11, %v1661_v14  ;;  %v1684_v40 = vrot.slane %v4988_v43, %v4169_v60  ;;  %v1689_v30 = vrot.slane %v5000_v53, %v4112_v33  ;;  %v5191_v53 = vpop.xlane.xlu1 %1148 }
 0x185   : > { %vm1013_vm4 = vcmp.eq.f32.partialorder %v4944_v51, inf  ;;  %v1675_v58 = vsel %vm1224_vm2, %v1674_v44, %v1670_v46  ;;  %v1693_v12 = vrot.slane %v5007_v38, %v4116_v27  ;;  %v1698_v4 = vrot.slane %v5015_v3, %v4131_v21  ;;  %v5198_v35 = vpop.xlane.xlu0 %1142 }
 0x186   : > { %v1014_v52 = vsel %vm1013_vm4, %v4944_v51, %v1012_v23  ;;  %vm1015_vm14 = vcmp.eq.f32.partialorder %v4944_v51, 0.0  ;;  %v1680_v24 = vsel %vm1231_vm3, %v1679_v54, %v1675_v58  ;;  %v1703_v43 = vrot.slane %v5021_v57, %v4169_v60  ;;  %v5275_v58 = vld [vmem:[%s3640_s20 + $0x158] sm:$0xff] }
 0x187   : > { %v1010_v10 = vsel %vm1008_vm5, %v1009_v25, %v1007_v31  ;;  %v1016_v29 = vand.u32 2147483648, %v4944_v51  ;;  %v1685_v38 = vsel %vm6039_vm15, %v1684_v40, %v1680_v24  ;;  %v1694_v3 = vsel %vm1224_vm2, %v1693_v12, %v1689_v30  ;;  %v5293_v24 = vld [vmem:[%s5864_s1 + $0x30] sm:$0xff]  ;;  %vm6053_vm15 = vmmov %vm6043_vm0 }
 0x188   : > { %v1699_v23 = vsel %vm1231_vm3, %v1698_v4, %v1694_v3  ;;  %v1708_v32 = vrot.slane %v5027_v26, %v4112_v33  ;;  %v1712_v57 = vrot.slane %v5043_v19, %v4116_v27  ;;  %v1717_v47 = vrot.slane %v5049_v56, %v4131_v21  ;;  %v5221_v6 = vpop.xlane.xlu1 %1145 }
 0x189   : > { %v1017_v31 = vsel %vm1015_vm14, %v1016_v29, %v1014_v52  ;;  %v1704_v51 = vsel %vm6040_vm10, %v1703_v43, %v1699_v23  ;;  %v1722_v20 = vrot.slane %v5072_v28, %v4169_v60  ;;  %v1727_v0 = vrot.slane %v5076_v49, %v4112_v33  ;;  %v5288_v52 = vld [vmem:[%s3640_s20 + $0x130] sm:$0xff]  ;;  %v5303_v29 = vld [vmem:[%s5864_s1 + $0x38] sm:$0xff]  ;;  %v5309_v23 = vld [vmem:[%s3640_s20 + $0x160] sm:$0xff] }
 0x18a   : > { %v1713_v37 = vsel %vm1224_vm2, %v1712_v57, %v1708_v32  ;;  %v1731_v26 = vrot.slane %v5083_v50, %v4116_v27  ;;  %v1736_v19 = vrot.slane %v5099_v62, %v4131_v21  ;;  %v1741_v56 = vrot.slane %v5101_v42, %v4169_v60  ;;  %v5234_v62 = vpop.xlane.xlu0 %1151  ;;  %v5314_v32 = vld [vmem:[%s5864_s1 + $0x20] sm:$0xff] }
 0x18b   : > { %v1474_v7 = vrot.slane %v5089_v61, %v4169_v60  ;;  %v1718_v28 = vsel %vm1231_vm3, %v1717_v47, %v1713_v37  ;;  %v1746_v49 = vrot.slane %v5121_v63, %v4112_v33  ;;  %v1750_v9 = vrot.slane %v1003_v41, %v4116_v27  ;;  %v5319_v47 = vld [vmem:[%s3640_s20 + $0x168] sm:$0xff] }
 0x18c   : > { %v5232_v50 = vsel %vm6041_vm6, %v1436_v34, %v5033_v15  ;;  %v1723_v61 = vsel %vm6042_vm7, %v1722_v20, %v1718_v28  ;;  %v1732_v42 = vsel %vm1224_vm2, %v1731_v26, %v1727_v0  ;;  %v1755_v11 = vrot.slane %v1010_v10, %v4131_v21  ;;  %v5255_v25 = vpop.xlane.xlu1 %1160  ;;  %v5298_v10 = vld [vmem:[%s3640_s20 + $0x138] sm:$0xff] }
 0x18d   : > { %v1479_v63 = vrot.slane %v5056_v5, %v4112_v33  ;;  %v1737_v46 = vsel %vm1231_vm3, %v1736_v19, %v1732_v42  ;;  %v1751_v41 = vsel %vm1224_vm2, %v1750_v9, %v1746_v49  ;;  %v1760_v2 = vrot.slane %v1017_v31, %v4169_v60  ;;  %v5324_v31 = vld [vmem:[%s5864_s1 + $0x28] sm:$0xff]  ;;  %v5333_v19 = vld [vmem:[%s3640_s20 + $0x180] sm:$0xff] }
 0x18e   : > { %v1470_v15 = vsel %vm1231_vm3, %v1469_v22, %v5065_v55  ;;  %v1742_v34 = vsel %vm6043_vm0, %v1741_v56, %v1737_v46  ;;  %v1756_v14 = vsel %vm1231_vm3, %v1755_v11, %v1751_v41  ;;  %vm6044_vm8 = vcmask 1041409   ;;  %v5261_v22 = vpop.xlane.xlu0 %1154  ;;  %v3281_v56 = vld [vmem:[%s5864_s1] sm:$0xff]  ;;  %v5346_v42 = vld [vmem:[%s3640_s20 + $0x188] sm:$0xff]  ;;  %v5354_v41 = vld [vmem:[%s3640_s20 + $0x190] sm:$0xff] }
 0x18f   : > { %v1762_v5 = vsel %vm6044_vm8, %v1647_v48, %v1628_v45  ;;  %v1475_v44 = vsel %vm6045_vm13, %v1474_v7, %v1470_v15  ;;  %v1483_v54 = vrot.slane %v5097_v36, %v4116_v27  ;;  %v1761_v40 = vsel %vm6046_vm1, %v1760_v2, %v1756_v14  ;;  %v5265_v48 = vld [vmem:[%s3640_s20 + $0x150] sm:$0xff]  ;;  %v3283_v11 = vld [vmem:[%s5864_s1 + $0x8] sm:$0xff]  ;;  %v5359_v15 = vld [vmem:[%s3640_s20 + $0x198] sm:$0xff] }
 0x190   : > { %vm6047_vm5 = vcmask 1042434   ;;  %v1488_v55 = vrot.slane %v5129_v17, %v4131_v21  ;;  %vm6048_vm9 = vcmask 1043459   ;;  %v5270_v36 = vld [vmem:[%s5864_s1 + $0x10] sm:$0xff]  ;;  %v5280_v17 = vld [vmem:[%s5864_s1 + $0x18] sm:$0xff]  ;;  %v1493_v12 = vrot.slane %v5163_v8, %v4169_v60  ;;  %v5329_v0 = vpop.xlane.xlu1 %1157  ;;  %vm6054_vm10 = vmmov %vm6044_vm8 }
 0x191   : > { %v1763_v13 = vsel %vm6047_vm5, %v1666_v39, %v1762_v5  ;;  %v2039_v30 = vmul.f32 %v5270_v36, %v5265_v48  ;;  %v2040_v39 = vmul.f32 %v5280_v17, %v5275_v58  ;;  %vm6049_vm12 = vcmask 1044484   ;;  %v5364_v14 = vld [vmem:[%s3640_s20 + $0x170] sm:$0xff]  ;;  %vm6055_vm6 = vmmov %vm6047_vm5 }
 0x192   : > { %v1764_v45 = vsel %vm6048_vm9, %v1685_v38, %v1763_v13  ;;  %v2035_v43 = vmul.f32 %v5293_v24, %v5288_v52  ;;  %v2036_v8 = vmul.f32 %v5303_v29, %v5298_v10  ;;  %vm6050_vm11 = vcmask 1045509   ;;  %v5340_v49 = vpop.xlane.xlu0 %1163  ;;  %vm6056_vm7 = vmmov %vm6048_vm9 }
 0x193   : > { %v1765_v4 = vsel %vm6049_vm12, %v1704_v51, %v1764_v45  ;;  %v2124_v3 = vadd.f32 %v2040_v39, %v2039_v30  ;;  %v2041_v57 = vmul.f32 %v5314_v32, %v5309_v23  ;;  %v2042_v51 = vmul.f32 %v5324_v31, %v5319_v47  ;;  %vm6057_vm8 = vmmov %vm6043_vm0 }
 0x194   : > { %v1766_v38 = vsel %vm6050_vm11, %v1723_v61, %v1765_v4  ;;  %v1484_v20 = vsel %vm1224_vm2, %v1483_v54, %v1479_v63  ;;  %vm6051_vm4 = vcmask 1046534   ;;  %v2118_v26 = vadd.f32 %v2036_v8, %v2035_v43  ;;  %v5396_v8 = vld [vmem:[%s3640_s20 + $0x1a8] sm:$0xff]  ;;  %vm6059_vm13 = vmmov %vm6043_vm0 }
 0x195   : > { %v1767_v37 = vsel %vm6051_vm4, %v1742_v34, %v1766_v38  ;;  %v2045_v7 = vmul.f32 %v3281_v56, %v5333_v19  ;;  %v1489_v28 = vsel %vm1231_vm3, %v1488_v55, %v1484_v20  ;;  %vm6052_vm14 = vcmask 1047559   ;;  %2125 = vadd.xlane.f32.xlu0 %v2124_v3  ;;  %v5374_v55 = vld [vmem:[%s3640_s20 + $0x178] sm:$0xff]  ;;  %v5403_v3 = vld [vmem:[%s3640_s20 + $0x1c0] sm:$0xff]  ;;  %vm6061_vm1 = vmmov %vm6049_vm12 }
 0x196   : > { %v5343_v9 = vsel %vm6052_vm14, %v1761_v40, %v1767_v37  ;;  %v2127_v61 = vadd.f32 %v2042_v51, %v2041_v57  ;;  %v2046_v63 = vmul.f32 %v3283_v11, %v5346_v42  ;;  %v1494_v46 = vsel %vm6053_vm15, %v1493_v12, %v1489_v28  ;;  %2119 = vadd.xlane.f32.xlu1 %v2118_v26  ;;  %v1167_v4 = vpop.xlane.xlu0 %1166  ;;  %v5407_v51 = vld [vmem:[%s3640_s20 + $0x1c8] sm:$0xff]  ;;  %vm6062_vm5 = vmmov %vm6050_vm11 }
 0x197   : > { %v2047_v2 = vmul.f32 %v5354_v41, %v5270_v36  ;;  %v2048_v34 = vmul.f32 %v5359_v15, %v5280_v17  ;;  %v2043_v5 = vmul.f32 %v5364_v14, %v5293_v24  ;;  %v1571_v54 = vsel %vm6054_vm10, %v5095_v59, %v5232_v50  ;;  %vm6063_vm9 = vmmov %vm6043_vm0 }
 0x198   : > { %v1502_v40 = vrot.slane %v5172_v18, %v4116_v27  ;;  %v2133_v13 = vadd.f32 %v2046_v63, %v2045_v7  ;;  %v2044_v45 = vmul.f32 %v5374_v55, %v5303_v29  ;;  %v1572_v30 = vsel %vm6055_vm6, %v1475_v44, %v1571_v54  ;;  %v5385_v18 = vpop.xlane.xlu1 %1172  ;;  %v5391_v44 = vld [vmem:[%s3640_s20 + $0x1a0] sm:$0xff]  ;;  %vm6064_vm12 = vmmov %vm6051_vm4 }
 0x199   : > { %v1498_v39 = vrot.slane %v5119_v1, %v4112_v33  ;;  %v1507_v12 = vrot.slane %v5198_v35, %v4131_v21  ;;  %v1521_v59 = vrot.slane %v5234_v62, %v4116_v27  ;;  %v5388_v50 = vsel %vm6056_vm7, %v1494_v46, %v1572_v30  ;;  %2128 = vadd.xlane.f32.xlu0 %v2127_v61  ;;  %vm6065_vm11 = vmmov %vm6052_vm14 }
 0x19a   : > { %v2136_v43 = vadd.f32 %v2048_v34, %v2047_v2  ;;  %v2049_v1 = vmul.f32 %v5391_v44, %v5314_v32  ;;  %v2050_v35 = vmul.f32 %v5396_v8, %v5324_v31  ;;  %v1517_v62 = vrot.slane %v5191_v53, %v4112_v33  ;;  %2134 = vadd.xlane.f32.xlu1 %v2133_v13  ;;  %v1176_v46 = vpop.xlane.xlu0 %1175  ;;  %v5425_v2 = vld [vmem:[%s3640_s20 + $0x1d0] sm:$0xff]  ;;  %v5430_v34 = vld [vmem:[%s3640_s20 + $0x1d8] sm:$0xff]  ;;  %vm6070_vm7 = vmmov %vm6043_vm0 }
 0x19b   : > { %v2130_v38 = vadd.f32 %v2044_v45, %v2043_v5  ;;  %v2053_v57 = vmul.f32 %v5403_v3, %v3281_v56  ;;  %v2054_v20 = vmul.f32 %v5407_v51, %v3283_v11  ;;  %v1503_v37 = vsel %vm1224_vm2, %v1502_v40, %v1498_v39  ;;  %v5436_v40 = vld [vmem:[%s3640_s20 + $0x1b0] sm:$0xff]  ;;  %v5441_v13 = vld [vmem:[%s3640_s20 + $0x1b8] sm:$0xff] }
 0x19c   : > { %v1512_v26 = vrot.slane %v5221_v6, %v4169_v60  ;;  %v1526_v53 = vrot.slane %v5261_v22, %v4131_v21  ;;  %v1540_v7 = vrot.slane %v5340_v49, %v4116_v27  ;;  %v1508_v28 = vsel %vm1231_vm3, %v1507_v12, %v1503_v37  ;;  %v1170_v63 = vpop.xlane.xlu1 %1169 }
 0x19d   : > { %v1522_v56 = vsel %vm1224_vm2, %v1521_v59, %v1517_v62  ;;  %v1531_v61 = vrot.slane %v5329_v0, %v4169_v60  ;;  %v1545_v11 = vrot.slane %v1167_v4, %v4131_v21  ;;  %v1536_v6 = vrot.slane %v5255_v25, %v4112_v33  ;;  %2137 = vadd.xlane.f32.xlu0 %v2136_v43 }
 0x19e   : > { %v2139_v22 = vadd.f32 %v2050_v35, %v2049_v1  ;;  %v2055_v49 = vmul.f32 %v5425_v2, %v5270_v36  ;;  %v2056_v0 = vmul.f32 %v5430_v34, %v5280_v17  ;;  %v1550_v5 = vrot.slane %v1170_v63, %v4169_v60  ;;  %2131 = vadd.xlane.f32.xlu1 %v2130_v38  ;;  %v5454_v1 = vld [vmem:[%s3640_s20 + $0x1e0] sm:$0xff]  ;;  %v1179_v62 = vpop.xlane.xlu0 %1178 }
 0x19f   : > { %v2145_v54 = vadd.f32 %v2054_v20, %v2053_v57  ;;  %v2051_v25 = vmul.f32 %v5436_v40, %v5293_v24  ;;  %v2052_v36 = vmul.f32 %v5441_v13, %v5303_v29  ;;  %v1513_v45 = vsel %vm6043_vm0, %v1512_v26, %v1508_v28  ;;  %v5460_v20 = vld [vmem:[%s3640_s20 + $0x1e8] sm:$0xff]  ;;  %v5472_v28 = vld [vmem:[%s3640_s20 + $0x1f8] sm:$0xff] }
 0x1a0   : > { %v1527_v17 = vsel %vm1231_vm3, %v1526_v53, %v1522_v56  ;;  %v1541_v30 = vsel %vm1224_vm2, %v1540_v7, %v1536_v6  ;;  %v1559_v39 = vrot.slane %v1176_v46, %v4116_v27  ;;  %v1555_v59 = vrot.slane %v5385_v18, %v4112_v33  ;;  %v1182_v43 = vpop.xlane.xlu1 %1181  ;;  %v5465_v18 = vld [vmem:[%s3640_s20 + $0x1f0] sm:$0xff]  ;;  %6060 = vst [vmem:[#allocation32_spill] sm:$0xff] %v5472_v28 }
 0x1a1   : > { %v1532_v12 = vsel %vm6057_vm8, %v1531_v61, %v1527_v17  ;;  %v1546_v4 = vsel %vm1231_vm3, %v1545_v11, %v1541_v30  ;;  %v2057_v35 = vmul.f32 %v5454_v1, %v5314_v32  ;;  %v1569_v38 = vrot.slane %v1182_v43, %v4169_v60  ;;  %2140 = vadd.xlane.f32.xlu0 %v2139_v22 }
 0x1a2   : > { %v2148_v57 = vadd.f32 %v2056_v0, %v2055_v49  ;;  %v2058_v37 = vmul.f32 %v5460_v20, %v5324_v31  ;;  %6058 = vst [vmem:[#allocation33_spill] sm:$0xff] %v5465_v18  ;;  %v2059_v26 = vmul.f32 %v5465_v18, %v5293_v24  ;;  %v1551_v53 = vsel %vm6059_vm13, %v1550_v5, %v1546_v4  ;;  %v2063_v0 = vpop.xlane.xlu0 %2062  ;;  %v2157_v5 = vld [vmem:[%s5867_s4] sm:$0xff]  ;;  %vm6072_vm13 = vmmov %vm6043_vm0 }
 0x1a3   : > { %v1564_v7 = vrot.slane %v1179_v62, %v4131_v21  ;;  %2146 = vadd.xlane.f32.xlu1 %v2145_v54  ;;  %v2142_v32 = vadd.f32 %v2052_v36, %v2051_v25  ;;  %v2060_v56 = vmul.f32 %v5472_v28, %v5303_v29  ;;  %v1574_v61 = vsel %vm6061_vm1, %v1513_v45, %v5388_v50  ;;  %v1863_v29 = vld [vmem:[%s5866_s3] sm:$0x3]  ;;  %v2158_v54 = vld [vmem:[%s5867_s4 + $0x8] sm:$0xff] }
 0x1a4   : > { %v1560_v31 = vsel %vm1224_vm2, %v1559_v39, %v1555_v59  ;;  %v1575_v11 = vsel %vm6062_vm5, %v1532_v12, %v1574_v61  ;;  %v2151_v46 = vadd.f32 %v2058_v37, %v2057_v35  ;;  %vm1874_vm4 = vcmask 1041408   ;;  %v2066_v25 = vpop.xlane.xlu1 %2065  ;;  %v2159_v39 = vld [vmem:[%s5867_s4 + $0x10] sm:$0xff]  ;;  %vm6074_vm5 = vmmov %vm6043_vm0 }
 0x1a5   : > { %v1565_v24 = vsel %vm1231_vm3, %v1564_v7, %v1560_v31  ;;  %v1576_v6 = vsel %vm6064_vm12, %v1551_v53, %v1575_v11  ;;  %2149 = vadd.xlane.f32.xlu0 %v2148_v57  ;;  %v2154_v49 = vadd.f32 %v2060_v56, %v2059_v26  ;;  %vm6066_vm14 = vcmask 261120   ;;  %3066 = vmatpush3.msk.msra.mxu1 %vm1874_vm4, %v1863_v29  ;;  %vm6076_vm12 = vmmov %vm6043_vm0 }
 0x1a6   : > { %v1570_v63 = vsel %vm6063_vm9, %v1569_v38, %v1565_v24  ;;  %vm6067_vm15 = vmmov 0   ;;  %v6068_v50 = vmov 0.0|0.0   ;;  %vm6069_vm10 = vmmov %vm6066_vm14  ;;  %vm1864_vm6 = vcmask 15360   ;;  %v2075_v12 = vpop.xlane.xlu0 %2074 }
 0x1a7   : > { %v1577_v22 = vsel %vm6065_vm11, %v1570_v63, %v1576_v6  ;;  %2143 = vadd.xlane.f32.xlu1 %v2142_v32  ;;  %3098 = vmatprep.subr.bf16.mxu1 %v6068_v50  ;;  %v3099_v45 = vpack.c.bf16 %v2158_v54, %v2157_v5  ;;  %v2196_v29 = vrot.slane %v2063_v0, %v4112_v33  ;;  %vm6071_vm8 = vcmask 1041409  }
 0x1a8   : > { %3060 = vmatmul.mubr.msk.f32.gmra.mrb[2].mxu0 %vm6066_vm14, %v1577_v22  ;;  %v2078_v4 = vpop.xlane.xlu1 %2077  ;;  %v2215_v5 = vrot.slane %v2075_v12, %v4112_v33  ;;  %vm6073_vm1 = vcmask 1042434   ;;  %vm6075_vm9 = vcmask 1043459   ;;  %vm6077_vm11 = vcmask 1044484   ;;  %vm6078_vm14 = vmmov %vm6043_vm0 }
 0x1a9   : > { %3062 = vmatprep.mubr.msk.f32.mxu0 %vm6067_vm15, %v6012_v16  ;;  %2152 = vadd.xlane.f32.xlu0 %v2151_v46  ;;  %v2219_v54 = vrot.slane %v2078_v4, %v4116_v27 }
 0x1aa   : > { %v2069_v43 = vpop.xlane.xlu0 %2068 }
 0x1ab   : > { %2155 = vadd.xlane.f32.xlu1 %v2154_v49  ;;  %v2220_v0 = vsel %vm1224_vm2, %v2219_v54, %v2215_v5 }
 0x1ac   : > { %3063 = vmatmul.mubr.msk.f32.gmra.mrb[4].mxu0 %vm6069_vm10, %v5343_v9  ;;  %v2160_v9 = vld [vmem:[%s5867_s4 + $0x18] sm:$0xff]  ;;  %v2081_v35 = vpop.xlane.xlu1 %2080  ;;  %vm6079_vm10 = vcmask 1045509  }
 0x1ad   : > { %v3102_v59 = vpack.c.bf16 %v2160_v9, %v2159_v39 }
 0x1ae   : > { %v2087_v62 = vpop.xlane.xlu0 %2086 }
 0x1b0   : > { %v2090_v38 = vpop.xlane.xlu1 %2089 }
 0x1b1   : > { %v2238_v39 = vrot.slane %v2090_v38, %v4116_v27 }
 0x1b2   : > { %v2072_v57 = vpop.xlane.xlu0 %2071 }
 0x1b3   : > { %v2210_v12 = vrot.slane %v2072_v57, %v4169_v60 }
 0x1b4   : > { %v2084_v37 = vpop.xlane.xlu1 %2083 }
 0x1b6   : > { %v2093_v26 = vpop.xlane.xlu0 %2092 }
 0x1b7   : > { %v2243_v4 = vrot.slane %v2093_v26, %v4131_v21 }
 0x1b8   : > { %v2099_v53 = vpop.xlane.xlu1 %2098 }
 0x1b9   : > { %v2253_v28 = vrot.slane %v2099_v53, %v4112_v33 }
 0x1ba   : > { %v2102_v7 = vpop.xlane.xlu0 %2101 }
 0x1c1   : > { %v2096_v32 = vpop.xlane.xlu1 %2095 }
 0x1cc   : > { %v2105_v56 = vpop.xlane.xlu0 %2104 }
 0x1ec   : > { %v2111_v61 = vpop.xlane.xlu1 %2110 }
 0x1ef   : > { %v2114_v31 = vpop.xlane.xlu0 %2113 }
 0x1f0   : > { %v2276_v57 = vrot.slane %v2114_v31, %v4116_v27 }
 0x1f4   : > { %v2108_v11 = vpop.xlane.xlu1 %2107  ;;  %v2117_v24 = vpop.xlane.xlu0 %2116 }
 0x1f8   : > { %v2123_v63 = vpop.xlane.xlu1 %2122 }
 0x21d   : > { %v1846_v36 = vpop.f32.mrb[0].mxu0 }
 0x21e   : > { %v1860_v17 = vmax.f32 %v1846_v36, 0.0  ;;  %v3058_v30 = vpop.f32.mrb[1].mxu0 }
 0x21f   : > { %v2234_v30 = vrot.slane %v2087_v62, %v4112_v33 }
 0x220   : > { %3068 = vmatmul.mubr.msk.f32.vlgmr.msra.gmra.mrb[0].mxu1 %vm1864_vm6, %v1860_v17  ;;  %v2224_v17 = vrot.slane %v2081_v35, %v4131_v21 }
 0x221   : > { %3100 = vmatpush3.bf16.msra.mxu1 %v3099_v45  ;;  %3070 = vmatprep.mubr.msk.f32.mxu1 %vm6067_vm15, %v6012_v16  ;;  %v2205_v45 = vrot.slane %v2069_v43, %v4131_v21  ;;  %v2257_v43 = vrot.slane %v2102_v7, %v4116_v27  ;;  %v2239_v18 = vsel %vm1224_vm2, %v2238_v39, %v2234_v30 }
 0x222   : > { %3101 = vmatprep.subr.bf16.mxu1 %v6068_v50  ;;  %v2126_v6 = vpop.xlane.xlu0 %2125  ;;  %v2200_v50 = vrot.slane %v2066_v25, %v4116_v27  ;;  %v2229_v25 = vrot.slane %v2084_v37, %v4169_v60  ;;  %v2225_v38 = vsel %vm1231_vm3, %v2224_v17, %v2220_v0  ;;  %v2272_v37 = vrot.slane %v2111_v61, %v4112_v33 }
 0x223   : > { %v2120_v46 = vpop.xlane.xlu1 %2119  ;;  %v2244_v5 = vsel %vm1231_vm3, %v2243_v4, %v2239_v18  ;;  %v2258_v54 = vsel %vm1224_vm2, %v2257_v43, %v2253_v28  ;;  %v2281_v17 = vrot.slane %v2117_v24, %v4131_v21 }
 0x224   : > { %v2230_v7 = vsel %vm6043_vm0, %v2229_v25, %v2225_v38  ;;  %v2286_v18 = vrot.slane %v2120_v46, %v4169_v60 }
 0x225   : > { %3103 = vmatpush3.bf16.msra.mxu1 %v3102_v59  ;;  %v2201_v59 = vsel %vm1224_vm2, %v2200_v50, %v2196_v29  ;;  %v2248_v29 = vrot.slane %v2096_v32, %v4169_v60  ;;  %v2262_v50 = vrot.slane %v2105_v56, %v4131_v21  ;;  %v2291_v32 = vrot.slane %v2123_v63, %v4112_v33 }
 0x226   : > { %3087 = vmatprep.subr.mxu1 %v6012_v16  ;;  %v2129_v22 = vpop.xlane.xlu0 %2128  ;;  %v2206_v62 = vsel %vm1231_vm3, %v2205_v45, %v2201_v59  ;;  %v2267_v45 = vrot.slane %v2108_v11, %v4169_v60  ;;  %v2295_v56 = vrot.slane %v2126_v6, %v4116_v27  ;;  %v2277_v59 = vsel %vm1224_vm2, %v2276_v57, %v2272_v37 }
 0x227   : > { %v2135_v49 = vpop.xlane.xlu1 %2134  ;;  %v2211_v53 = vsel %vm6070_vm7, %v2210_v12, %v2206_v62  ;;  %v2249_v30 = vsel %vm6072_vm13, %v2248_v29, %v2244_v5  ;;  %v2263_v39 = vsel %vm1231_vm3, %v2262_v50, %v2258_v54  ;;  %v2300_v28 = vrot.slane %v2129_v22, %v4131_v21  ;;  %vm6080_vm7 = vmmov %vm6043_vm0 }
 0x228   : > { %v2345_v31 = vsel %vm6071_vm8, %v2230_v7, %v2211_v53  ;;  %v2310_v11 = vrot.slane %v2135_v49, %v4112_v33  ;;  %v2268_v0 = vsel %vm6074_vm5, %v2267_v45, %v2263_v39  ;;  %v2282_v25 = vsel %vm1231_vm3, %v2281_v17, %v2277_v59  ;;  %vm6082_vm8 = vmmov %vm6074_vm5 }
 0x229   : > { %v2346_v6 = vsel %vm6073_vm1, %v2249_v30, %v2345_v31  ;;  %v2296_v12 = vsel %vm1224_vm2, %v2295_v56, %v2291_v32  ;;  %v2287_v50 = vsel %vm6076_vm12, %v2286_v18, %v2282_v25  ;;  %vm6081_vm0 = vcmask 1046534  }
 0x22a   : > { %v2138_v36 = vpop.xlane.xlu0 %2137  ;;  %v2347_v29 = vsel %vm6075_vm9, %v2268_v0, %v2346_v6  ;;  %v2301_v37 = vsel %vm1231_vm3, %v2300_v28, %v2296_v12  ;;  %vm6084_vm13 = vcmask 261120  }
 0x22b   : > { %v2132_v9 = vpop.xlane.xlu1 %2131  ;;  %v2314_v24 = vrot.slane %v2138_v36, %v4116_v27 }
 0x22c   : > { %v2305_v4 = vrot.slane %v2132_v9, %v4169_v60 }
 0x22d   : > { %v2315_v57 = vsel %vm1224_vm2, %v2314_v24, %v2310_v11 }
 0x22e   : > { %v2141_v35 = vpop.xlane.xlu0 %2140  ;;  %v2306_v53 = vsel %vm6078_vm14, %v2305_v4, %v2301_v37 }
 0x22f   : > { %v2319_v46 = vrot.slane %v2141_v35, %v4131_v21 }
 0x230   : > { %v2147_v26 = vpop.xlane.xlu1 %2146 }
 0x231   : > { %v2329_v22 = vrot.slane %v2147_v26, %v4112_v33  ;;  %v2320_v7 = vsel %vm1231_vm3, %v2319_v46, %v2315_v57 }
 0x232   : > { %v2150_v61 = vpop.xlane.xlu0 %2149 }
 0x233   : > { %v2333_v49 = vrot.slane %v2150_v61, %v4116_v27  ;;  %v2348_v27 = vsel %vm6077_vm11, %v2287_v50, %v2347_v29 }
 0x234   : > { %v2144_v63 = vpop.xlane.xlu1 %2143  ;;  %v2349_v17 = vsel %vm6079_vm10, %v2306_v53, %v2348_v27 }
 0x235   : > { %v2324_v9 = vrot.slane %v2144_v63, %v4169_v60  ;;  %v2334_v5 = vsel %vm1224_vm2, %v2333_v49, %v2329_v22  ;;  %vm6083_vm2 = vcmask 1047559   ;;  %v6087_v49 = vld [vmem:[#allocation35_spill] sm:$0xff] }
 0x236   : > { %v2153_v62 = vpop.xlane.xlu0 %2152  ;;  %v2529_v29 = vsub.s32 1, %v6087_v49  ;;  %v2548_v37 = vsub.s32 2, %v6087_v49  ;;  %v2605_v27 = vsub.s32 5, %v6087_v49 }
 0x237   : > { %v2338_v35 = vrot.slane %v2153_v62, %v4131_v21  ;;  %v2325_v21 = vsel %vm6080_vm7, %v2324_v9, %v2320_v7  ;;  %v2510_v62 = vsub.s32 0, %v6087_v49  ;;  %v2567_v9 = vsub.s32 3, %v6087_v49 }
 0x238   : > { %v2156_v33 = vpop.xlane.xlu1 %2155  ;;  %v2350_v61 = vsel %vm6081_vm0, %v2325_v21, %v2349_v17  ;;  %v2624_v7 = vsub.s32 6, %v6087_v49 }
 0x239   : > { %v2343_v45 = vrot.slane %v2156_v33, %v4169_v60  ;;  %v2339_v32 = vsel %vm1231_vm3, %v2338_v35, %v2334_v5  ;;  %v2425_v60 = vld [vmem:[%s5868_s5] sm:$0x3]  ;;  %vm6085_vm3 = vmmov %vm6084_vm13  ;;  %v2586_v33 = vsub.s32 4, %v6087_v49 }
 0x23b   : > { %v2344_v31 = vsel %vm6082_vm8, %v2343_v45, %v2339_v32  ;;  %v1977_v32 = vstv %s1976_s17 }
 0x23c   : > { %v2351_v30 = vsel %vm6083_vm2, %v2344_v31, %v2350_v61 }
 0x27b   : > { %v1851_v43 = vpop.f32.mrb[2].mxu0 }
 0x27c   : > { %v1861_v36 = vmax.f32 %v1851_v43, 0.0  ;;  %v3061_v38 = vpop.f32.mrb[3].mxu0 }
 0x27e   : > { %3071 = vmatmul.mubr.msk.f32.gmra.mrb[0].mxu1 %vm1864_vm6, %v1861_v36 }
 0x27f   : > { %v1856_v26 = vpop.f32.mrb[4].mxu0  ;;  %3073 = vmatprep.mubr.msk.f32.mxu1 %vm6067_vm15, %v6012_v16 }
 0x280   : > { %v3064_v54 = vpop.f32.mrb[5].mxu0  ;;  %v1862_v56 = vmax.f32 %v1856_v26, 0.0 }
 0x281   : > { %v2643_v54 = vsub.s32 7, %v6087_v49 }
 0x286   : > { %3074 = vmatmul.mubr.msk.f32.gmra.mrb[0].mxu1 %vm1864_vm6, %v1862_v56  ;;  %v1980_v56 = vstv %s3014_s16 }
 0x287   : > { %3084 = vmatprep.mubr.msk.f32.mxu1 %vm6067_vm15, %v6012_v16 }
 0x28a   : > { %3085 = vmatmul.mubr.msk.f32.vlgmr.msra.gmra.mrb[2].mxu1 %vm6084_vm13, %v2351_v30 }
 0x28b   : > { %3089 = vmatprep.mubr.msk.f32.mxu1 %vm6067_vm15, %v6012_v16  ;;  %3088 = vmatpush3.msk.msra.mxu1 %vm1874_vm4, %v2425_v60  ;;  %vm6086_vm15 = vmmov %vm6085_vm3 }
 0x359   : > { %v1954_v39 = vpop.f32.mrb[0].mxu1 }
 0x35a   : > { %v3012_v59 = vmul.f32 -1.442695, %v1954_v39  ;;  %v3075_v18 = vpop.f32.mrb[1].mxu1 }
 0x35c   : > { %3236 = vpow2.f32 %v3012_v59 }
 0x35d   : > { %v2420_v28 = vpop.f32.mrb[2].mxu1 }
 0x35e   : > { %v2424_v11 = vmax.f32 %v2420_v28, 0.0  ;;  %v3086_v24 = vpop.f32.mrb[3].mxu1 }
 0x360   : > { %3090 = vmatmul.mubr.msk.f32.vlgmr.msra.gmra.mrb[4].mxu1 %vm1864_vm6, %v2424_v11 }
 0x366   : > { %v3237_v63 = vpop.eup %3236 }
 0x367   : > { %v1963_v6 = vadd.f32 1.0, %v3237_v63 }
 0x369   : > { %3238 = vrcp.f32 %v1963_v6  ;;  %v3300_v6 = vld [vmem:[%s3640_s20 + $0x10] sm:$0xff] }
 0x373   : > { %v3239_v0 = vpop.eup %3238 }
 0x374   : > { %v1971_v16 = vsel %vm6085_vm3, %v3239_v0, -inf  ;;  %v1966_v25 = vsel %vm6086_vm15, %v3239_v0, 0.0 }
 0x375   : > { %1972 = vmax.xlane.f32.xlu1 %v1971_v16  ;;  %1967 = vadd.xlane.f32.xlu0 %v1966_v25  ;;  %v3301_v16 = vld [vmem:[%s3640_s20 + $0x18] sm:$0xff] }
 0x402   : > { %v1968_v17 = vpop.xlane.xlu0 %1967  ;;  %v1973_v61 = vpop.xlane.xlu1 %1972 }
 0x403   : > { %v1970_v21 = vmul.f32 0.03125, %v1968_v17  ;;  %v1981_v30 = vmul.f32 %v1980_v56, %v1973_v61 }
 0x405   : > { %v1978_v31 = vmul.f32 %v1977_v32, %v1970_v21  ;;  %v3307_v21 = vld [vmem:[%s3640_s20 + $0x48] sm:$0xff] }
 0x407   : > { %v1982_v60 = vadd.f32 %v1981_v30, %v1978_v31 }
 0x409   : > { %v3015_v39 = vmul.f32 -1.442695, %v1982_v60 }
 0x433   : > { %v2498_v12 = vpop.f32.mrb[4].mxu1 }
 0x434   : > { %v3019_v4 = vmul.f32 -1.442695, %v2498_v12  ;;  %v3091_v43 = vpop.f32.mrb[5].mxu1  ;;  %v3302_v12 = vld [vmem:[%s3640_s20] sm:$0xff] }
 0x435   : > { %v3303_v43 = vld [vmem:[%s3640_s20 + $0x8] sm:$0xff] }
 0x436   : > { %3240 = vpow2.f32 %v3019_v4 }
 0x440   : > { %v3241_v46 = vpop.eup %3240 }
 0x441   : > { %v2505_v22 = vadd.f32 1.0, %v3241_v46 }
 0x443   : > { %3242 = vrcp.f32 %v2505_v22 }
 0x444   : > { %3244 = vpow2.f32 %v3015_v39 }
 0x44d   : > { %v3243_v36 = vpop.eup %3242 }
 0x44e   : > { %v2511_v38 = vrot.slane %v3243_v36, %v2510_v62  ;;  %v2530_v50 = vrot.slane %v3243_v36, %v2529_v29  ;;  %v2549_v57 = vrot.slane %v3243_v36, %v2548_v37  ;;  %v2568_v35 = vrot.slane %v3243_v36, %v2567_v9  ;;  %v3245_v59 = vpop.eup %3244 }
 0x44f   : > { %v2587_v26 = vrot.slane %v3243_v36, %v2586_v33  ;;  %v2606_v53 = vrot.slane %v3243_v36, %v2605_v27  ;;  %v2625_v5 = vrot.slane %v3243_v36, %v2624_v7  ;;  %v2644_v45 = vrot.slane %v3243_v36, %v2643_v54 }
 0x450   : > { %2517 = vbcast.lane.b32.xlu1 %v2511_v38, 264  ;;  %2513 = vbcast.lane.b32.xlu0 %v2511_v38, 256  ;;  %v1986_v18 = vadd.f32 1.0, %v3245_v59  ;;  %v3308_v59 = vld [vmem:[%s3640_s20 + $0x30] sm:$0xff] }
 0x452   : > { %3246 = vrcp.f32 %v1986_v18 }
 0x454   : > { %2521 = vbcast.lane.b32.xlu1 %v2511_v38, 272  ;;  %2532 = vbcast.lane.b32.xlu0 %v2530_v50, 256 }
 0x458   : > { %2525 = vbcast.lane.b32.xlu1 %v2511_v38, 280  ;;  %2540 = vbcast.lane.b32.xlu0 %v2530_v50, 272 }
 0x45c   : > { %2536 = vbcast.lane.b32.xlu1 %v2530_v50, 264  ;;  %2551 = vbcast.lane.b32.xlu0 %v2549_v57, 256  ;;  %v5614_v28 = vpop.eup %3246 }
 0x45d   : > { %v2728_v11 = vrot.slane %v5614_v28, %v2510_v62  ;;  %v5626_v62 = vrot.slane %v5614_v28, %v2529_v29  ;;  %v3305_v29 = vld [vmem:[%s3640_s20 + $0x28] sm:$0xff] }
 0x460   : > { %2544 = vbcast.lane.b32.xlu1 %v2530_v50, 280  ;;  %2559 = vbcast.lane.b32.xlu0 %v2549_v57, 272 }
 0x464   : > { %2555 = vbcast.lane.b32.xlu1 %v2549_v57, 264  ;;  %2570 = vbcast.lane.b32.xlu0 %v2568_v35, 256 }
 0x468   : > { %2563 = vbcast.lane.b32.xlu1 %v2549_v57, 280  ;;  %2578 = vbcast.lane.b32.xlu0 %v2568_v35, 272 }
 0x46c   : > { %2574 = vbcast.lane.b32.xlu1 %v2568_v35, 264  ;;  %2589 = vbcast.lane.b32.xlu0 %v2587_v26, 256 }
 0x470   : > { %2582 = vbcast.lane.b32.xlu1 %v2568_v35, 280  ;;  %2597 = vbcast.lane.b32.xlu0 %v2587_v26, 272 }
 0x474   : > { %2593 = vbcast.lane.b32.xlu1 %v2587_v26, 264  ;;  %2608 = vbcast.lane.b32.xlu0 %v2606_v53, 256 }
 0x478   : > { %2601 = vbcast.lane.b32.xlu1 %v2587_v26, 280  ;;  %2616 = vbcast.lane.b32.xlu0 %v2606_v53, 272  ;;  %v3304_v26 = vld [vmem:[%s3640_s20 + $0x20] sm:$0xff] }
 0x47c   : > { %2612 = vbcast.lane.b32.xlu1 %v2606_v53, 264  ;;  %2627 = vbcast.lane.b32.xlu0 %v2625_v5, 256 }
 0x480   : > { %2620 = vbcast.lane.b32.xlu1 %v2606_v53, 280  ;;  %2635 = vbcast.lane.b32.xlu0 %v2625_v5, 272 }
 0x484   : > { %2631 = vbcast.lane.b32.xlu1 %v2625_v5, 264  ;;  %2646 = vbcast.lane.b32.xlu0 %v2644_v45, 256 }
 0x488   : > { %2639 = vbcast.lane.b32.xlu1 %v2625_v5, 280  ;;  %2654 = vbcast.lane.b32.xlu0 %v2644_v45, 272 }
 0x48c   : > { %2650 = vbcast.lane.b32.xlu1 %v2644_v45, 264 }
 0x490   : > { %2658 = vbcast.lane.b32.xlu1 %v2644_v45, 280  ;;  %v3306_v45 = vld [vmem:[%s3640_s20 + $0x40] sm:$0xff] }
 0x4c2   : > { %v2518_v24 = vpop.permute.xlu1 %2517  ;;  %v2514_v63 = vpop.permute.xlu0 %2513 }
 0x4c3   : > { %v2662_v0 = vmul.f32 %v3300_v6, %v2518_v24  ;;  %v2663_v25 = vmul.f32 %v3301_v16, %v2518_v24  ;;  %v2660_v4 = vmul.f32 %v3302_v12, %v2514_v63  ;;  %v2661_v46 = vmul.f32 %v3303_v43, %v2514_v63  ;;  %v3309_v24 = vld [vmem:[%s3640_s20 + $0x38] sm:$0xff]  ;;  %v3310_v6 = vld [vmem:[%s3640_s20 + $0x60] sm:$0xff]  ;;  %v3311_v16 = vld [vmem:[%s3640_s20 + $0x68] sm:$0xff] }
 0x4c5   : > { %v2767_v22 = vadd.f32 %v2728_v11, %v2662_v0  ;;  %v2768_v36 = vadd.f32 %v2728_v11, %v2663_v25  ;;  %v2765_v38 = vadd.f32 %v2728_v11, %v2660_v4  ;;  %v2766_v50 = vadd.f32 %v2728_v11, %v2661_v46 }
 0x4c6   : > { %v2522_v57 = vpop.permute.xlu1 %2521  ;;  %v2533_v35 = vpop.permute.xlu0 %2532 }
 0x4c7   : > { %2831 = vst [vmem:[%s5630_s18 + $0x10] sm:$0xff] %v2767_v22  ;;  %2832 = vst [vmem:[%s5630_s18 + $0x18] sm:$0xff] %v2768_v36  ;;  %v2664_v53 = vmul.f32 %v3304_v26, %v2522_v57  ;;  %v2665_v5 = vmul.f32 %v3305_v29, %v2522_v57  ;;  %v2668_v17 = vmul.f32 %v3306_v45, %v2533_v35  ;;  %v3313_v57 = vld [vmem:[%s3640_s20 + $0x58] sm:$0xff]  ;;  %v3314_v26 = vld [vmem:[%s3640_s20 + $0x80] sm:$0xff] }
 0x4c8   : > { %2829 = vst [vmem:[%s5630_s18] sm:$0xff] %v2765_v38  ;;  %2830 = vst [vmem:[%s5630_s18 + $0x8] sm:$0xff] %v2766_v50  ;;  %v2669_v32 = vmul.f32 %v3307_v21, %v2533_v35  ;;  %v5655_v22 = vrot.slane %v5614_v28, %v2548_v37  ;;  %v3312_v50 = vld [vmem:[%s3640_s20 + $0x50] sm:$0xff]  ;;  %v3315_v37 = vld [vmem:[%s3640_s20 + $0x88] sm:$0xff] }
 0x4c9   : > { %v2769_v56 = vadd.f32 %v2728_v11, %v2664_v53  ;;  %v2770_v61 = vadd.f32 %v2728_v11, %v2665_v5  ;;  %v2773_v31 = vadd.f32 %v5626_v62, %v2668_v17 }
 0x4ca   : > { %v2774_v30 = vadd.f32 %v5626_v62, %v2669_v32  ;;  %v2526_v60 = vpop.permute.xlu1 %2525  ;;  %v2541_v39 = vpop.permute.xlu0 %2540 }
 0x4cb   : > { %2833 = vst [vmem:[%s5630_s18 + $0x20] sm:$0xff] %v2769_v56  ;;  %2834 = vst [vmem:[%s5630_s18 + $0x28] sm:$0xff] %v2770_v61  ;;  %v2666_v18 = vmul.f32 %v3308_v59, %v2526_v60  ;;  %v2667_v63 = vmul.f32 %v3309_v24, %v2526_v60  ;;  %v2672_v0 = vmul.f32 %v3310_v6, %v2541_v39  ;;  %v3316_v61 = vld [vmem:[%s3640_s20 + $0x70] sm:$0xff] }
 0x4cc   : > { %2837 = vst [vmem:[%s5630_s18 + $0x40] sm:$0xff] %v2773_v31  ;;  %2838 = vst [vmem:[%s5630_s18 + $0x48] sm:$0xff] %v2774_v30  ;;  %v2673_v25 = vmul.f32 %v3311_v16, %v2541_v39  ;;  %v3317_v30 = vld [vmem:[%s3640_s20 + $0x78] sm:$0xff]  ;;  %v3318_v39 = vld [vmem:[%s3640_s20 + $0xa0] sm:$0xff] }
 0x4cd   : > { %v2771_v12 = vadd.f32 %v2728_v11, %v2666_v18  ;;  %v2772_v4 = vadd.f32 %v2728_v11, %v2667_v63  ;;  %v2777_v43 = vadd.f32 %v5626_v62, %v2672_v0  ;;  %v3319_v18 = vld [vmem:[%s3640_s20 + $0xa8] sm:$0xff] }
 0x4ce   : > { %v2778_v46 = vadd.f32 %v5626_v62, %v2673_v25  ;;  %v2537_v36 = vpop.permute.xlu1 %2536  ;;  %v2552_v38 = vpop.permute.xlu0 %2551  ;;  %v5684_v25 = vrot.slane %v5614_v28, %v2567_v9  ;;  %v3323_v9 = vld [vmem:[%s3640_s20 + $0xc8] sm:$0xff] }
 0x4cf   : > { %2835 = vst [vmem:[%s5630_s18 + $0x30] sm:$0xff] %v2771_v12  ;;  %2836 = vst [vmem:[%s5630_s18 + $0x38] sm:$0xff] %v2772_v4  ;;  %v2670_v11 = vmul.f32 %v3312_v50, %v2537_v36  ;;  %v2671_v35 = vmul.f32 %v3313_v57, %v2537_v36  ;;  %v2676_v53 = vmul.f32 %v3314_v26, %v2552_v38 }
 0x4d0   : > { %2841 = vst [vmem:[%s5630_s18 + $0x60] sm:$0xff] %v2777_v43  ;;  %2842 = vst [vmem:[%s5630_s18 + $0x68] sm:$0xff] %v2778_v46  ;;  %v2677_v29 = vmul.f32 %v3315_v37, %v2552_v38  ;;  %v3320_v43 = vld [vmem:[%s3640_s20 + $0x90] sm:$0xff]  ;;  %v3321_v46 = vld [vmem:[%s3640_s20 + $0x98] sm:$0xff] }
 0x4d1   : > { %v2775_v5 = vadd.f32 %v5626_v62, %v2670_v11  ;;  %v2776_v45 = vadd.f32 %v5626_v62, %v2671_v35  ;;  %v2781_v17 = vadd.f32 %v5655_v22, %v2676_v53  ;;  %v3322_v38 = vld [vmem:[%s3640_s20 + $0xc0] sm:$0xff] }
 0x4d2   : > { %v2782_v21 = vadd.f32 %v5655_v22, %v2677_v29  ;;  %v2545_v32 = vpop.permute.xlu1 %2544  ;;  %v2560_v56 = vpop.permute.xlu0 %2559 }
 0x4d3   : > { %2839 = vst [vmem:[%s5630_s18 + $0x50] sm:$0xff] %v2775_v5  ;;  %2840 = vst [vmem:[%s5630_s18 + $0x58] sm:$0xff] %v2776_v45  ;;  %v2674_v31 = vmul.f32 %v3316_v61, %v2545_v32  ;;  %v2675_v60 = vmul.f32 %v3317_v30, %v2545_v32  ;;  %v2680_v59 = vmul.f32 %v3318_v39, %v2560_v56  ;;  %v3324_v5 = vld [vmem:[%s3640_s20 + $0xb0] sm:$0xff]  ;;  %v3326_v32 = vld [vmem:[%s3640_s20 + $0xe0] sm:$0xff] }
 0x4d4   : > { %2845 = vst [vmem:[%s5630_s18 + $0x80] sm:$0xff] %v2781_v17  ;;  %2846 = vst [vmem:[%s5630_s18 + $0x88] sm:$0xff] %v2782_v21  ;;  %v2681_v24 = vmul.f32 %v3319_v18, %v2560_v56  ;;  %v3325_v17 = vld [vmem:[%s3640_s20 + $0xb8] sm:$0xff]  ;;  %v3327_v61 = vld [vmem:[%s3640_s20 + $0xe8] sm:$0xff]  ;;  %v5713_v18 = vrot.slane %v5614_v28, %v2586_v33 }
 0x4d5   : > { %v2779_v63 = vadd.f32 %v5626_v62, %v2674_v31  ;;  %v2780_v6 = vadd.f32 %v5626_v62, %v2675_v60  ;;  %v2785_v0 = vadd.f32 %v5655_v22, %v2680_v59  ;;  %v3331_v33 = vld [vmem:[%s3640_s20 + $0x108] sm:$0xff] }
 0x4d6   : > { %v2786_v16 = vadd.f32 %v5655_v22, %v2681_v24  ;;  %v2556_v12 = vpop.permute.xlu1 %2555  ;;  %v2571_v4 = vpop.permute.xlu0 %2570 }
 0x4d7   : > { %2843 = vst [vmem:[%s5630_s18 + $0x70] sm:$0xff] %v2779_v63  ;;  %2844 = vst [vmem:[%s5630_s18 + $0x78] sm:$0xff] %v2780_v6  ;;  %v2678_v62 = vmul.f32 %v3320_v43, %v2556_v12  ;;  %v2679_v36 = vmul.f32 %v3321_v46, %v2556_v12  ;;  %v2684_v50 = vmul.f32 %v3322_v38, %v2571_v4  ;;  %v3328_v6 = vld [vmem:[%s3640_s20 + $0xd0] sm:$0xff]  ;;  %v3330_v12 = vld [vmem:[%s3640_s20 + $0x100] sm:$0xff] }
 0x4d8   : > { %2849 = vst [vmem:[%s5630_s18 + $0xa0] sm:$0xff] %v2785_v0  ;;  %2850 = vst [vmem:[%s5630_s18 + $0xa8] sm:$0xff] %v2786_v16  ;;  %v2685_v11 = vmul.f32 %v3323_v9, %v2571_v4  ;;  %v3329_v0 = vld [vmem:[%s3640_s20 + $0xd8] sm:$0xff] }
 0x4d9   : > { %v2783_v57 = vadd.f32 %v5655_v22, %v2678_v62  ;;  %v2784_v35 = vadd.f32 %v5655_v22, %v2679_v36  ;;  %v2789_v26 = vadd.f32 %v5684_v25, %v2684_v50 }
 0x4da   : > { %v2790_v53 = vadd.f32 %v5684_v25, %v2685_v11  ;;  %v2564_v37 = vpop.permute.xlu1 %2563  ;;  %v2579_v29 = vpop.permute.xlu0 %2578  ;;  %v3332_v11 = vld [vmem:[%s3640_s20 + $0xf0] sm:$0xff] }
 0x4db   : > { %2847 = vst [vmem:[%s5630_s18 + $0x90] sm:$0xff] %v2783_v57  ;;  %2848 = vst [vmem:[%s5630_s18 + $0x98] sm:$0xff] %v2784_v35  ;;  %v2682_v45 = vmul.f32 %v3324_v5, %v2564_v37  ;;  %v2683_v21 = vmul.f32 %v3325_v17, %v2564_v37  ;;  %v2688_v56 = vmul.f32 %v3326_v32, %v2579_v29  ;;  %v3333_v35 = vld [vmem:[%s3640_s20 + $0xf8] sm:$0xff] }
 0x4dc   : > { %2853 = vst [vmem:[%s5630_s18 + $0xc0] sm:$0xff] %v2789_v26  ;;  %2854 = vst [vmem:[%s5630_s18 + $0xc8] sm:$0xff] %v2790_v53  ;;  %v2689_v31 = vmul.f32 %v3327_v61, %v2579_v29  ;;  %v3334_v53 = vld [vmem:[%s3640_s20 + $0x120] sm:$0xff]  ;;  %v3335_v29 = vld [vmem:[%s3640_s20 + $0x128] sm:$0xff] }
 0x4dd   : > { %v2787_v30 = vadd.f32 %v5655_v22, %v2682_v45  ;;  %v2788_v60 = vadd.f32 %v5655_v22, %v2683_v21  ;;  %v2793_v39 = vadd.f32 %v5684_v25, %v2688_v56  ;;  %v2748_v56 = vrot.slane %v5614_v28, %v2605_v27 }
 0x4de   : > { %v2794_v59 = vadd.f32 %v5684_v25, %v2689_v31  ;;  %v2575_v24 = vpop.permute.xlu1 %2574  ;;  %v2590_v63 = vpop.permute.xlu0 %2589 }
 0x4df   : > { %2851 = vst [vmem:[%s5630_s18 + $0xb0] sm:$0xff] %v2787_v30  ;;  %2852 = vst [vmem:[%s5630_s18 + $0xb8] sm:$0xff] %v2788_v60  ;;  %v2686_v22 = vmul.f32 %v3328_v6, %v2575_v24  ;;  %v2687_v16 = vmul.f32 %v3329_v0, %v2575_v24  ;;  %v2692_v4 = vmul.f32 %v3330_v12, %v2590_v63  ;;  %v3336_v30 = vld [vmem:[%s3640_s20 + $0x110] sm:$0xff]  ;;  %v3337_v60 = vld [vmem:[%s3640_s20 + $0x118] sm:$0xff] }
 0x4e0   : > { %2857 = vst [vmem:[%s5630_s18 + $0xe0] sm:$0xff] %v2793_v39  ;;  %2858 = vst [vmem:[%s5630_s18 + $0xe8] sm:$0xff] %v2794_v59  ;;  %v2693_v43 = vmul.f32 %v3331_v33, %v2590_v63  ;;  %v3338_v59 = vld [vmem:[%s3640_s20 + $0x140] sm:$0xff]  ;;  %v3339_v63 = vld [vmem:[%s3640_s20 + $0x148] sm:$0xff]  ;;  %s2908_s20 = sshll.u32 %s5630_s18, 4  ;;  %s5817_s20 = int_to_ptr.vmem [resolvable:$true] %s2908_s20 }
 0x4e1   : > { %v2791_v62 = vadd.f32 %v5684_v25, %v2686_v22  ;;  %v2792_v46 = vadd.f32 %v5684_v25, %v2687_v16  ;;  %v2797_v36 = vadd.f32 %v5713_v18, %v2692_v4  ;;  %s3385_s6 = scalar_lea.vmem %s5817_s20, 8192  ;;  %p3392_p10 = scmp.lt.s32.totalorder %s5817_s20, %s3390_s15 }
 0x4e2   : > { %v2798_v38 = vadd.f32 %v5713_v18, %v2693_v43  ;;  %v2583_v50 = vpop.permute.xlu1 %2582  ;;  %v2598_v9 = vpop.permute.xlu0 %2597  ;;  %p3386_p5 = scmp.ne.s32.totalorder %s5817_s20, %s3385_s6  ;;  %p3393_p1 = scmp.lt.s32.totalorder %s3391_s21, %s3385_s6 }
 0x4e3   : > { %2855 = vst [vmem:[%s5630_s18 + $0xd0] sm:$0xff] %v2791_v62  ;;  %2856 = vst [vmem:[%s5630_s18 + $0xd8] sm:$0xff] %v2792_v46  ;;  %v2690_v57 = vmul.f32 %v3332_v11, %v2583_v50  ;;  %v2691_v26 = vmul.f32 %v3333_v35, %v2583_v50  ;;  %v2696_v37 = vmul.f32 %v3334_v53, %v2598_v9 }
 0x4e4   : > { %2861 = vst [vmem:[%s5630_s18 + $0x100] sm:$0xff] %v2797_v36  ;;  %2862 = vst [vmem:[%s5630_s18 + $0x108] sm:$0xff] %v2798_v38  ;;  %v2697_v5 = vmul.f32 %v3335_v29, %v2598_v9  ;;  %v2752_v11 = vrot.slane %v5614_v28, %v2624_v7  ;;  %p3387_p8 = pnand %p3386_p5, %p6090_p12  ;;  %p3394_p4 = por %p3393_p1, %p3392_p10 }
 0x4e5   : > { %v2795_v45 = vadd.f32 %v5684_v25, %v2690_v57  ;;  %v2796_v17 = vadd.f32 %v5684_v25, %v2691_v26  ;;  %v2801_v21 = vadd.f32 %v5713_v18, %v2696_v37 }
 0x4e6   : > { %v2802_v32 = vadd.f32 %v5713_v18, %v2697_v5  ;;  %v2594_v61 = vpop.permute.xlu1 %2593  ;;  %v2609_v31 = vpop.permute.xlu0 %2608  ;;  %p3388_p9 = pneg %p3387_p8 }
 0x4e7   : > { %2859 = vst [vmem:[%s5630_s18 + $0xf0] sm:$0xff] %v2795_v45  ;;  %2860 = vst [vmem:[%s5630_s18 + $0xf8] sm:$0xff] %v2796_v17  ;;  %v2694_v25 = vmul.f32 %v3336_v30, %v2594_v61  ;;  %v2695_v39 = vmul.f32 %v3337_v60, %v2594_v61  ;;  %v2700_v24 = vmul.f32 %v3338_v59, %v2609_v31 }
 0x4e8   : > { %2865 = vst [vmem:[%s5630_s18 + $0x120] sm:$0xff] %v2801_v21  ;;  %2866 = vst [vmem:[%s5630_s18 + $0x128] sm:$0xff] %v2802_v32  ;;  %v2701_v6 = vmul.f32 %v3339_v63, %v2609_v31  ;;  %v2756_v32 = vrot.slane %v5614_v28, %v2643_v54  ;;  %p3395_p11 = pnand %p3394_p4, %p3388_p9 }
 0x4e9   : > { %v2799_v27 = vadd.f32 %v5713_v18, %v2694_v25  ;;  %v2800_v22 = vadd.f32 %v5713_v18, %v2695_v39  ;;  %v2805_v0 = vadd.f32 %v2748_v56, %v2700_v24 }
 0x4ea   : > { %v2806_v16 = vadd.f32 %v2748_v56, %v2701_v6  ;;  %v2602_v12 = vpop.permute.xlu1 %2601  ;;  %v2617_v4 = vpop.permute.xlu0 %2616 }
 0x4eb   : > { %2863 = vst [vmem:[%s5630_s18 + $0x110] sm:$0xff] %v2799_v27  ;;  %2864 = vst [vmem:[%s5630_s18 + $0x118] sm:$0xff] %v2800_v22  ;;  %v2698_v33 = vmul.f32 %v5288_v52, %v2602_v12  ;;  %v2699_v43 = vmul.f32 %v5298_v10, %v2602_v12  ;;  %v2704_v62 = vmul.f32 %v5309_v23, %v2617_v4  ;;  %v6088_v27 = vld [vmem:[#allocation33_spill] sm:$0xff] }
 0x4ec   : > { %2869 = vst [vmem:[%s5630_s18 + $0x140] sm:$0xff] %v2805_v0  ;;  %2870 = vst [vmem:[%s5630_s18 + $0x148] sm:$0xff] %v2806_v16  ;;  %v2705_v46 = vmul.f32 %v5319_v47, %v2617_v4  ;;  %v6089_v0 = vld [vmem:[#allocation32_spill] sm:$0xff] }
 0x4ed   : > { %v2803_v36 = vadd.f32 %v5713_v18, %v2698_v33  ;;  %v2804_v38 = vadd.f32 %v5713_v18, %v2699_v43  ;;  %v2809_v50 = vadd.f32 %v2748_v56, %v2704_v62 }
 0x4ee   : > { %v2810_v9 = vadd.f32 %v2748_v56, %v2705_v46  ;;  %v2613_v57 = vpop.permute.xlu1 %2612  ;;  %v2628_v35 = vpop.permute.xlu0 %2627 }
 0x4ef   : > { %2867 = vst [vmem:[%s5630_s18 + $0x130] sm:$0xff] %v2803_v36  ;;  %2868 = vst [vmem:[%s5630_s18 + $0x138] sm:$0xff] %v2804_v38  ;;  %v2702_v52 = vmul.f32 %v5265_v48, %v2613_v57  ;;  %v2703_v10 = vmul.f32 %v5275_v58, %v2613_v57  ;;  %v2708_v23 = vmul.f32 %v5333_v19, %v2628_v35 }
 0x4f0   : > { %2873 = vst [vmem:[%s5630_s18 + $0x160] sm:$0xff] %v2809_v50  ;;  %2874 = vst [vmem:[%s5630_s18 + $0x168] sm:$0xff] %v2810_v9  ;;  %v2709_v47 = vmul.f32 %v5346_v42, %v2628_v35 }
 0x4f1   : > { %v2807_v18 = vadd.f32 %v2748_v56, %v2702_v52  ;;  %v2808_v7 = vadd.f32 %v2748_v56, %v2703_v10  ;;  %v2813_v26 = vadd.f32 %v2752_v11, %v2708_v23 }
 0x4f2   : > { %v2814_v53 = vadd.f32 %v2752_v11, %v2709_v47  ;;  %v2621_v37 = vpop.permute.xlu1 %2620  ;;  %v2636_v29 = vpop.permute.xlu0 %2635 }
 0x4f3   : > { %2871 = vst [vmem:[%s5630_s18 + $0x150] sm:$0xff] %v2807_v18  ;;  %2872 = vst [vmem:[%s5630_s18 + $0x158] sm:$0xff] %v2808_v7  ;;  %v2706_v48 = vmul.f32 %v5364_v14, %v2621_v37  ;;  %v2707_v58 = vmul.f32 %v5374_v55, %v2621_v37  ;;  %v2712_v19 = vmul.f32 %v5391_v44, %v2636_v29 }
 0x4f4   : > { %2877 = vst [vmem:[%s5630_s18 + $0x180] sm:$0xff] %v2813_v26  ;;  %2878 = vst [vmem:[%s5630_s18 + $0x188] sm:$0xff] %v2814_v53  ;;  %v2713_v42 = vmul.f32 %v5396_v8, %v2636_v29 }
 0x4f5   : > { %v2811_v5 = vadd.f32 %v2748_v56, %v2706_v48  ;;  %v2812_v45 = vadd.f32 %v2748_v56, %v2707_v58  ;;  %v2817_v17 = vadd.f32 %v2752_v11, %v2712_v19 }
 0x4f6   : > { %v2818_v21 = vadd.f32 %v2752_v11, %v2713_v42  ;;  %v2632_v61 = vpop.permute.xlu1 %2631  ;;  %v2647_v31 = vpop.permute.xlu0 %2646 }
 0x4f7   : > { %2875 = vst [vmem:[%s5630_s18 + $0x170] sm:$0xff] %v2811_v5  ;;  %2876 = vst [vmem:[%s5630_s18 + $0x178] sm:$0xff] %v2812_v45  ;;  %v2710_v14 = vmul.f32 %v5354_v41, %v2632_v61  ;;  %v2711_v55 = vmul.f32 %v5359_v15, %v2632_v61  ;;  %v2716_v44 = vmul.f32 %v5403_v3, %v2647_v31 }
 0x4f8   : > { %2881 = vst [vmem:[%s5630_s18 + $0x1a0] sm:$0xff] %v2817_v17  ;;  %2882 = vst [vmem:[%s5630_s18 + $0x1a8] sm:$0xff] %v2818_v21  ;;  %v2717_v8 = vmul.f32 %v5407_v51, %v2647_v31 }
 0x4f9   : > { %v2815_v49 = vadd.f32 %v2752_v11, %v2710_v14  ;;  %v2816_v54 = vadd.f32 %v2752_v11, %v2711_v55  ;;  %v2821_v28 = vadd.f32 %v2756_v32, %v2716_v44 }
 0x4fa   : > { %v2822_v56 = vadd.f32 %v2756_v32, %v2717_v8  ;;  %v2640_v30 = vpop.permute.xlu1 %2639  ;;  %v2655_v25 = vpop.permute.xlu0 %2654 }
 0x4fb   : > { %2879 = vst [vmem:[%s5630_s18 + $0x190] sm:$0xff] %v2815_v49  ;;  %2880 = vst [vmem:[%s5630_s18 + $0x198] sm:$0xff] %v2816_v54  ;;  %v2714_v41 = vmul.f32 %v5436_v40, %v2640_v30  ;;  %v2715_v15 = vmul.f32 %v5441_v13, %v2640_v30  ;;  %v2720_v3 = vmul.f32 %v5454_v1, %v2655_v25 }
 0x4fc   : > { %2885 = vst [vmem:[%s5630_s18 + $0x1c0] sm:$0xff] %v2821_v28  ;;  %2886 = vst [vmem:[%s5630_s18 + $0x1c8] sm:$0xff] %v2822_v56  ;;  %v2721_v51 = vmul.f32 %v5460_v20, %v2655_v25 }
 0x4fd   : > { %v2819_v60 = vadd.f32 %v2752_v11, %v2714_v41  ;;  %v2820_v39 = vadd.f32 %v2752_v11, %v2715_v15  ;;  %v2825_v59 = vadd.f32 %v2756_v32, %v2720_v3 }
 0x4fe   : > { %v2826_v24 = vadd.f32 %v2756_v32, %v2721_v51  ;;  %v2651_v63 = vpop.permute.xlu1 %2650 }
 0x4ff   : > { %2883 = vst [vmem:[%s5630_s18 + $0x1b0] sm:$0xff] %v2819_v60  ;;  %2884 = vst [vmem:[%s5630_s18 + $0x1b8] sm:$0xff] %v2820_v39  ;;  %v2718_v40 = vmul.f32 %v5425_v2, %v2651_v63  ;;  %v2719_v13 = vmul.f32 %v5430_v34, %v2651_v63 }
 0x500   : > { %2889 = vst [vmem:[%s5630_s18 + $0x1e0] sm:$0xff] %v2825_v59  ;;  %2890 = vst [vmem:[%s5630_s18 + $0x1e8] sm:$0xff] %v2826_v24 }
 0x501   : > { %v2823_v1 = vadd.f32 %v2756_v32, %v2718_v40  ;;  %v2824_v20 = vadd.f32 %v2756_v32, %v2719_v13 }
 0x502   : > { %v2659_v6 = vpop.permute.xlu1 %2658 }
 0x503   : > { %2887 = vst [vmem:[%s5630_s18 + $0x1d0] sm:$0xff] %v2823_v1  ;;  %2888 = vst [vmem:[%s5630_s18 + $0x1d8] sm:$0xff] %v2824_v20  ;;  %v2722_v22 = vmul.f32 %v6088_v27, %v2659_v6  ;;  %v2723_v16 = vmul.f32 %v6089_v0, %v2659_v6 }
 0x505   : > { %v2827_v2 = vadd.f32 %v2756_v32, %v2722_v22  ;;  %v2828_v34 = vadd.f32 %v2756_v32, %v2723_v16 }
 0x507   : > { %2891 = vst [vmem:[%s5630_s18 + $0x1f0] sm:$0xff] %v2827_v2  ;;  %2892 = vst [vmem:[%s5630_s18 + $0x1f8] sm:$0xff] %v2828_v34 }
 0x508   : > { %3398 = shalt.err (!%p3395_p11)
}
 0x509   : > { %s3399_s11 = scalar_lea.hbm %s5815_s9, 8192  ;;  %s3403_s17 = scalar_lea.hbm %s5870_s7, 16384 }
 0x50a   : > { %p3400_p0 = scmp.ne.s32.totalorder %s5815_s9, %s3399_s11  ;;  %p3404_p6 = scmp.lt.u32.totalorder %s5815_s9, %s5870_s7 }
 0x50b   : > { %p3405_p3 = scmp.lt.u32.totalorder %s3403_s17, %s3399_s11  ;;  %p3407_p5 = scmp.lt.u32.totalorder %s3399_s11, %s5815_s9 }
 0x50c   : > { %p3401_p2 = pnand %p3400_p0, %p6090_p12 }
 0x50d   : > { %p3406_p13 = por %p3405_p3, %p3404_p6 }
 0x50e   : > { %p3402_p7 = pneg %p3401_p2 }
 0x50f   : > { %p3408_p8 = por %p3407_p5, %p3406_p13 }
 0x511   : > { %p3409_p9 = pnand %p3408_p8, %p3402_p7 }
 0x513   : > { %3412 = shalt.err (!%p3409_p9)
}
 0x514   : > { %s3465_s19 = smov 256   ;;  %s3466_s22 = smov 16  }
 0x515   : > { %3114 = dma.vmem_to_hbm [thread:$0]  (%p6090_p12), %s5817_s20, 8192, %s5815_s9, %s2894_s28, %s3465_s19, %s3465_s19, %s3466_s22  }
 0x516 PF: > { %s2923_s6 = sand.u32 1, %s3443_s24   ;;  %p6091_p10 = scmp.ne.s32.totalorder %s5935_s14, 0 }
 0x517   : > { %p6092_p1 = scmp.ge.s32.totalorder %s3455_s27, 2  ;;  %s2924_s12 = scalar_lea.sflag [#allocation4], %s2923_s6 }
 0x519   : > { %p3125_p4 = pnand %p6092_p1, %p6091_p10 }
 0x51b   : > { %3438 = dma.done.wait (!%p3125_p4), %s2924_s12, 8192  }
 0x51c   : > { %3440 = vsyncadd (!%p3125_p4), %s2924_s12, 4294959104  ;;  %p21_p11 = scmp.ge.s32.totalorder %s3532_s30, 4   ;;  %s6093_s24 = smov %s3447_s25 }
 0x51d   : > { %s6094_s25 = smov %s3451_s26  ;;  %s6095_s26 = smov %s3544_s10 }
 0x51e   : > { %s6096_s27 = smov %s3532_s30  ;;  %23 = sbr.rel (!%p21_p11) target bundleno = 8 (0x8), region = 98 }
 0x525   :  { %2929 = vsyncpa [#allocation3], 1 }
 0x526   :  { %2931 = vsyncpa [#allocation3 + $0x1], 1 }
 0x527   :  { %2932 = vsyncpa [#allocation4], 1 }
 0x528   :  { %2934 = vsyncpa [#allocation4 + $0x1], 1 }
 0x529   :  { %2935 = vsyncpa [#allocation5], 1 }
 0x52a   :  { %2937 = vsyncpa [#allocation5 + $0x1], 1 }

</bundles_post_ra>
